<compile_context>
chip_gen: v6e
topology: v6e:2x2x1
jax: 0.10.0
libtpu: 0.0.40
codegen_flags: <defaults>
</compile_context>

<pallas_src>
import numpy as np
import jax
import jax.numpy as jnp
from jax.experimental import pallas as pl
from jax.experimental.pallas import tpu as pltpu

# ----------------------------- configuration (small, consistent w/ module) ---
IN_EMB = 4         # input_emb_width  (decoder output channels)
OUT_EMB = 32       # output_emb_width (decoder input channels)
WIDTH = 32
DOWN_T = 2
DEPTH = 2
DIL_RATE = 3
N_BATCH = 2
T_IN = 16          # quantized sequence length fed to the decoder
T_OUT = T_IN * (2 ** DOWN_T)          # branch1 (scale 2) sets the output length
MXU_DT = jnp.bfloat16                 # matmul operand dtype (accumulation stays f32)

DILS = [DIL_RATE ** d for d in range(DEPTH)][::-1]   # reverse_dilation=True -> [3, 1]


def _round8(n):
    return (n + 7) // 8 * 8


# ---------------- static layout plan, shared by the packer and the kernel ----
def _branch_conv_shapes():
    s = [(WIDTH, OUT_EMB, 3)]                                  # conv_in
    for _ in range(DOWN_T):
        for _d in range(DEPTH):                                # ResConv1DBlock
            s += [(WIDTH, WIDTH, 3), (WIDTH, WIDTH, 1)]
        s += [(WIDTH, WIDTH, 3)]                               # post-upsample conv
    s += [(WIDTH, WIDTH, 3), (IN_EMB, WIDTH, 3)]               # conv_mid, conv_out
    return s


CONV_SHAPES = ([(2 * OUT_EMB, OUT_EMB, 1)]                     # split 1x1
               + _branch_conv_shapes()                         # branch1
               + _branch_conv_shapes()                         # branch2
               + [(IN_EMB, 2 * IN_EMB, 1)])                    # fusion 1x1

CONV_ROW_OFF = []
_r = 0
for (_co, _ci, _k) in CONV_SHAPES:
    CONV_ROW_OFF.append(_r)
    _r += _round8(_co)                                         # sublane-aligned rows
W_ROWS = _r                                                    # 856
W_LANES = 128                                                  # max K*Cin is 96


def _resample_plan(t_in):
    """Row offsets / sizes of the precomputed resize matrices in the matrix blob."""
    b1, b2 = [], []
    rows = 0
    t = t_in
    for _ in range(DOWN_T):                                    # branch1: nearest x2
        b1.append((rows, t, t * 2)); rows += t; t *= 2
    t = t_in
    for _ in range(DOWN_T):                                    # branch2: nearest x4
        b2.append((rows, t, t * 4)); rows += t; t *= 4
    lin = (rows, t, t_in * 2 ** DOWN_T); rows += t             # linear resize -> T_OUT
    return b1, b2, lin, rows


UP1_PLAN, UP2_PLAN, LIN_PLAN, M_ROWS = _resample_plan(T_IN)
M_LANES = max(c for (_, _, c) in UP1_PLAN + UP2_PLAN + [LIN_PLAN])   # 256


# ----------------------------- the fused decoder kernel ----------------------
def _decoder_kernel(x_ref, w_ref, b_ref, m_ref, o_ref):
    def resample(x, entry):
        off, t_src, t_dst = entry
        g = m_ref[off:off + t_src, 0:t_dst]                    # precomputed bf16 matrix
        return jnp.dot(x.astype(MXU_DT), g, preferred_element_type=jnp.float32)

    def run_one(x):                                            # x: (OUT_EMB, T_IN) f32
        idx = iter(range(len(CONV_SHAPES)))                    # restart plan per batch item

        def conv(x, *, dil=1, relu_in=False, relu_out=False):
            i = next(idx)
            cout, cin, k = CONV_SHAPES[i]
            off = CONV_ROW_OFF[i]
            if relu_in:
                x = jnp.maximum(x, 0.0)
            xc = x.astype(MXU_DT)
            if k == 3:                                         # fused-tap im2col (sublanes)
                c, t = xc.shape
                z = jnp.zeros((c, dil), MXU_DT)
                x_l = jnp.concatenate([z, xc[:, : t - dil]], axis=-1)   # tap 0: x[t-d]
                x_r = jnp.concatenate([xc[:, dil:], z], axis=-1)        # tap 2: x[t+d]
                xc = jnp.concatenate([x_l, xc, x_r], axis=0)            # (3*Cin, T)
            w = w_ref[off:off + cout, 0:k * cin]               # (Cout, K*Cin) bf16, static slice
            b = b_ref[off:off + cout, :]                       # (Cout, 1)     f32
            y = jnp.dot(w, xc, preferred_element_type=jnp.float32) + b
            return jnp.maximum(y, 0.0) if relu_out else y

        def branch(x, up_plan):
            x = conv(x, relu_out=True)                         # Conv1d(3,1,1) + ReLU
            for blk in range(DOWN_T):
                for d in DILS:                                 # Resnet1D / ResConv1DBlock
                    h = conv(x, dil=d, relu_in=True)           # relu -> dilated 3-tap conv
                    h = conv(h, relu_in=True)                  # relu -> 1x1 conv
                    x = x + h                                  # residual add (f32)
                x = resample(x, up_plan[blk])                  # nn.Upsample(nearest)
                x = conv(x)                                    # Conv1d(3,1,1)
            x = conv(x, relu_out=True)                         # conv_mid + ReLU
            return conv(x)                                     # conv_out -> IN_EMB channels

        s = conv(x)                                            # split 1x1 -> (2*OUT_EMB, T)
        out1 = branch(s[:OUT_EMB, :], UP1_PLAN)                # torch.chunk(..., 2, dim=1)
        out2 = branch(s[OUT_EMB:, :], UP2_PLAN)
        out2 = resample(out2, LIN_PLAN)                        # F.interpolate(linear, ac=False)
        return conv(jnp.concatenate([out1, out2], axis=0))     # fusion 1x1 over channel concat

    ys = [run_one(x_ref[b]) for b in range(N_BATCH)]           # batch unrolled, no grid
    o_ref[...] = jnp.concatenate(ys, axis=-1)                  # (IN_EMB, N*T_OUT): lane-dense


# ----------------------------- wrapper / pallas_call --------------------------
def decoder_forward(x, w_blob, b_blob, m_blob):
    """x: (N, OUT_EMB, T) NCT. Returns (N, IN_EMB, T * 2**DOWN_T) NCT."""
    assert x.shape == (N_BATCH, OUT_EMB, T_IN)
    y = pl.pallas_call(
        _decoder_kernel,
        out_shape=jax.ShapeDtypeStruct((IN_EMB, N_BATCH * T_OUT), jnp.float32),
    )(x, w_blob, b_blob, m_blob)                               # single invocation, all in VMEM
    # cheap XLA-side un-fold of the lane-dense kernel output
    return y.reshape(IN_EMB, N_BATCH, T_OUT).transpose(1, 0, 2)


# ----------------------------- deterministic parameter init ------------------
class KeyGen:
    def __init__(self, seed):
        self.key = jax.random.PRNGKey(seed)

    def __call__(self):
        self.key, sub = jax.random.split(self.key)
        return sub


def _init_conv(kg, cout, cin, k):
    bound = (cin * k) ** -0.5
    return {"w": jax.random.uniform(kg(), (cout, cin, k), jnp.float32, -bound, bound),
            "b": jax.random.uniform(kg(), (cout,), jnp.float32, -bound, bound)}


def _init_branch(kg):
    return {"conv_in": _init_conv(kg, WIDTH, OUT_EMB, 3),
            "blocks": [{"res": [{"conv1": _init_conv(kg, WIDTH, WIDTH, 3),
                                 "conv2": _init_conv(kg, WIDTH, WIDTH, 1)}
                                for _ in range(DEPTH)],
                        "up_conv": _init_conv(kg, WIDTH, WIDTH, 3)}
                       for _ in range(DOWN_T)],
            "conv_mid": _init_conv(kg, WIDTH, WIDTH, 3),
            "conv_out": _init_conv(kg, IN_EMB, WIDTH, 3)}


def init_decoder(seed):
    kg = KeyGen(seed)
    return {"split": _init_conv(kg, 2 * OUT_EMB, OUT_EMB, 1),
            "branch1": _init_branch(kg),
            "branch2": _init_branch(kg),
            "fusion": _init_conv(kg, IN_EMB, 2 * IN_EMB, 1)}


def _flatten_convs(params):
    """Params in the exact order the kernel consumes them (matches CONV_SHAPES)."""
    convs = [params["split"]]
    for br in ("branch1", "branch2"):
        bp = params[br]
        convs.append(bp["conv_in"])
        for blk in bp["blocks"]:
            for rb in blk["res"]:
                convs += [rb["conv1"], rb["conv2"]]
            convs.append(blk["up_conv"])
        convs += [bp["conv_mid"], bp["conv_out"]]
    convs.append(params["fusion"])
    return convs


# ------------- one-time repack: single weight blob + single bias blob --------
def pack_decoder_params(params):
    convs = _flatten_convs(params)
    assert len(convs) == len(CONV_SHAPES)
    wblob = np.zeros((W_ROWS, W_LANES), np.float32)
    bblob = np.zeros((W_ROWS, 1), np.float32)
    for p, (co, ci, k), off in zip(convs, CONV_SHAPES, CONV_ROW_OFF):
        w = np.asarray(p["w"], np.float32)                      # (Cout, Cin, K)
        assert w.shape == (co, ci, k)
        w2 = np.transpose(w, (0, 2, 1)).reshape(co, k * ci)     # (Cout, K*Cin), taps major
        wblob[off:off + co, :k * ci] = w2
        bblob[off:off + co, 0] = np.asarray(p["b"], np.float32)
    # Note: bf16 weights (review correctness note): ~1e-2 rel. error vs f32 PyTorch.
    return jnp.asarray(wblob, MXU_DT), jnp.asarray(bblob, jnp.float32)


# ------------- one-time build of nearest-upsample / linear-resize matrices ---
def _nearest_matrix(t_in, t_out):
    s = t_out // t_in
    j = np.arange(t_out)
    m = np.zeros((t_in, t_out), np.float32)
    m[j // s, j] = 1.0                                          # out[j] = in[floor(j/s)]
    return m


def _linear_matrix(l_in, l_out):
    # F.interpolate(mode='linear', align_corners=False)
    scale = l_in / l_out
    j = np.arange(l_out, dtype=np.float64)
    src = np.maximum((j + 0.5) * scale - 0.5, 0.0)
    i0 = np.minimum(np.floor(src), l_in - 1).astype(np.int64)
    i1 = np.minimum(i0 + 1, l_in - 1)
    w1 = (src - i0).astype(np.float32)
    m = np.zeros((l_in, l_out), np.float32)
    m[i0, np.arange(l_out)] += 1.0 - w1
    m[i1, np.arange(l_out)] += w1
    return m


def build_resample_blob():
    blob = np.zeros((M_ROWS, M_LANES), np.float32)
    for (off, t_src, t_dst) in UP1_PLAN + UP2_PLAN:
        blob[off:off + t_src, :t_dst] = _nearest_matrix(t_src, t_dst)
    off, t_src, t_dst = LIN_PLAN
    blob[off:off + t_src, :t_dst] = _linear_matrix(t_src, t_dst)
    # 0/1 and 0.5 weights: exactly representable in bf16.
    return jnp.asarray(blob, MXU_DT)


# ----------------------------- main -------------------------------------------
if __name__ == "__main__":
    key = jax.random.PRNGKey(0)
    x = jax.random.normal(key, (N_BATCH, OUT_EMB, T_IN), jnp.float32)

    params = init_decoder(0)
    w_blob, b_blob = pack_decoder_params(params)     # one-time repack into 2 blobs
    m_blob = build_resample_blob()                   # precomputed resize matrices

    fwd = jax.jit(decoder_forward)
    y = fwd(x, w_blob, b_blob, m_blob)
    jax.block_until_ready(y)

    assert y.shape == (N_BATCH, IN_EMB, T_OUT)
    assert bool(jnp.all(jnp.isfinite(y)))
    print("KERNEL_OK")
</pallas_src>

<mosaic_0001>
module attributes {stable_mosaic.version = 11 : i64} {
  func.func @_decoder_kernel(%arg0: memref<2x32x16xf32, #tpu.memory_space<vmem>>, %arg1: memref<856x128xbf16, #tpu.memory_space<vmem>>, %arg2: memref<856x1xf32, #tpu.memory_space<vmem>>, %arg3: memref<384x256xbf16, #tpu.memory_space<vmem>>, %arg4: memref<4x128xf32, #tpu.memory_space<vmem>>) attributes {dimension_semantics = [], scalar_prefetch = 0 : i64, scratch_operands = 0 : i64, tpu.core_type = #tpu.core_type<tc>} {
    %c0 = arith.constant 0 : index
    %c0_0 = arith.constant 0 : index
    %c0_1 = arith.constant 0 : index
    %0 = vector.load %arg0[%c0, %c0_0, %c0_1] : memref<2x32x16xf32, #tpu.memory_space<vmem>>, vector<1x32x16xf32>
    %1 = vector.shape_cast %0 : vector<1x32x16xf32> to vector<32x16xf32>
    %2 = arith.truncf %1 : vector<32x16xf32> to vector<32x16xbf16>
    %c0_2 = arith.constant 0 : index
    %c0_3 = arith.constant 0 : index
    %3 = vector.load %arg1[%c0_2, %c0_3] : memref<856x128xbf16, #tpu.memory_space<vmem>>, vector<64x32xbf16>
    %c0_4 = arith.constant 0 : index
    %c0_5 = arith.constant 0 : index
    %4 = vector.load %arg2[%c0_4, %c0_5] : memref<856x1xf32, #tpu.memory_space<vmem>>, vector<64x1xf32>
    %cst = arith.constant dense<0.000000e+00> : vector<64x16xf32>
    %5 = tpu.matmul %3, %2, %cst {dimension_numbers = #tpu.dot_dimension_numbers<[1], [0], [0], [1], [0, 0, 1, 1], [], []>} : vector<64x32xbf16>, vector<32x16xbf16>, vector<64x16xf32> -> vector<64x16xf32>
    %6 = vector.broadcast %4 : vector<64x1xf32> to vector<64x16xf32>
    %7 = arith.addf %5, %6 : vector<64x16xf32>
    %8 = vector.extract_strided_slice %7 {offsets = [0, 0], sizes = [32, 16], strides = [1, 1]} : vector<64x16xf32> to vector<32x16xf32>
    %9 = arith.truncf %8 : vector<32x16xf32> to vector<32x16xbf16>
    %cst_6 = arith.constant 0.000000e+00 : bf16
    %10 = vector.broadcast %cst_6 : bf16 to vector<32x1xbf16>
    %11 = vector.extract_strided_slice %9 {offsets = [0, 0], sizes = [32, 15], strides = [1, 1]} : vector<32x16xbf16> to vector<32x15xbf16>
    %12 = tpu.concatenate %10, %11 in 1 : vector<32x1xbf16>, vector<32x15xbf16> -> vector<32x16xbf16>
    %13 = vector.extract_strided_slice %9 {offsets = [0, 1], sizes = [32, 15], strides = [1, 1]} : vector<32x16xbf16> to vector<32x15xbf16>
    %14 = tpu.concatenate %13, %10 in 1 : vector<32x15xbf16>, vector<32x1xbf16> -> vector<32x16xbf16>
    %15 = tpu.concatenate %12, %9, %14 in 0 : vector<32x16xbf16>, vector<32x16xbf16>, vector<32x16xbf16> -> vector<96x16xbf16>
    %c64 = arith.constant 64 : index
    %c0_7 = arith.constant 0 : index
    %16 = vector.load %arg1[%c64, %c0_7] : memref<856x128xbf16, #tpu.memory_space<vmem>>, vector<32x96xbf16>
    %c64_8 = arith.constant 64 : index
    %c0_9 = arith.constant 0 : index
    %17 = vector.load %arg2[%c64_8, %c0_9] : memref<856x1xf32, #tpu.memory_space<vmem>>, vector<32x1xf32>
    %cst_10 = arith.constant dense<0.000000e+00> : vector<32x16xf32>
    %18 = tpu.matmul %16, %15, %cst_10 {dimension_numbers = #tpu.dot_dimension_numbers<[1], [0], [0], [1], [0, 0, 1, 1], [], []>} : vector<32x96xbf16>, vector<96x16xbf16>, vector<32x16xf32> -> vector<32x16xf32>
    %19 = vector.broadcast %17 : vector<32x1xf32> to vector<32x16xf32>
    %20 = arith.addf %18, %19 : vector<32x16xf32>
    %cst_11 = arith.constant 0.000000e+00 : f32
    %21 = vector.broadcast %cst_11 : f32 to vector<32x16xf32>
    %22 = arith.maximumf %20, %21 : vector<32x16xf32>
    %cst_12 = arith.constant 0.000000e+00 : f32
    %23 = vector.broadcast %cst_12 : f32 to vector<32x16xf32>
    %24 = arith.maximumf %22, %23 : vector<32x16xf32>
    %25 = arith.truncf %24 : vector<32x16xf32> to vector<32x16xbf16>
    %cst_13 = arith.constant 0.000000e+00 : bf16
    %26 = vector.broadcast %cst_13 : bf16 to vector<32x3xbf16>
    %27 = vector.extract_strided_slice %25 {offsets = [0, 0], sizes = [32, 13], strides = [1, 1]} : vector<32x16xbf16> to vector<32x13xbf16>
    %28 = tpu.concatenate %26, %27 in 1 : vector<32x3xbf16>, vector<32x13xbf16> -> vector<32x16xbf16>
    %29 = vector.extract_strided_slice %25 {offsets = [0, 3], sizes = [32, 13], strides = [1, 1]} : vector<32x16xbf16> to vector<32x13xbf16>
    %30 = tpu.concatenate %29, %26 in 1 : vector<32x13xbf16>, vector<32x3xbf16> -> vector<32x16xbf16>
    %31 = tpu.concatenate %28, %25, %30 in 0 : vector<32x16xbf16>, vector<32x16xbf16>, vector<32x16xbf16> -> vector<96x16xbf16>
    %c96 = arith.constant 96 : index
    %c0_14 = arith.constant 0 : index
    %32 = vector.load %arg1[%c96, %c0_14] : memref<856x128xbf16, #tpu.memory_space<vmem>>, vector<32x96xbf16>
    %c96_15 = arith.constant 96 : index
    %c0_16 = arith.constant 0 : index
    %33 = vector.load %arg2[%c96_15, %c0_16] : memref<856x1xf32, #tpu.memory_space<vmem>>, vector<32x1xf32>
    %cst_17 = arith.constant dense<0.000000e+00> : vector<32x16xf32>
    %34 = tpu.matmul %32, %31, %cst_17 {dimension_numbers = #tpu.dot_dimension_numbers<[1], [0], [0], [1], [0, 0, 1, 1], [], []>} : vector<32x96xbf16>, vector<96x16xbf16>, vector<32x16xf32> -> vector<32x16xf32>
    %35 = vector.broadcast %33 : vector<32x1xf32> to vector<32x16xf32>
    %36 = arith.addf %34, %35 : vector<32x16xf32>
    %cst_18 = arith.constant 0.000000e+00 : f32
    %37 = vector.broadcast %cst_18 : f32 to vector<32x16xf32>
    %38 = arith.maximumf %36, %37 : vector<32x16xf32>
    %39 = arith.truncf %38 : vector<32x16xf32> to vector<32x16xbf16>
    %c128 = arith.constant 128 : index
    %c0_19 = arith.constant 0 : index
    %40 = vector.load %arg1[%c128, %c0_19] : memref<856x128xbf16, #tpu.memory_space<vmem>>, vector<32x32xbf16>
    %c128_20 = arith.constant 128 : index
    %c0_21 = arith.constant 0 : index
    %41 = vector.load %arg2[%c128_20, %c0_21] : memref<856x1xf32, #tpu.memory_space<vmem>>, vector<32x1xf32>
    %cst_22 = arith.constant dense<0.000000e+00> : vector<32x16xf32>
    %42 = tpu.matmul %40, %39, %cst_22 {dimension_numbers = #tpu.dot_dimension_numbers<[1], [0], [0], [1], [0, 0, 1, 1], [], []>} : vector<32x32xbf16>, vector<32x16xbf16>, vector<32x16xf32> -> vector<32x16xf32>
    %43 = vector.broadcast %41 : vector<32x1xf32> to vector<32x16xf32>
    %44 = arith.addf %42, %43 : vector<32x16xf32>
    %45 = arith.addf %22, %44 : vector<32x16xf32>
    %cst_23 = arith.constant 0.000000e+00 : f32
    %46 = vector.broadcast %cst_23 : f32 to vector<32x16xf32>
    %47 = arith.maximumf %45, %46 : vector<32x16xf32>
    %48 = arith.truncf %47 : vector<32x16xf32> to vector<32x16xbf16>
    %cst_24 = arith.constant 0.000000e+00 : bf16
    %49 = vector.broadcast %cst_24 : bf16 to vector<32x1xbf16>
    %50 = vector.extract_strided_slice %48 {offsets = [0, 0], sizes = [32, 15], strides = [1, 1]} : vector<32x16xbf16> to vector<32x15xbf16>
    %51 = tpu.concatenate %49, %50 in 1 : vector<32x1xbf16>, vector<32x15xbf16> -> vector<32x16xbf16>
    %52 = vector.extract_strided_slice %48 {offsets = [0, 1], sizes = [32, 15], strides = [1, 1]} : vector<32x16xbf16> to vector<32x15xbf16>
    %53 = tpu.concatenate %52, %49 in 1 : vector<32x15xbf16>, vector<32x1xbf16> -> vector<32x16xbf16>
    %54 = tpu.concatenate %51, %48, %53 in 0 : vector<32x16xbf16>, vector<32x16xbf16>, vector<32x16xbf16> -> vector<96x16xbf16>
    %c160 = arith.constant 160 : index
    %c0_25 = arith.constant 0 : index
    %55 = vector.load %arg1[%c160, %c0_25] : memref<856x128xbf16, #tpu.memory_space<vmem>>, vector<32x96xbf16>
    %c160_26 = arith.constant 160 : index
    %c0_27 = arith.constant 0 : index
    %56 = vector.load %arg2[%c160_26, %c0_27] : memref<856x1xf32, #tpu.memory_space<vmem>>, vector<32x1xf32>
    %cst_28 = arith.constant dense<0.000000e+00> : vector<32x16xf32>
    %57 = tpu.matmul %55, %54, %cst_28 {dimension_numbers = #tpu.dot_dimension_numbers<[1], [0], [0], [1], [0, 0, 1, 1], [], []>} : vector<32x96xbf16>, vector<96x16xbf16>, vector<32x16xf32> -> vector<32x16xf32>
    %58 = vector.broadcast %56 : vector<32x1xf32> to vector<32x16xf32>
    %59 = arith.addf %57, %58 : vector<32x16xf32>
    %cst_29 = arith.constant 0.000000e+00 : f32
    %60 = vector.broadcast %cst_29 : f32 to vector<32x16xf32>
    %61 = arith.maximumf %59, %60 : vector<32x16xf32>
    %62 = arith.truncf %61 : vector<32x16xf32> to vector<32x16xbf16>
    %c192 = arith.constant 192 : index
    %c0_30 = arith.constant 0 : index
    %63 = vector.load %arg1[%c192, %c0_30] : memref<856x128xbf16, #tpu.memory_space<vmem>>, vector<32x32xbf16>
    %c192_31 = arith.constant 192 : index
    %c0_32 = arith.constant 0 : index
    %64 = vector.load %arg2[%c192_31, %c0_32] : memref<856x1xf32, #tpu.memory_space<vmem>>, vector<32x1xf32>
    %cst_33 = arith.constant dense<0.000000e+00> : vector<32x16xf32>
    %65 = tpu.matmul %63, %62, %cst_33 {dimension_numbers = #tpu.dot_dimension_numbers<[1], [0], [0], [1], [0, 0, 1, 1], [], []>} : vector<32x32xbf16>, vector<32x16xbf16>, vector<32x16xf32> -> vector<32x16xf32>
    %66 = vector.broadcast %64 : vector<32x1xf32> to vector<32x16xf32>
    %67 = arith.addf %65, %66 : vector<32x16xf32>
    %68 = arith.addf %45, %67 : vector<32x16xf32>
    %c0_34 = arith.constant 0 : index
    %c0_35 = arith.constant 0 : index
    %69 = vector.load %arg3[%c0_34, %c0_35] : memref<384x256xbf16, #tpu.memory_space<vmem>>, vector<16x32xbf16>
    %70 = arith.truncf %68 : vector<32x16xf32> to vector<32x16xbf16>
    %cst_36 = arith.constant dense<0.000000e+00> : vector<32x32xf32>
    %71 = tpu.matmul %70, %69, %cst_36 {dimension_numbers = #tpu.dot_dimension_numbers<[1], [0], [0], [1], [0, 0, 1, 1], [], []>} : vector<32x16xbf16>, vector<16x32xbf16>, vector<32x32xf32> -> vector<32x32xf32>
    %72 = arith.truncf %71 : vector<32x32xf32> to vector<32x32xbf16>
    %cst_37 = arith.constant 0.000000e+00 : bf16
    %73 = vector.broadcast %cst_37 : bf16 to vector<32x1xbf16>
    %74 = vector.extract_strided_slice %72 {offsets = [0, 0], sizes = [32, 31], strides = [1, 1]} : vector<32x32xbf16> to vector<32x31xbf16>
    %75 = tpu.concatenate %73, %74 in 1 : vector<32x1xbf16>, vector<32x31xbf16> -> vector<32x32xbf16>
    %76 = vector.extract_strided_slice %72 {offsets = [0, 1], sizes = [32, 31], strides = [1, 1]} : vector<32x32xbf16> to vector<32x31xbf16>
    %77 = tpu.concatenate %76, %73 in 1 : vector<32x31xbf16>, vector<32x1xbf16> -> vector<32x32xbf16>
    %78 = tpu.concatenate %75, %72, %77 in 0 : vector<32x32xbf16>, vector<32x32xbf16>, vector<32x32xbf16> -> vector<96x32xbf16>
    %c224 = arith.constant 224 : index
    %c0_38 = arith.constant 0 : index
    %79 = vector.load %arg1[%c224, %c0_38] : memref<856x128xbf16, #tpu.memory_space<vmem>>, vector<32x96xbf16>
    %c224_39 = arith.constant 224 : index
    %c0_40 = arith.constant 0 : index
    %80 = vector.load %arg2[%c224_39, %c0_40] : memref<856x1xf32, #tpu.memory_space<vmem>>, vector<32x1xf32>
    %cst_41 = arith.constant dense<0.000000e+00> : vector<32x32xf32>
    %81 = tpu.matmul %79, %78, %cst_41 {dimension_numbers = #tpu.dot_dimension_numbers<[1], [0], [0], [1], [0, 0, 1, 1], [], []>} : vector<32x96xbf16>, vector<96x32xbf16>, vector<32x32xf32> -> vector<32x32xf32>
    %82 = vector.broadcast %80 : vector<32x1xf32> to vector<32x32xf32>
    %83 = arith.addf %81, %82 : vector<32x32xf32>
    %cst_42 = arith.constant 0.000000e+00 : f32
    %84 = vector.broadcast %cst_42 : f32 to vector<32x32xf32>
    %85 = arith.maximumf %83, %84 : vector<32x32xf32>
    %86 = arith.truncf %85 : vector<32x32xf32> to vector<32x32xbf16>
    %cst_43 = arith.constant 0.000000e+00 : bf16
    %87 = vector.broadcast %cst_43 : bf16 to vector<32x3xbf16>
    %88 = vector.extract_strided_slice %86 {offsets = [0, 0], sizes = [32, 29], strides = [1, 1]} : vector<32x32xbf16> to vector<32x29xbf16>
    %89 = tpu.concatenate %87, %88 in 1 : vector<32x3xbf16>, vector<32x29xbf16> -> vector<32x32xbf16>
    %90 = vector.extract_strided_slice %86 {offsets = [0, 3], sizes = [32, 29], strides = [1, 1]} : vector<32x32xbf16> to vector<32x29xbf16>
    %91 = tpu.concatenate %90, %87 in 1 : vector<32x29xbf16>, vector<32x3xbf16> -> vector<32x32xbf16>
    %92 = tpu.concatenate %89, %86, %91 in 0 : vector<32x32xbf16>, vector<32x32xbf16>, vector<32x32xbf16> -> vector<96x32xbf16>
    %c256 = arith.constant 256 : index
    %c0_44 = arith.constant 0 : index
    %93 = vector.load %arg1[%c256, %c0_44] : memref<856x128xbf16, #tpu.memory_space<vmem>>, vector<32x96xbf16>
    %c256_45 = arith.constant 256 : index
    %c0_46 = arith.constant 0 : index
    %94 = vector.load %arg2[%c256_45, %c0_46] : memref<856x1xf32, #tpu.memory_space<vmem>>, vector<32x1xf32>
    %cst_47 = arith.constant dense<0.000000e+00> : vector<32x32xf32>
    %95 = tpu.matmul %93, %92, %cst_47 {dimension_numbers = #tpu.dot_dimension_numbers<[1], [0], [0], [1], [0, 0, 1, 1], [], []>} : vector<32x96xbf16>, vector<96x32xbf16>, vector<32x32xf32> -> vector<32x32xf32>
    %96 = vector.broadcast %94 : vector<32x1xf32> to vector<32x32xf32>
    %97 = arith.addf %95, %96 : vector<32x32xf32>
    %cst_48 = arith.constant 0.000000e+00 : f32
    %98 = vector.broadcast %cst_48 : f32 to vector<32x32xf32>
    %99 = arith.maximumf %97, %98 : vector<32x32xf32>
    %100 = arith.truncf %99 : vector<32x32xf32> to vector<32x32xbf16>
    %c288 = arith.constant 288 : index
    %c0_49 = arith.constant 0 : index
    %101 = vector.load %arg1[%c288, %c0_49] : memref<856x128xbf16, #tpu.memory_space<vmem>>, vector<32x32xbf16>
    %c288_50 = arith.constant 288 : index
    %c0_51 = arith.constant 0 : index
    %102 = vector.load %arg2[%c288_50, %c0_51] : memref<856x1xf32, #tpu.memory_space<vmem>>, vector<32x1xf32>
    %cst_52 = arith.constant dense<0.000000e+00> : vector<32x32xf32>
    %103 = tpu.matmul %101, %100, %cst_52 {dimension_numbers = #tpu.dot_dimension_numbers<[1], [0], [0], [1], [0, 0, 1, 1], [], []>} : vector<32x32xbf16>, vector<32x32xbf16>, vector<32x32xf32> -> vector<32x32xf32>
    %104 = vector.broadcast %102 : vector<32x1xf32> to vector<32x32xf32>
    %105 = arith.addf %103, %104 : vector<32x32xf32>
    %106 = arith.addf %83, %105 : vector<32x32xf32>
    %cst_53 = arith.constant 0.000000e+00 : f32
    %107 = vector.broadcast %cst_53 : f32 to vector<32x32xf32>
    %108 = arith.maximumf %106, %107 : vector<32x32xf32>
    %109 = arith.truncf %108 : vector<32x32xf32> to vector<32x32xbf16>
    %cst_54 = arith.constant 0.000000e+00 : bf16
    %110 = vector.broadcast %cst_54 : bf16 to vector<32x1xbf16>
    %111 = vector.extract_strided_slice %109 {offsets = [0, 0], sizes = [32, 31], strides = [1, 1]} : vector<32x32xbf16> to vector<32x31xbf16>
    %112 = tpu.concatenate %110, %111 in 1 : vector<32x1xbf16>, vector<32x31xbf16> -> vector<32x32xbf16>
    %113 = vector.extract_strided_slice %109 {offsets = [0, 1], sizes = [32, 31], strides = [1, 1]} : vector<32x32xbf16> to vector<32x31xbf16>
    %114 = tpu.concatenate %113, %110 in 1 : vector<32x31xbf16>, vector<32x1xbf16> -> vector<32x32xbf16>
    %115 = tpu.concatenate %112, %109, %114 in 0 : vector<32x32xbf16>, vector<32x32xbf16>, vector<32x32xbf16> -> vector<96x32xbf16>
    %c320 = arith.constant 320 : index
    %c0_55 = arith.constant 0 : index
    %116 = vector.load %arg1[%c320, %c0_55] : memref<856x128xbf16, #tpu.memory_space<vmem>>, vector<32x96xbf16>
    %c320_56 = arith.constant 320 : index
    %c0_57 = arith.constant 0 : index
    %117 = vector.load %arg2[%c320_56, %c0_57] : memref<856x1xf32, #tpu.memory_space<vmem>>, vector<32x1xf32>
    %cst_58 = arith.constant dense<0.000000e+00> : vector<32x32xf32>
    %118 = tpu.matmul %116, %115, %cst_58 {dimension_numbers = #tpu.dot_dimension_numbers<[1], [0], [0], [1], [0, 0, 1, 1], [], []>} : vector<32x96xbf16>, vector<96x32xbf16>, vector<32x32xf32> -> vector<32x32xf32>
    %119 = vector.broadcast %117 : vector<32x1xf32> to vector<32x32xf32>
    %120 = arith.addf %118, %119 : vector<32x32xf32>
    %cst_59 = arith.constant 0.000000e+00 : f32
    %121 = vector.broadcast %cst_59 : f32 to vector<32x32xf32>
    %122 = arith.maximumf %120, %121 : vector<32x32xf32>
    %123 = arith.truncf %122 : vector<32x32xf32> to vector<32x32xbf16>
    %c352 = arith.constant 352 : index
    %c0_60 = arith.constant 0 : index
    %124 = vector.load %arg1[%c352, %c0_60] : memref<856x128xbf16, #tpu.memory_space<vmem>>, vector<32x32xbf16>
    %c352_61 = arith.constant 352 : index
    %c0_62 = arith.constant 0 : index
    %125 = vector.load %arg2[%c352_61, %c0_62] : memref<856x1xf32, #tpu.memory_space<vmem>>, vector<32x1xf32>
    %cst_63 = arith.constant dense<0.000000e+00> : vector<32x32xf32>
    %126 = tpu.matmul %124, %123, %cst_63 {dimension_numbers = #tpu.dot_dimension_numbers<[1], [0], [0], [1], [0, 0, 1, 1], [], []>} : vector<32x32xbf16>, vector<32x32xbf16>, vector<32x32xf32> -> vector<32x32xf32>
    %127 = vector.broadcast %125 : vector<32x1xf32> to vector<32x32xf32>
    %128 = arith.addf %126, %127 : vector<32x32xf32>
    %129 = arith.addf %106, %128 : vector<32x32xf32>
    %c16 = arith.constant 16 : index
    %c0_64 = arith.constant 0 : index
    %130 = vector.load %arg3[%c16, %c0_64] : memref<384x256xbf16, #tpu.memory_space<vmem>>, vector<32x64xbf16>
    %131 = arith.truncf %129 : vector<32x32xf32> to vector<32x32xbf16>
    %cst_65 = arith.constant dense<0.000000e+00> : vector<32x64xf32>
    %132 = tpu.matmul %131, %130, %cst_65 {dimension_numbers = #tpu.dot_dimension_numbers<[1], [0], [0], [1], [0, 0, 1, 1], [], []>} : vector<32x32xbf16>, vector<32x64xbf16>, vector<32x64xf32> -> vector<32x64xf32>
    %133 = arith.truncf %132 : vector<32x64xf32> to vector<32x64xbf16>
    %cst_66 = arith.constant 0.000000e+00 : bf16
    %134 = vector.broadcast %cst_66 : bf16 to vector<32x1xbf16>
    %135 = vector.extract_strided_slice %133 {offsets = [0, 0], sizes = [32, 63], strides = [1, 1]} : vector<32x64xbf16> to vector<32x63xbf16>
    %136 = tpu.concatenate %134, %135 in 1 : vector<32x1xbf16>, vector<32x63xbf16> -> vector<32x64xbf16>
    %137 = vector.extract_strided_slice %133 {offsets = [0, 1], sizes = [32, 63], strides = [1, 1]} : vector<32x64xbf16> to vector<32x63xbf16>
    %138 = tpu.concatenate %137, %134 in 1 : vector<32x63xbf16>, vector<32x1xbf16> -> vector<32x64xbf16>
    %139 = tpu.concatenate %136, %133, %138 in 0 : vector<32x64xbf16>, vector<32x64xbf16>, vector<32x64xbf16> -> vector<96x64xbf16>
    %c384 = arith.constant 384 : index
    %c0_67 = arith.constant 0 : index
    %140 = vector.load %arg1[%c384, %c0_67] : memref<856x128xbf16, #tpu.memory_space<vmem>>, vector<32x96xbf16>
    %c384_68 = arith.constant 384 : index
    %c0_69 = arith.constant 0 : index
    %141 = vector.load %arg2[%c384_68, %c0_69] : memref<856x1xf32, #tpu.memory_space<vmem>>, vector<32x1xf32>
    %cst_70 = arith.constant dense<0.000000e+00> : vector<32x64xf32>
    %142 = tpu.matmul %140, %139, %cst_70 {dimension_numbers = #tpu.dot_dimension_numbers<[1], [0], [0], [1], [0, 0, 1, 1], [], []>} : vector<32x96xbf16>, vector<96x64xbf16>, vector<32x64xf32> -> vector<32x64xf32>
    %143 = vector.broadcast %141 : vector<32x1xf32> to vector<32x64xf32>
    %144 = arith.addf %142, %143 : vector<32x64xf32>
    %145 = arith.truncf %144 : vector<32x64xf32> to vector<32x64xbf16>
    %cst_71 = arith.constant 0.000000e+00 : bf16
    %146 = vector.broadcast %cst_71 : bf16 to vector<32x1xbf16>
    %147 = vector.extract_strided_slice %145 {offsets = [0, 0], sizes = [32, 63], strides = [1, 1]} : vector<32x64xbf16> to vector<32x63xbf16>
    %148 = tpu.concatenate %146, %147 in 1 : vector<32x1xbf16>, vector<32x63xbf16> -> vector<32x64xbf16>
    %149 = vector.extract_strided_slice %145 {offsets = [0, 1], sizes = [32, 63], strides = [1, 1]} : vector<32x64xbf16> to vector<32x63xbf16>
    %150 = tpu.concatenate %149, %146 in 1 : vector<32x63xbf16>, vector<32x1xbf16> -> vector<32x64xbf16>
    %151 = tpu.concatenate %148, %145, %150 in 0 : vector<32x64xbf16>, vector<32x64xbf16>, vector<32x64xbf16> -> vector<96x64xbf16>
    %c416 = arith.constant 416 : index
    %c0_72 = arith.constant 0 : index
    %152 = vector.load %arg1[%c416, %c0_72] : memref<856x128xbf16, #tpu.memory_space<vmem>>, vector<32x96xbf16>
    %c416_73 = arith.constant 416 : index
    %c0_74 = arith.constant 0 : index
    %153 = vector.load %arg2[%c416_73, %c0_74] : memref<856x1xf32, #tpu.memory_space<vmem>>, vector<32x1xf32>
    %cst_75 = arith.constant dense<0.000000e+00> : vector<32x64xf32>
    %154 = tpu.matmul %152, %151, %cst_75 {dimension_numbers = #tpu.dot_dimension_numbers<[1], [0], [0], [1], [0, 0, 1, 1], [], []>} : vector<32x96xbf16>, vector<96x64xbf16>, vector<32x64xf32> -> vector<32x64xf32>
    %155 = vector.broadcast %153 : vector<32x1xf32> to vector<32x64xf32>
    %156 = arith.addf %154, %155 : vector<32x64xf32>
    %cst_76 = arith.constant 0.000000e+00 : f32
    %157 = vector.broadcast %cst_76 : f32 to vector<32x64xf32>
    %158 = arith.maximumf %156, %157 : vector<32x64xf32>
    %159 = arith.truncf %158 : vector<32x64xf32> to vector<32x64xbf16>
    %cst_77 = arith.constant 0.000000e+00 : bf16
    %160 = vector.broadcast %cst_77 : bf16 to vector<32x1xbf16>
    %161 = vector.extract_strided_slice %159 {offsets = [0, 0], sizes = [32, 63], strides = [1, 1]} : vector<32x64xbf16> to vector<32x63xbf16>
    %162 = tpu.concatenate %160, %161 in 1 : vector<32x1xbf16>, vector<32x63xbf16> -> vector<32x64xbf16>
    %163 = vector.extract_strided_slice %159 {offsets = [0, 1], sizes = [32, 63], strides = [1, 1]} : vector<32x64xbf16> to vector<32x63xbf16>
    %164 = tpu.concatenate %163, %160 in 1 : vector<32x63xbf16>, vector<32x1xbf16> -> vector<32x64xbf16>
    %165 = tpu.concatenate %162, %159, %164 in 0 : vector<32x64xbf16>, vector<32x64xbf16>, vector<32x64xbf16> -> vector<96x64xbf16>
    %c448 = arith.constant 448 : index
    %c0_78 = arith.constant 0 : index
    %166 = vector.load %arg1[%c448, %c0_78] : memref<856x128xbf16, #tpu.memory_space<vmem>>, vector<4x96xbf16>
    %c448_79 = arith.constant 448 : index
    %c0_80 = arith.constant 0 : index
    %167 = vector.load %arg2[%c448_79, %c0_80] : memref<856x1xf32, #tpu.memory_space<vmem>>, vector<4x1xf32>
    %cst_81 = arith.constant dense<0.000000e+00> : vector<4x64xf32>
    %168 = tpu.matmul %166, %165, %cst_81 {dimension_numbers = #tpu.dot_dimension_numbers<[1], [0], [0], [1], [0, 0, 1, 1], [], []>} : vector<4x96xbf16>, vector<96x64xbf16>, vector<4x64xf32> -> vector<4x64xf32>
    %169 = vector.broadcast %167 : vector<4x1xf32> to vector<4x64xf32>
    %170 = arith.addf %168, %169 : vector<4x64xf32>
    %171 = vector.extract_strided_slice %7 {offsets = [32, 0], sizes = [32, 16], strides = [1, 1]} : vector<64x16xf32> to vector<32x16xf32>
    %172 = arith.truncf %171 : vector<32x16xf32> to vector<32x16xbf16>
    %cst_82 = arith.constant 0.000000e+00 : bf16
    %173 = vector.broadcast %cst_82 : bf16 to vector<32x1xbf16>
    %174 = vector.extract_strided_slice %172 {offsets = [0, 0], sizes = [32, 15], strides = [1, 1]} : vector<32x16xbf16> to vector<32x15xbf16>
    %175 = tpu.concatenate %173, %174 in 1 : vector<32x1xbf16>, vector<32x15xbf16> -> vector<32x16xbf16>
    %176 = vector.extract_strided_slice %172 {offsets = [0, 1], sizes = [32, 15], strides = [1, 1]} : vector<32x16xbf16> to vector<32x15xbf16>
    %177 = tpu.concatenate %176, %173 in 1 : vector<32x15xbf16>, vector<32x1xbf16> -> vector<32x16xbf16>
    %178 = tpu.concatenate %175, %172, %177 in 0 : vector<32x16xbf16>, vector<32x16xbf16>, vector<32x16xbf16> -> vector<96x16xbf16>
    %c456 = arith.constant 456 : index
    %c0_83 = arith.constant 0 : index
    %179 = vector.load %arg1[%c456, %c0_83] : memref<856x128xbf16, #tpu.memory_space<vmem>>, vector<32x96xbf16>
    %c456_84 = arith.constant 456 : index
    %c0_85 = arith.constant 0 : index
    %180 = vector.load %arg2[%c456_84, %c0_85] : memref<856x1xf32, #tpu.memory_space<vmem>>, vector<32x1xf32>
    %cst_86 = arith.constant dense<0.000000e+00> : vector<32x16xf32>
    %181 = tpu.matmul %179, %178, %cst_86 {dimension_numbers = #tpu.dot_dimension_numbers<[1], [0], [0], [1], [0, 0, 1, 1], [], []>} : vector<32x96xbf16>, vector<96x16xbf16>, vector<32x16xf32> -> vector<32x16xf32>
    %182 = vector.broadcast %180 : vector<32x1xf32> to vector<32x16xf32>
    %183 = arith.addf %181, %182 : vector<32x16xf32>
    %cst_87 = arith.constant 0.000000e+00 : f32
    %184 = vector.broadcast %cst_87 : f32 to vector<32x16xf32>
    %185 = arith.maximumf %183, %184 : vector<32x16xf32>
    %cst_88 = arith.constant 0.000000e+00 : f32
    %186 = vector.broadcast %cst_88 : f32 to vector<32x16xf32>
    %187 = arith.maximumf %185, %186 : vector<32x16xf32>
    %188 = arith.truncf %187 : vector<32x16xf32> to vector<32x16xbf16>
    %cst_89 = arith.constant 0.000000e+00 : bf16
    %189 = vector.broadcast %cst_89 : bf16 to vector<32x3xbf16>
    %190 = vector.extract_strided_slice %188 {offsets = [0, 0], sizes = [32, 13], strides = [1, 1]} : vector<32x16xbf16> to vector<32x13xbf16>
    %191 = tpu.concatenate %189, %190 in 1 : vector<32x3xbf16>, vector<32x13xbf16> -> vector<32x16xbf16>
    %192 = vector.extract_strided_slice %188 {offsets = [0, 3], sizes = [32, 13], strides = [1, 1]} : vector<32x16xbf16> to vector<32x13xbf16>
    %193 = tpu.concatenate %192, %189 in 1 : vector<32x13xbf16>, vector<32x3xbf16> -> vector<32x16xbf16>
    %194 = tpu.concatenate %191, %188, %193 in 0 : vector<32x16xbf16>, vector<32x16xbf16>, vector<32x16xbf16> -> vector<96x16xbf16>
    %c488 = arith.constant 488 : index
    %c0_90 = arith.constant 0 : index
    %195 = vector.load %arg1[%c488, %c0_90] : memref<856x128xbf16, #tpu.memory_space<vmem>>, vector<32x96xbf16>
    %c488_91 = arith.constant 488 : index
    %c0_92 = arith.constant 0 : index
    %196 = vector.load %arg2[%c488_91, %c0_92] : memref<856x1xf32, #tpu.memory_space<vmem>>, vector<32x1xf32>
    %cst_93 = arith.constant dense<0.000000e+00> : vector<32x16xf32>
    %197 = tpu.matmul %195, %194, %cst_93 {dimension_numbers = #tpu.dot_dimension_numbers<[1], [0], [0], [1], [0, 0, 1, 1], [], []>} : vector<32x96xbf16>, vector<96x16xbf16>, vector<32x16xf32> -> vector<32x16xf32>
    %198 = vector.broadcast %196 : vector<32x1xf32> to vector<32x16xf32>
    %199 = arith.addf %197, %198 : vector<32x16xf32>
    %cst_94 = arith.constant 0.000000e+00 : f32
    %200 = vector.broadcast %cst_94 : f32 to vector<32x16xf32>
    %201 = arith.maximumf %199, %200 : vector<32x16xf32>
    %202 = arith.truncf %201 : vector<32x16xf32> to vector<32x16xbf16>
    %c520 = arith.constant 520 : index
    %c0_95 = arith.constant 0 : index
    %203 = vector.load %arg1[%c520, %c0_95] : memref<856x128xbf16, #tpu.memory_space<vmem>>, vector<32x32xbf16>
    %c520_96 = arith.constant 520 : index
    %c0_97 = arith.constant 0 : index
    %204 = vector.load %arg2[%c520_96, %c0_97] : memref<856x1xf32, #tpu.memory_space<vmem>>, vector<32x1xf32>
    %cst_98 = arith.constant dense<0.000000e+00> : vector<32x16xf32>
    %205 = tpu.matmul %203, %202, %cst_98 {dimension_numbers = #tpu.dot_dimension_numbers<[1], [0], [0], [1], [0, 0, 1, 1], [], []>} : vector<32x32xbf16>, vector<32x16xbf16>, vector<32x16xf32> -> vector<32x16xf32>
    %206 = vector.broadcast %204 : vector<32x1xf32> to vector<32x16xf32>
    %207 = arith.addf %205, %206 : vector<32x16xf32>
    %208 = arith.addf %185, %207 : vector<32x16xf32>
    %cst_99 = arith.constant 0.000000e+00 : f32
    %209 = vector.broadcast %cst_99 : f32 to vector<32x16xf32>
    %210 = arith.maximumf %208, %209 : vector<32x16xf32>
    %211 = arith.truncf %210 : vector<32x16xf32> to vector<32x16xbf16>
    %cst_100 = arith.constant 0.000000e+00 : bf16
    %212 = vector.broadcast %cst_100 : bf16 to vector<32x1xbf16>
    %213 = vector.extract_strided_slice %211 {offsets = [0, 0], sizes = [32, 15], strides = [1, 1]} : vector<32x16xbf16> to vector<32x15xbf16>
    %214 = tpu.concatenate %212, %213 in 1 : vector<32x1xbf16>, vector<32x15xbf16> -> vector<32x16xbf16>
    %215 = vector.extract_strided_slice %211 {offsets = [0, 1], sizes = [32, 15], strides = [1, 1]} : vector<32x16xbf16> to vector<32x15xbf16>
    %216 = tpu.concatenate %215, %212 in 1 : vector<32x15xbf16>, vector<32x1xbf16> -> vector<32x16xbf16>
    %217 = tpu.concatenate %214, %211, %216 in 0 : vector<32x16xbf16>, vector<32x16xbf16>, vector<32x16xbf16> -> vector<96x16xbf16>
    %c552 = arith.constant 552 : index
    %c0_101 = arith.constant 0 : index
    %218 = vector.load %arg1[%c552, %c0_101] : memref<856x128xbf16, #tpu.memory_space<vmem>>, vector<32x96xbf16>
    %c552_102 = arith.constant 552 : index
    %c0_103 = arith.constant 0 : index
    %219 = vector.load %arg2[%c552_102, %c0_103] : memref<856x1xf32, #tpu.memory_space<vmem>>, vector<32x1xf32>
    %cst_104 = arith.constant dense<0.000000e+00> : vector<32x16xf32>
    %220 = tpu.matmul %218, %217, %cst_104 {dimension_numbers = #tpu.dot_dimension_numbers<[1], [0], [0], [1], [0, 0, 1, 1], [], []>} : vector<32x96xbf16>, vector<96x16xbf16>, vector<32x16xf32> -> vector<32x16xf32>
    %221 = vector.broadcast %219 : vector<32x1xf32> to vector<32x16xf32>
    %222 = arith.addf %220, %221 : vector<32x16xf32>
    %cst_105 = arith.constant 0.000000e+00 : f32
    %223 = vector.broadcast %cst_105 : f32 to vector<32x16xf32>
    %224 = arith.maximumf %222, %223 : vector<32x16xf32>
    %225 = arith.truncf %224 : vector<32x16xf32> to vector<32x16xbf16>
    %c584 = arith.constant 584 : index
    %c0_106 = arith.constant 0 : index
    %226 = vector.load %arg1[%c584, %c0_106] : memref<856x128xbf16, #tpu.memory_space<vmem>>, vector<32x32xbf16>
    %c584_107 = arith.constant 584 : index
    %c0_108 = arith.constant 0 : index
    %227 = vector.load %arg2[%c584_107, %c0_108] : memref<856x1xf32, #tpu.memory_space<vmem>>, vector<32x1xf32>
    %cst_109 = arith.constant dense<0.000000e+00> : vector<32x16xf32>
    %228 = tpu.matmul %226, %225, %cst_109 {dimension_numbers = #tpu.dot_dimension_numbers<[1], [0], [0], [1], [0, 0, 1, 1], [], []>} : vector<32x32xbf16>, vector<32x16xbf16>, vector<32x16xf32> -> vector<32x16xf32>
    %229 = vector.broadcast %227 : vector<32x1xf32> to vector<32x16xf32>
    %230 = arith.addf %228, %229 : vector<32x16xf32>
    %231 = arith.addf %208, %230 : vector<32x16xf32>
    %c48 = arith.constant 48 : index
    %c0_110 = arith.constant 0 : index
    %232 = vector.load %arg3[%c48, %c0_110] : memref<384x256xbf16, #tpu.memory_space<vmem>>, vector<16x64xbf16>
    %233 = arith.truncf %231 : vector<32x16xf32> to vector<32x16xbf16>
    %cst_111 = arith.constant dense<0.000000e+00> : vector<32x64xf32>
    %234 = tpu.matmul %233, %232, %cst_111 {dimension_numbers = #tpu.dot_dimension_numbers<[1], [0], [0], [1], [0, 0, 1, 1], [], []>} : vector<32x16xbf16>, vector<16x64xbf16>, vector<32x64xf32> -> vector<32x64xf32>
    %235 = arith.truncf %234 : vector<32x64xf32> to vector<32x64xbf16>
    %cst_112 = arith.constant 0.000000e+00 : bf16
    %236 = vector.broadcast %cst_112 : bf16 to vector<32x1xbf16>
    %237 = vector.extract_strided_slice %235 {offsets = [0, 0], sizes = [32, 63], strides = [1, 1]} : vector<32x64xbf16> to vector<32x63xbf16>
    %238 = tpu.concatenate %236, %237 in 1 : vector<32x1xbf16>, vector<32x63xbf16> -> vector<32x64xbf16>
    %239 = vector.extract_strided_slice %235 {offsets = [0, 1], sizes = [32, 63], strides = [1, 1]} : vector<32x64xbf16> to vector<32x63xbf16>
    %240 = tpu.concatenate %239, %236 in 1 : vector<32x63xbf16>, vector<32x1xbf16> -> vector<32x64xbf16>
    %241 = tpu.concatenate %238, %235, %240 in 0 : vector<32x64xbf16>, vector<32x64xbf16>, vector<32x64xbf16> -> vector<96x64xbf16>
    %c616 = arith.constant 616 : index
    %c0_113 = arith.constant 0 : index
    %242 = vector.load %arg1[%c616, %c0_113] : memref<856x128xbf16, #tpu.memory_space<vmem>>, vector<32x96xbf16>
    %c616_114 = arith.constant 616 : index
    %c0_115 = arith.constant 0 : index
    %243 = vector.load %arg2[%c616_114, %c0_115] : memref<856x1xf32, #tpu.memory_space<vmem>>, vector<32x1xf32>
    %cst_116 = arith.constant dense<0.000000e+00> : vector<32x64xf32>
    %244 = tpu.matmul %242, %241, %cst_116 {dimension_numbers = #tpu.dot_dimension_numbers<[1], [0], [0], [1], [0, 0, 1, 1], [], []>} : vector<32x96xbf16>, vector<96x64xbf16>, vector<32x64xf32> -> vector<32x64xf32>
    %245 = vector.broadcast %243 : vector<32x1xf32> to vector<32x64xf32>
    %246 = arith.addf %244, %245 : vector<32x64xf32>
    %cst_117 = arith.constant 0.000000e+00 : f32
    %247 = vector.broadcast %cst_117 : f32 to vector<32x64xf32>
    %248 = arith.maximumf %246, %247 : vector<32x64xf32>
    %249 = arith.truncf %248 : vector<32x64xf32> to vector<32x64xbf16>
    %cst_118 = arith.constant 0.000000e+00 : bf16
    %250 = vector.broadcast %cst_118 : bf16 to vector<32x3xbf16>
    %251 = vector.extract_strided_slice %249 {offsets = [0, 0], sizes = [32, 61], strides = [1, 1]} : vector<32x64xbf16> to vector<32x61xbf16>
    %252 = tpu.concatenate %250, %251 in 1 : vector<32x3xbf16>, vector<32x61xbf16> -> vector<32x64xbf16>
    %253 = vector.extract_strided_slice %249 {offsets = [0, 3], sizes = [32, 61], strides = [1, 1]} : vector<32x64xbf16> to vector<32x61xbf16>
    %254 = tpu.concatenate %253, %250 in 1 : vector<32x61xbf16>, vector<32x3xbf16> -> vector<32x64xbf16>
    %255 = tpu.concatenate %252, %249, %254 in 0 : vector<32x64xbf16>, vector<32x64xbf16>, vector<32x64xbf16> -> vector<96x64xbf16>
    %c648 = arith.constant 648 : index
    %c0_119 = arith.constant 0 : index
    %256 = vector.load %arg1[%c648, %c0_119] : memref<856x128xbf16, #tpu.memory_space<vmem>>, vector<32x96xbf16>
    %c648_120 = arith.constant 648 : index
    %c0_121 = arith.constant 0 : index
    %257 = vector.load %arg2[%c648_120, %c0_121] : memref<856x1xf32, #tpu.memory_space<vmem>>, vector<32x1xf32>
    %cst_122 = arith.constant dense<0.000000e+00> : vector<32x64xf32>
    %258 = tpu.matmul %256, %255, %cst_122 {dimension_numbers = #tpu.dot_dimension_numbers<[1], [0], [0], [1], [0, 0, 1, 1], [], []>} : vector<32x96xbf16>, vector<96x64xbf16>, vector<32x64xf32> -> vector<32x64xf32>
    %259 = vector.broadcast %257 : vector<32x1xf32> to vector<32x64xf32>
    %260 = arith.addf %258, %259 : vector<32x64xf32>
    %cst_123 = arith.constant 0.000000e+00 : f32
    %261 = vector.broadcast %cst_123 : f32 to vector<32x64xf32>
    %262 = arith.maximumf %260, %261 : vector<32x64xf32>
    %263 = arith.truncf %262 : vector<32x64xf32> to vector<32x64xbf16>
    %c680 = arith.constant 680 : index
    %c0_124 = arith.constant 0 : index
    %264 = vector.load %arg1[%c680, %c0_124] : memref<856x128xbf16, #tpu.memory_space<vmem>>, vector<32x32xbf16>
    %c680_125 = arith.constant 680 : index
    %c0_126 = arith.constant 0 : index
    %265 = vector.load %arg2[%c680_125, %c0_126] : memref<856x1xf32, #tpu.memory_space<vmem>>, vector<32x1xf32>
    %cst_127 = arith.constant dense<0.000000e+00> : vector<32x64xf32>
    %266 = tpu.matmul %264, %263, %cst_127 {dimension_numbers = #tpu.dot_dimension_numbers<[1], [0], [0], [1], [0, 0, 1, 1], [], []>} : vector<32x32xbf16>, vector<32x64xbf16>, vector<32x64xf32> -> vector<32x64xf32>
    %267 = vector.broadcast %265 : vector<32x1xf32> to vector<32x64xf32>
    %268 = arith.addf %266, %267 : vector<32x64xf32>
    %269 = arith.addf %246, %268 : vector<32x64xf32>
    %cst_128 = arith.constant 0.000000e+00 : f32
    %270 = vector.broadcast %cst_128 : f32 to vector<32x64xf32>
    %271 = arith.maximumf %269, %270 : vector<32x64xf32>
    %272 = arith.truncf %271 : vector<32x64xf32> to vector<32x64xbf16>
    %cst_129 = arith.constant 0.000000e+00 : bf16
    %273 = vector.broadcast %cst_129 : bf16 to vector<32x1xbf16>
    %274 = vector.extract_strided_slice %272 {offsets = [0, 0], sizes = [32, 63], strides = [1, 1]} : vector<32x64xbf16> to vector<32x63xbf16>
    %275 = tpu.concatenate %273, %274 in 1 : vector<32x1xbf16>, vector<32x63xbf16> -> vector<32x64xbf16>
    %276 = vector.extract_strided_slice %272 {offsets = [0, 1], sizes = [32, 63], strides = [1, 1]} : vector<32x64xbf16> to vector<32x63xbf16>
    %277 = tpu.concatenate %276, %273 in 1 : vector<32x63xbf16>, vector<32x1xbf16> -> vector<32x64xbf16>
    %278 = tpu.concatenate %275, %272, %277 in 0 : vector<32x64xbf16>, vector<32x64xbf16>, vector<32x64xbf16> -> vector<96x64xbf16>
    %c712 = arith.constant 712 : index
    %c0_130 = arith.constant 0 : index
    %279 = vector.load %arg1[%c712, %c0_130] : memref<856x128xbf16, #tpu.memory_space<vmem>>, vector<32x96xbf16>
    %c712_131 = arith.constant 712 : index
    %c0_132 = arith.constant 0 : index
    %280 = vector.load %arg2[%c712_131, %c0_132] : memref<856x1xf32, #tpu.memory_space<vmem>>, vector<32x1xf32>
    %cst_133 = arith.constant dense<0.000000e+00> : vector<32x64xf32>
    %281 = tpu.matmul %279, %278, %cst_133 {dimension_numbers = #tpu.dot_dimension_numbers<[1], [0], [0], [1], [0, 0, 1, 1], [], []>} : vector<32x96xbf16>, vector<96x64xbf16>, vector<32x64xf32> -> vector<32x64xf32>
    %282 = vector.broadcast %280 : vector<32x1xf32> to vector<32x64xf32>
    %283 = arith.addf %281, %282 : vector<32x64xf32>
    %cst_134 = arith.constant 0.000000e+00 : f32
    %284 = vector.broadcast %cst_134 : f32 to vector<32x64xf32>
    %285 = arith.maximumf %283, %284 : vector<32x64xf32>
    %286 = arith.truncf %285 : vector<32x64xf32> to vector<32x64xbf16>
    %c744 = arith.constant 744 : index
    %c0_135 = arith.constant 0 : index
    %287 = vector.load %arg1[%c744, %c0_135] : memref<856x128xbf16, #tpu.memory_space<vmem>>, vector<32x32xbf16>
    %c744_136 = arith.constant 744 : index
    %c0_137 = arith.constant 0 : index
    %288 = vector.load %arg2[%c744_136, %c0_137] : memref<856x1xf32, #tpu.memory_space<vmem>>, vector<32x1xf32>
    %cst_138 = arith.constant dense<0.000000e+00> : vector<32x64xf32>
    %289 = tpu.matmul %287, %286, %cst_138 {dimension_numbers = #tpu.dot_dimension_numbers<[1], [0], [0], [1], [0, 0, 1, 1], [], []>} : vector<32x32xbf16>, vector<32x64xbf16>, vector<32x64xf32> -> vector<32x64xf32>
    %290 = vector.broadcast %288 : vector<32x1xf32> to vector<32x64xf32>
    %291 = arith.addf %289, %290 : vector<32x64xf32>
    %292 = arith.addf %269, %291 : vector<32x64xf32>
    %c64_139 = arith.constant 64 : index
    %c0_140 = arith.constant 0 : index
    %293 = vector.load %arg3[%c64_139, %c0_140] : memref<384x256xbf16, #tpu.memory_space<vmem>>, vector<64x256xbf16>
    %294 = arith.truncf %292 : vector<32x64xf32> to vector<32x64xbf16>
    %cst_141 = arith.constant dense<0.000000e+00> : vector<32x256xf32>
    %295 = tpu.matmul %294, %293, %cst_141 {dimension_numbers = #tpu.dot_dimension_numbers<[1], [0], [0], [1], [0, 0, 1, 1], [], []>} : vector<32x64xbf16>, vector<64x256xbf16>, vector<32x256xf32> -> vector<32x256xf32>
    %296 = arith.truncf %295 : vector<32x256xf32> to vector<32x256xbf16>
    %cst_142 = arith.constant 0.000000e+00 : bf16
    %297 = vector.broadcast %cst_142 : bf16 to vector<32x1xbf16>
    %298 = vector.extract_strided_slice %296 {offsets = [0, 0], sizes = [32, 255], strides = [1, 1]} : vector<32x256xbf16> to vector<32x255xbf16>
    %299 = tpu.concatenate %297, %298 in 1 : vector<32x1xbf16>, vector<32x255xbf16> -> vector<32x256xbf16>
    %300 = vector.extract_strided_slice %296 {offsets = [0, 1], sizes = [32, 255], strides = [1, 1]} : vector<32x256xbf16> to vector<32x255xbf16>
    %301 = tpu.concatenate %300, %297 in 1 : vector<32x255xbf16>, vector<32x1xbf16> -> vector<32x256xbf16>
    %302 = tpu.concatenate %299, %296, %301 in 0 : vector<32x256xbf16>, vector<32x256xbf16>, vector<32x256xbf16> -> vector<96x256xbf16>
    %c776 = arith.constant 776 : index
    %c0_143 = arith.constant 0 : index
    %303 = vector.load %arg1[%c776, %c0_143] : memref<856x128xbf16, #tpu.memory_space<vmem>>, vector<32x96xbf16>
    %c776_144 = arith.constant 776 : index
    %c0_145 = arith.constant 0 : index
    %304 = vector.load %arg2[%c776_144, %c0_145] : memref<856x1xf32, #tpu.memory_space<vmem>>, vector<32x1xf32>
    %cst_146 = arith.constant dense<0.000000e+00> : vector<32x256xf32>
    %305 = tpu.matmul %303, %302, %cst_146 {dimension_numbers = #tpu.dot_dimension_numbers<[1], [0], [0], [1], [0, 0, 1, 1], [], []>} : vector<32x96xbf16>, vector<96x256xbf16>, vector<32x256xf32> -> vector<32x256xf32>
    %306 = vector.broadcast %304 : vector<32x1xf32> to vector<32x256xf32>
    %307 = arith.addf %305, %306 : vector<32x256xf32>
    %308 = arith.truncf %307 : vector<32x256xf32> to vector<32x256xbf16>
    %cst_147 = arith.constant 0.000000e+00 : bf16
    %309 = vector.broadcast %cst_147 : bf16 to vector<32x1xbf16>
    %310 = vector.extract_strided_slice %308 {offsets = [0, 0], sizes = [32, 255], strides = [1, 1]} : vector<32x256xbf16> to vector<32x255xbf16>
    %311 = tpu.concatenate %309, %310 in 1 : vector<32x1xbf16>, vector<32x255xbf16> -> vector<32x256xbf16>
    %312 = vector.extract_strided_slice %308 {offsets = [0, 1], sizes = [32, 255], strides = [1, 1]} : vector<32x256xbf16> to vector<32x255xbf16>
    %313 = tpu.concatenate %312, %309 in 1 : vector<32x255xbf16>, vector<32x1xbf16> -> vector<32x256xbf16>
    %314 = tpu.concatenate %311, %308, %313 in 0 : vector<32x256xbf16>, vector<32x256xbf16>, vector<32x256xbf16> -> vector<96x256xbf16>
    %c808 = arith.constant 808 : index
    %c0_148 = arith.constant 0 : index
    %315 = vector.load %arg1[%c808, %c0_148] : memref<856x128xbf16, #tpu.memory_space<vmem>>, vector<32x96xbf16>
    %c808_149 = arith.constant 808 : index
    %c0_150 = arith.constant 0 : index
    %316 = vector.load %arg2[%c808_149, %c0_150] : memref<856x1xf32, #tpu.memory_space<vmem>>, vector<32x1xf32>
    %cst_151 = arith.constant dense<0.000000e+00> : vector<32x256xf32>
    %317 = tpu.matmul %315, %314, %cst_151 {dimension_numbers = #tpu.dot_dimension_numbers<[1], [0], [0], [1], [0, 0, 1, 1], [], []>} : vector<32x96xbf16>, vector<96x256xbf16>, vector<32x256xf32> -> vector<32x256xf32>
    %318 = vector.broadcast %316 : vector<32x1xf32> to vector<32x256xf32>
    %319 = arith.addf %317, %318 : vector<32x256xf32>
    %cst_152 = arith.constant 0.000000e+00 : f32
    %320 = vector.broadcast %cst_152 : f32 to vector<32x256xf32>
    %321 = arith.maximumf %319, %320 : vector<32x256xf32>
    %322 = arith.truncf %321 : vector<32x256xf32> to vector<32x256xbf16>
    %cst_153 = arith.constant 0.000000e+00 : bf16
    %323 = vector.broadcast %cst_153 : bf16 to vector<32x1xbf16>
    %324 = vector.extract_strided_slice %322 {offsets = [0, 0], sizes = [32, 255], strides = [1, 1]} : vector<32x256xbf16> to vector<32x255xbf16>
    %325 = tpu.concatenate %323, %324 in 1 : vector<32x1xbf16>, vector<32x255xbf16> -> vector<32x256xbf16>
    %326 = vector.extract_strided_slice %322 {offsets = [0, 1], sizes = [32, 255], strides = [1, 1]} : vector<32x256xbf16> to vector<32x255xbf16>
    %327 = tpu.concatenate %326, %323 in 1 : vector<32x255xbf16>, vector<32x1xbf16> -> vector<32x256xbf16>
    %328 = tpu.concatenate %325, %322, %327 in 0 : vector<32x256xbf16>, vector<32x256xbf16>, vector<32x256xbf16> -> vector<96x256xbf16>
    %c840 = arith.constant 840 : index
    %c0_154 = arith.constant 0 : index
    %329 = vector.load %arg1[%c840, %c0_154] : memref<856x128xbf16, #tpu.memory_space<vmem>>, vector<4x96xbf16>
    %c840_155 = arith.constant 840 : index
    %c0_156 = arith.constant 0 : index
    %330 = vector.load %arg2[%c840_155, %c0_156] : memref<856x1xf32, #tpu.memory_space<vmem>>, vector<4x1xf32>
    %cst_157 = arith.constant dense<0.000000e+00> : vector<4x256xf32>
    %331 = tpu.matmul %329, %328, %cst_157 {dimension_numbers = #tpu.dot_dimension_numbers<[1], [0], [0], [1], [0, 0, 1, 1], [], []>} : vector<4x96xbf16>, vector<96x256xbf16>, vector<4x256xf32> -> vector<4x256xf32>
    %332 = vector.broadcast %330 : vector<4x1xf32> to vector<4x256xf32>
    %333 = arith.addf %331, %332 : vector<4x256xf32>
    %c128_158 = arith.constant 128 : index
    %c0_159 = arith.constant 0 : index
    %334 = vector.load %arg3[%c128_158, %c0_159] : memref<384x256xbf16, #tpu.memory_space<vmem>>, vector<256x64xbf16>
    %335 = arith.truncf %333 : vector<4x256xf32> to vector<4x256xbf16>
    %cst_160 = arith.constant dense<0.000000e+00> : vector<4x64xf32>
    %336 = tpu.matmul %335, %334, %cst_160 {dimension_numbers = #tpu.dot_dimension_numbers<[1], [0], [0], [1], [0, 0, 1, 1], [], []>} : vector<4x256xbf16>, vector<256x64xbf16>, vector<4x64xf32> -> vector<4x64xf32>
    %337 = tpu.concatenate %170, %336 in 0 : vector<4x64xf32>, vector<4x64xf32> -> vector<8x64xf32>
    %338 = arith.truncf %337 : vector<8x64xf32> to vector<8x64xbf16>
    %c848 = arith.constant 848 : index
    %c0_161 = arith.constant 0 : index
    %339 = vector.load %arg1[%c848, %c0_161] : memref<856x128xbf16, #tpu.memory_space<vmem>>, vector<4x8xbf16>
    %c848_162 = arith.constant 848 : index
    %c0_163 = arith.constant 0 : index
    %340 = vector.load %arg2[%c848_162, %c0_163] : memref<856x1xf32, #tpu.memory_space<vmem>>, vector<4x1xf32>
    %cst_164 = arith.constant dense<0.000000e+00> : vector<4x64xf32>
    %341 = tpu.matmul %339, %338, %cst_164 {dimension_numbers = #tpu.dot_dimension_numbers<[1], [0], [0], [1], [0, 0, 1, 1], [], []>} : vector<4x8xbf16>, vector<8x64xbf16>, vector<4x64xf32> -> vector<4x64xf32>
    %342 = vector.broadcast %340 : vector<4x1xf32> to vector<4x64xf32>
    %343 = arith.addf %341, %342 : vector<4x64xf32>
    %c1 = arith.constant 1 : index
    %c0_165 = arith.constant 0 : index
    %c0_166 = arith.constant 0 : index
    %344 = vector.load %arg0[%c1, %c0_165, %c0_166] : memref<2x32x16xf32, #tpu.memory_space<vmem>>, vector<1x32x16xf32>
    %345 = vector.shape_cast %344 : vector<1x32x16xf32> to vector<32x16xf32>
    %346 = arith.truncf %345 : vector<32x16xf32> to vector<32x16xbf16>
    %c0_167 = arith.constant 0 : index
    %c0_168 = arith.constant 0 : index
    %347 = vector.load %arg1[%c0_167, %c0_168] : memref<856x128xbf16, #tpu.memory_space<vmem>>, vector<64x32xbf16>
    %c0_169 = arith.constant 0 : index
    %c0_170 = arith.constant 0 : index
    %348 = vector.load %arg2[%c0_169, %c0_170] : memref<856x1xf32, #tpu.memory_space<vmem>>, vector<64x1xf32>
    %cst_171 = arith.constant dense<0.000000e+00> : vector<64x16xf32>
    %349 = tpu.matmul %347, %346, %cst_171 {dimension_numbers = #tpu.dot_dimension_numbers<[1], [0], [0], [1], [0, 0, 1, 1], [], []>} : vector<64x32xbf16>, vector<32x16xbf16>, vector<64x16xf32> -> vector<64x16xf32>
    %350 = vector.broadcast %348 : vector<64x1xf32> to vector<64x16xf32>
    %351 = arith.addf %349, %350 : vector<64x16xf32>
    %352 = vector.extract_strided_slice %351 {offsets = [0, 0], sizes = [32, 16], strides = [1, 1]} : vector<64x16xf32> to vector<32x16xf32>
    %353 = arith.truncf %352 : vector<32x16xf32> to vector<32x16xbf16>
    %cst_172 = arith.constant 0.000000e+00 : bf16
    %354 = vector.broadcast %cst_172 : bf16 to vector<32x1xbf16>
    %355 = vector.extract_strided_slice %353 {offsets = [0, 0], sizes = [32, 15], strides = [1, 1]} : vector<32x16xbf16> to vector<32x15xbf16>
    %356 = tpu.concatenate %354, %355 in 1 : vector<32x1xbf16>, vector<32x15xbf16> -> vector<32x16xbf16>
    %357 = vector.extract_strided_slice %353 {offsets = [0, 1], sizes = [32, 15], strides = [1, 1]} : vector<32x16xbf16> to vector<32x15xbf16>
    %358 = tpu.concatenate %357, %354 in 1 : vector<32x15xbf16>, vector<32x1xbf16> -> vector<32x16xbf16>
    %359 = tpu.concatenate %356, %353, %358 in 0 : vector<32x16xbf16>, vector<32x16xbf16>, vector<32x16xbf16> -> vector<96x16xbf16>
    %c64_173 = arith.constant 64 : index
    %c0_174 = arith.constant 0 : index
    %360 = vector.load %arg1[%c64_173, %c0_174] : memref<856x128xbf16, #tpu.memory_space<vmem>>, vector<32x96xbf16>
    %c64_175 = arith.constant 64 : index
    %c0_176 = arith.constant 0 : index
    %361 = vector.load %arg2[%c64_175, %c0_176] : memref<856x1xf32, #tpu.memory_space<vmem>>, vector<32x1xf32>
    %cst_177 = arith.constant dense<0.000000e+00> : vector<32x16xf32>
    %362 = tpu.matmul %360, %359, %cst_177 {dimension_numbers = #tpu.dot_dimension_numbers<[1], [0], [0], [1], [0, 0, 1, 1], [], []>} : vector<32x96xbf16>, vector<96x16xbf16>, vector<32x16xf32> -> vector<32x16xf32>
    %363 = vector.broadcast %361 : vector<32x1xf32> to vector<32x16xf32>
    %364 = arith.addf %362, %363 : vector<32x16xf32>
    %cst_178 = arith.constant 0.000000e+00 : f32
    %365 = vector.broadcast %cst_178 : f32 to vector<32x16xf32>
    %366 = arith.maximumf %364, %365 : vector<32x16xf32>
    %cst_179 = arith.constant 0.000000e+00 : f32
    %367 = vector.broadcast %cst_179 : f32 to vector<32x16xf32>
    %368 = arith.maximumf %366, %367 : vector<32x16xf32>
    %369 = arith.truncf %368 : vector<32x16xf32> to vector<32x16xbf16>
    %cst_180 = arith.constant 0.000000e+00 : bf16
    %370 = vector.broadcast %cst_180 : bf16 to vector<32x3xbf16>
    %371 = vector.extract_strided_slice %369 {offsets = [0, 0], sizes = [32, 13], strides = [1, 1]} : vector<32x16xbf16> to vector<32x13xbf16>
    %372 = tpu.concatenate %370, %371 in 1 : vector<32x3xbf16>, vector<32x13xbf16> -> vector<32x16xbf16>
    %373 = vector.extract_strided_slice %369 {offsets = [0, 3], sizes = [32, 13], strides = [1, 1]} : vector<32x16xbf16> to vector<32x13xbf16>
    %374 = tpu.concatenate %373, %370 in 1 : vector<32x13xbf16>, vector<32x3xbf16> -> vector<32x16xbf16>
    %375 = tpu.concatenate %372, %369, %374 in 0 : vector<32x16xbf16>, vector<32x16xbf16>, vector<32x16xbf16> -> vector<96x16xbf16>
    %c96_181 = arith.constant 96 : index
    %c0_182 = arith.constant 0 : index
    %376 = vector.load %arg1[%c96_181, %c0_182] : memref<856x128xbf16, #tpu.memory_space<vmem>>, vector<32x96xbf16>
    %c96_183 = arith.constant 96 : index
    %c0_184 = arith.constant 0 : index
    %377 = vector.load %arg2[%c96_183, %c0_184] : memref<856x1xf32, #tpu.memory_space<vmem>>, vector<32x1xf32>
    %cst_185 = arith.constant dense<0.000000e+00> : vector<32x16xf32>
    %378 = tpu.matmul %376, %375, %cst_185 {dimension_numbers = #tpu.dot_dimension_numbers<[1], [0], [0], [1], [0, 0, 1, 1], [], []>} : vector<32x96xbf16>, vector<96x16xbf16>, vector<32x16xf32> -> vector<32x16xf32>
    %379 = vector.broadcast %377 : vector<32x1xf32> to vector<32x16xf32>
    %380 = arith.addf %378, %379 : vector<32x16xf32>
    %cst_186 = arith.constant 0.000000e+00 : f32
    %381 = vector.broadcast %cst_186 : f32 to vector<32x16xf32>
    %382 = arith.maximumf %380, %381 : vector<32x16xf32>
    %383 = arith.truncf %382 : vector<32x16xf32> to vector<32x16xbf16>
    %c128_187 = arith.constant 128 : index
    %c0_188 = arith.constant 0 : index
    %384 = vector.load %arg1[%c128_187, %c0_188] : memref<856x128xbf16, #tpu.memory_space<vmem>>, vector<32x32xbf16>
    %c128_189 = arith.constant 128 : index
    %c0_190 = arith.constant 0 : index
    %385 = vector.load %arg2[%c128_189, %c0_190] : memref<856x1xf32, #tpu.memory_space<vmem>>, vector<32x1xf32>
    %cst_191 = arith.constant dense<0.000000e+00> : vector<32x16xf32>
    %386 = tpu.matmul %384, %383, %cst_191 {dimension_numbers = #tpu.dot_dimension_numbers<[1], [0], [0], [1], [0, 0, 1, 1], [], []>} : vector<32x32xbf16>, vector<32x16xbf16>, vector<32x16xf32> -> vector<32x16xf32>
    %387 = vector.broadcast %385 : vector<32x1xf32> to vector<32x16xf32>
    %388 = arith.addf %386, %387 : vector<32x16xf32>
    %389 = arith.addf %366, %388 : vector<32x16xf32>
    %cst_192 = arith.constant 0.000000e+00 : f32
    %390 = vector.broadcast %cst_192 : f32 to vector<32x16xf32>
    %391 = arith.maximumf %389, %390 : vector<32x16xf32>
    %392 = arith.truncf %391 : vector<32x16xf32> to vector<32x16xbf16>
    %cst_193 = arith.constant 0.000000e+00 : bf16
    %393 = vector.broadcast %cst_193 : bf16 to vector<32x1xbf16>
    %394 = vector.extract_strided_slice %392 {offsets = [0, 0], sizes = [32, 15], strides = [1, 1]} : vector<32x16xbf16> to vector<32x15xbf16>
    %395 = tpu.concatenate %393, %394 in 1 : vector<32x1xbf16>, vector<32x15xbf16> -> vector<32x16xbf16>
    %396 = vector.extract_strided_slice %392 {offsets = [0, 1], sizes = [32, 15], strides = [1, 1]} : vector<32x16xbf16> to vector<32x15xbf16>
    %397 = tpu.concatenate %396, %393 in 1 : vector<32x15xbf16>, vector<32x1xbf16> -> vector<32x16xbf16>
    %398 = tpu.concatenate %395, %392, %397 in 0 : vector<32x16xbf16>, vector<32x16xbf16>, vector<32x16xbf16> -> vector<96x16xbf16>
    %c160_194 = arith.constant 160 : index
    %c0_195 = arith.constant 0 : index
    %399 = vector.load %arg1[%c160_194, %c0_195] : memref<856x128xbf16, #tpu.memory_space<vmem>>, vector<32x96xbf16>
    %c160_196 = arith.constant 160 : index
    %c0_197 = arith.constant 0 : index
    %400 = vector.load %arg2[%c160_196, %c0_197] : memref<856x1xf32, #tpu.memory_space<vmem>>, vector<32x1xf32>
    %cst_198 = arith.constant dense<0.000000e+00> : vector<32x16xf32>
    %401 = tpu.matmul %399, %398, %cst_198 {dimension_numbers = #tpu.dot_dimension_numbers<[1], [0], [0], [1], [0, 0, 1, 1], [], []>} : vector<32x96xbf16>, vector<96x16xbf16>, vector<32x16xf32> -> vector<32x16xf32>
    %402 = vector.broadcast %400 : vector<32x1xf32> to vector<32x16xf32>
    %403 = arith.addf %401, %402 : vector<32x16xf32>
    %cst_199 = arith.constant 0.000000e+00 : f32
    %404 = vector.broadcast %cst_199 : f32 to vector<32x16xf32>
    %405 = arith.maximumf %403, %404 : vector<32x16xf32>
    %406 = arith.truncf %405 : vector<32x16xf32> to vector<32x16xbf16>
    %c192_200 = arith.constant 192 : index
    %c0_201 = arith.constant 0 : index
    %407 = vector.load %arg1[%c192_200, %c0_201] : memref<856x128xbf16, #tpu.memory_space<vmem>>, vector<32x32xbf16>
    %c192_202 = arith.constant 192 : index
    %c0_203 = arith.constant 0 : index
    %408 = vector.load %arg2[%c192_202, %c0_203] : memref<856x1xf32, #tpu.memory_space<vmem>>, vector<32x1xf32>
    %cst_204 = arith.constant dense<0.000000e+00> : vector<32x16xf32>
    %409 = tpu.matmul %407, %406, %cst_204 {dimension_numbers = #tpu.dot_dimension_numbers<[1], [0], [0], [1], [0, 0, 1, 1], [], []>} : vector<32x32xbf16>, vector<32x16xbf16>, vector<32x16xf32> -> vector<32x16xf32>
    %410 = vector.broadcast %408 : vector<32x1xf32> to vector<32x16xf32>
    %411 = arith.addf %409, %410 : vector<32x16xf32>
    %412 = arith.addf %389, %411 : vector<32x16xf32>
    %c0_205 = arith.constant 0 : index
    %c0_206 = arith.constant 0 : index
    %413 = vector.load %arg3[%c0_205, %c0_206] : memref<384x256xbf16, #tpu.memory_space<vmem>>, vector<16x32xbf16>
    %414 = arith.truncf %412 : vector<32x16xf32> to vector<32x16xbf16>
    %cst_207 = arith.constant dense<0.000000e+00> : vector<32x32xf32>
    %415 = tpu.matmul %414, %413, %cst_207 {dimension_numbers = #tpu.dot_dimension_numbers<[1], [0], [0], [1], [0, 0, 1, 1], [], []>} : vector<32x16xbf16>, vector<16x32xbf16>, vector<32x32xf32> -> vector<32x32xf32>
    %416 = arith.truncf %415 : vector<32x32xf32> to vector<32x32xbf16>
    %cst_208 = arith.constant 0.000000e+00 : bf16
    %417 = vector.broadcast %cst_208 : bf16 to vector<32x1xbf16>
    %418 = vector.extract_strided_slice %416 {offsets = [0, 0], sizes = [32, 31], strides = [1, 1]} : vector<32x32xbf16> to vector<32x31xbf16>
    %419 = tpu.concatenate %417, %418 in 1 : vector<32x1xbf16>, vector<32x31xbf16> -> vector<32x32xbf16>
    %420 = vector.extract_strided_slice %416 {offsets = [0, 1], sizes = [32, 31], strides = [1, 1]} : vector<32x32xbf16> to vector<32x31xbf16>
    %421 = tpu.concatenate %420, %417 in 1 : vector<32x31xbf16>, vector<32x1xbf16> -> vector<32x32xbf16>
    %422 = tpu.concatenate %419, %416, %421 in 0 : vector<32x32xbf16>, vector<32x32xbf16>, vector<32x32xbf16> -> vector<96x32xbf16>
    %c224_209 = arith.constant 224 : index
    %c0_210 = arith.constant 0 : index
    %423 = vector.load %arg1[%c224_209, %c0_210] : memref<856x128xbf16, #tpu.memory_space<vmem>>, vector<32x96xbf16>
    %c224_211 = arith.constant 224 : index
    %c0_212 = arith.constant 0 : index
    %424 = vector.load %arg2[%c224_211, %c0_212] : memref<856x1xf32, #tpu.memory_space<vmem>>, vector<32x1xf32>
    %cst_213 = arith.constant dense<0.000000e+00> : vector<32x32xf32>
    %425 = tpu.matmul %423, %422, %cst_213 {dimension_numbers = #tpu.dot_dimension_numbers<[1], [0], [0], [1], [0, 0, 1, 1], [], []>} : vector<32x96xbf16>, vector<96x32xbf16>, vector<32x32xf32> -> vector<32x32xf32>
    %426 = vector.broadcast %424 : vector<32x1xf32> to vector<32x32xf32>
    %427 = arith.addf %425, %426 : vector<32x32xf32>
    %cst_214 = arith.constant 0.000000e+00 : f32
    %428 = vector.broadcast %cst_214 : f32 to vector<32x32xf32>
    %429 = arith.maximumf %427, %428 : vector<32x32xf32>
    %430 = arith.truncf %429 : vector<32x32xf32> to vector<32x32xbf16>
    %cst_215 = arith.constant 0.000000e+00 : bf16
    %431 = vector.broadcast %cst_215 : bf16 to vector<32x3xbf16>
    %432 = vector.extract_strided_slice %430 {offsets = [0, 0], sizes = [32, 29], strides = [1, 1]} : vector<32x32xbf16> to vector<32x29xbf16>
    %433 = tpu.concatenate %431, %432 in 1 : vector<32x3xbf16>, vector<32x29xbf16> -> vector<32x32xbf16>
    %434 = vector.extract_strided_slice %430 {offsets = [0, 3], sizes = [32, 29], strides = [1, 1]} : vector<32x32xbf16> to vector<32x29xbf16>
    %435 = tpu.concatenate %434, %431 in 1 : vector<32x29xbf16>, vector<32x3xbf16> -> vector<32x32xbf16>
    %436 = tpu.concatenate %433, %430, %435 in 0 : vector<32x32xbf16>, vector<32x32xbf16>, vector<32x32xbf16> -> vector<96x32xbf16>
    %c256_216 = arith.constant 256 : index
    %c0_217 = arith.constant 0 : index
    %437 = vector.load %arg1[%c256_216, %c0_217] : memref<856x128xbf16, #tpu.memory_space<vmem>>, vector<32x96xbf16>
    %c256_218 = arith.constant 256 : index
    %c0_219 = arith.constant 0 : index
    %438 = vector.load %arg2[%c256_218, %c0_219] : memref<856x1xf32, #tpu.memory_space<vmem>>, vector<32x1xf32>
    %cst_220 = arith.constant dense<0.000000e+00> : vector<32x32xf32>
    %439 = tpu.matmul %437, %436, %cst_220 {dimension_numbers = #tpu.dot_dimension_numbers<[1], [0], [0], [1], [0, 0, 1, 1], [], []>} : vector<32x96xbf16>, vector<96x32xbf16>, vector<32x32xf32> -> vector<32x32xf32>
    %440 = vector.broadcast %438 : vector<32x1xf32> to vector<32x32xf32>
    %441 = arith.addf %439, %440 : vector<32x32xf32>
    %cst_221 = arith.constant 0.000000e+00 : f32
    %442 = vector.broadcast %cst_221 : f32 to vector<32x32xf32>
    %443 = arith.maximumf %441, %442 : vector<32x32xf32>
    %444 = arith.truncf %443 : vector<32x32xf32> to vector<32x32xbf16>
    %c288_222 = arith.constant 288 : index
    %c0_223 = arith.constant 0 : index
    %445 = vector.load %arg1[%c288_222, %c0_223] : memref<856x128xbf16, #tpu.memory_space<vmem>>, vector<32x32xbf16>
    %c288_224 = arith.constant 288 : index
    %c0_225 = arith.constant 0 : index
    %446 = vector.load %arg2[%c288_224, %c0_225] : memref<856x1xf32, #tpu.memory_space<vmem>>, vector<32x1xf32>
    %cst_226 = arith.constant dense<0.000000e+00> : vector<32x32xf32>
    %447 = tpu.matmul %445, %444, %cst_226 {dimension_numbers = #tpu.dot_dimension_numbers<[1], [0], [0], [1], [0, 0, 1, 1], [], []>} : vector<32x32xbf16>, vector<32x32xbf16>, vector<32x32xf32> -> vector<32x32xf32>
    %448 = vector.broadcast %446 : vector<32x1xf32> to vector<32x32xf32>
    %449 = arith.addf %447, %448 : vector<32x32xf32>
    %450 = arith.addf %427, %449 : vector<32x32xf32>
    %cst_227 = arith.constant 0.000000e+00 : f32
    %451 = vector.broadcast %cst_227 : f32 to vector<32x32xf32>
    %452 = arith.maximumf %450, %451 : vector<32x32xf32>
    %453 = arith.truncf %452 : vector<32x32xf32> to vector<32x32xbf16>
    %cst_228 = arith.constant 0.000000e+00 : bf16
    %454 = vector.broadcast %cst_228 : bf16 to vector<32x1xbf16>
    %455 = vector.extract_strided_slice %453 {offsets = [0, 0], sizes = [32, 31], strides = [1, 1]} : vector<32x32xbf16> to vector<32x31xbf16>
    %456 = tpu.concatenate %454, %455 in 1 : vector<32x1xbf16>, vector<32x31xbf16> -> vector<32x32xbf16>
    %457 = vector.extract_strided_slice %453 {offsets = [0, 1], sizes = [32, 31], strides = [1, 1]} : vector<32x32xbf16> to vector<32x31xbf16>
    %458 = tpu.concatenate %457, %454 in 1 : vector<32x31xbf16>, vector<32x1xbf16> -> vector<32x32xbf16>
    %459 = tpu.concatenate %456, %453, %458 in 0 : vector<32x32xbf16>, vector<32x32xbf16>, vector<32x32xbf16> -> vector<96x32xbf16>
    %c320_229 = arith.constant 320 : index
    %c0_230 = arith.constant 0 : index
    %460 = vector.load %arg1[%c320_229, %c0_230] : memref<856x128xbf16, #tpu.memory_space<vmem>>, vector<32x96xbf16>
    %c320_231 = arith.constant 320 : index
    %c0_232 = arith.constant 0 : index
    %461 = vector.load %arg2[%c320_231, %c0_232] : memref<856x1xf32, #tpu.memory_space<vmem>>, vector<32x1xf32>
    %cst_233 = arith.constant dense<0.000000e+00> : vector<32x32xf32>
    %462 = tpu.matmul %460, %459, %cst_233 {dimension_numbers = #tpu.dot_dimension_numbers<[1], [0], [0], [1], [0, 0, 1, 1], [], []>} : vector<32x96xbf16>, vector<96x32xbf16>, vector<32x32xf32> -> vector<32x32xf32>
    %463 = vector.broadcast %461 : vector<32x1xf32> to vector<32x32xf32>
    %464 = arith.addf %462, %463 : vector<32x32xf32>
    %cst_234 = arith.constant 0.000000e+00 : f32
    %465 = vector.broadcast %cst_234 : f32 to vector<32x32xf32>
    %466 = arith.maximumf %464, %465 : vector<32x32xf32>
    %467 = arith.truncf %466 : vector<32x32xf32> to vector<32x32xbf16>
    %c352_235 = arith.constant 352 : index
    %c0_236 = arith.constant 0 : index
    %468 = vector.load %arg1[%c352_235, %c0_236] : memref<856x128xbf16, #tpu.memory_space<vmem>>, vector<32x32xbf16>
    %c352_237 = arith.constant 352 : index
    %c0_238 = arith.constant 0 : index
    %469 = vector.load %arg2[%c352_237, %c0_238] : memref<856x1xf32, #tpu.memory_space<vmem>>, vector<32x1xf32>
    %cst_239 = arith.constant dense<0.000000e+00> : vector<32x32xf32>
    %470 = tpu.matmul %468, %467, %cst_239 {dimension_numbers = #tpu.dot_dimension_numbers<[1], [0], [0], [1], [0, 0, 1, 1], [], []>} : vector<32x32xbf16>, vector<32x32xbf16>, vector<32x32xf32> -> vector<32x32xf32>
    %471 = vector.broadcast %469 : vector<32x1xf32> to vector<32x32xf32>
    %472 = arith.addf %470, %471 : vector<32x32xf32>
    %473 = arith.addf %450, %472 : vector<32x32xf32>
    %c16_240 = arith.constant 16 : index
    %c0_241 = arith.constant 0 : index
    %474 = vector.load %arg3[%c16_240, %c0_241] : memref<384x256xbf16, #tpu.memory_space<vmem>>, vector<32x64xbf16>
    %475 = arith.truncf %473 : vector<32x32xf32> to vector<32x32xbf16>
    %cst_242 = arith.constant dense<0.000000e+00> : vector<32x64xf32>
    %476 = tpu.matmul %475, %474, %cst_242 {dimension_numbers = #tpu.dot_dimension_numbers<[1], [0], [0], [1], [0, 0, 1, 1], [], []>} : vector<32x32xbf16>, vector<32x64xbf16>, vector<32x64xf32> -> vector<32x64xf32>
    %477 = arith.truncf %476 : vector<32x64xf32> to vector<32x64xbf16>
    %cst_243 = arith.constant 0.000000e+00 : bf16
    %478 = vector.broadcast %cst_243 : bf16 to vector<32x1xbf16>
    %479 = vector.extract_strided_slice %477 {offsets = [0, 0], sizes = [32, 63], strides = [1, 1]} : vector<32x64xbf16> to vector<32x63xbf16>
    %480 = tpu.concatenate %478, %479 in 1 : vector<32x1xbf16>, vector<32x63xbf16> -> vector<32x64xbf16>
    %481 = vector.extract_strided_slice %477 {offsets = [0, 1], sizes = [32, 63], strides = [1, 1]} : vector<32x64xbf16> to vector<32x63xbf16>
    %482 = tpu.concatenate %481, %478 in 1 : vector<32x63xbf16>, vector<32x1xbf16> -> vector<32x64xbf16>
    %483 = tpu.concatenate %480, %477, %482 in 0 : vector<32x64xbf16>, vector<32x64xbf16>, vector<32x64xbf16> -> vector<96x64xbf16>
    %c384_244 = arith.constant 384 : index
    %c0_245 = arith.constant 0 : index
    %484 = vector.load %arg1[%c384_244, %c0_245] : memref<856x128xbf16, #tpu.memory_space<vmem>>, vector<32x96xbf16>
    %c384_246 = arith.constant 384 : index
    %c0_247 = arith.constant 0 : index
    %485 = vector.load %arg2[%c384_246, %c0_247] : memref<856x1xf32, #tpu.memory_space<vmem>>, vector<32x1xf32>
    %cst_248 = arith.constant dense<0.000000e+00> : vector<32x64xf32>
    %486 = tpu.matmul %484, %483, %cst_248 {dimension_numbers = #tpu.dot_dimension_numbers<[1], [0], [0], [1], [0, 0, 1, 1], [], []>} : vector<32x96xbf16>, vector<96x64xbf16>, vector<32x64xf32> -> vector<32x64xf32>
    %487 = vector.broadcast %485 : vector<32x1xf32> to vector<32x64xf32>
    %488 = arith.addf %486, %487 : vector<32x64xf32>
    %489 = arith.truncf %488 : vector<32x64xf32> to vector<32x64xbf16>
    %cst_249 = arith.constant 0.000000e+00 : bf16
    %490 = vector.broadcast %cst_249 : bf16 to vector<32x1xbf16>
    %491 = vector.extract_strided_slice %489 {offsets = [0, 0], sizes = [32, 63], strides = [1, 1]} : vector<32x64xbf16> to vector<32x63xbf16>
    %492 = tpu.concatenate %490, %491 in 1 : vector<32x1xbf16>, vector<32x63xbf16> -> vector<32x64xbf16>
    %493 = vector.extract_strided_slice %489 {offsets = [0, 1], sizes = [32, 63], strides = [1, 1]} : vector<32x64xbf16> to vector<32x63xbf16>
    %494 = tpu.concatenate %493, %490 in 1 : vector<32x63xbf16>, vector<32x1xbf16> -> vector<32x64xbf16>
    %495 = tpu.concatenate %492, %489, %494 in 0 : vector<32x64xbf16>, vector<32x64xbf16>, vector<32x64xbf16> -> vector<96x64xbf16>
    %c416_250 = arith.constant 416 : index
    %c0_251 = arith.constant 0 : index
    %496 = vector.load %arg1[%c416_250, %c0_251] : memref<856x128xbf16, #tpu.memory_space<vmem>>, vector<32x96xbf16>
    %c416_252 = arith.constant 416 : index
    %c0_253 = arith.constant 0 : index
    %497 = vector.load %arg2[%c416_252, %c0_253] : memref<856x1xf32, #tpu.memory_space<vmem>>, vector<32x1xf32>
    %cst_254 = arith.constant dense<0.000000e+00> : vector<32x64xf32>
    %498 = tpu.matmul %496, %495, %cst_254 {dimension_numbers = #tpu.dot_dimension_numbers<[1], [0], [0], [1], [0, 0, 1, 1], [], []>} : vector<32x96xbf16>, vector<96x64xbf16>, vector<32x64xf32> -> vector<32x64xf32>
    %499 = vector.broadcast %497 : vector<32x1xf32> to vector<32x64xf32>
    %500 = arith.addf %498, %499 : vector<32x64xf32>
    %cst_255 = arith.constant 0.000000e+00 : f32
    %501 = vector.broadcast %cst_255 : f32 to vector<32x64xf32>
    %502 = arith.maximumf %500, %501 : vector<32x64xf32>
    %503 = arith.truncf %502 : vector<32x64xf32> to vector<32x64xbf16>
    %cst_256 = arith.constant 0.000000e+00 : bf16
    %504 = vector.broadcast %cst_256 : bf16 to vector<32x1xbf16>
    %505 = vector.extract_strided_slice %503 {offsets = [0, 0], sizes = [32, 63], strides = [1, 1]} : vector<32x64xbf16> to vector<32x63xbf16>
    %506 = tpu.concatenate %504, %505 in 1 : vector<32x1xbf16>, vector<32x63xbf16> -> vector<32x64xbf16>
    %507 = vector.extract_strided_slice %503 {offsets = [0, 1], sizes = [32, 63], strides = [1, 1]} : vector<32x64xbf16> to vector<32x63xbf16>
    %508 = tpu.concatenate %507, %504 in 1 : vector<32x63xbf16>, vector<32x1xbf16> -> vector<32x64xbf16>
    %509 = tpu.concatenate %506, %503, %508 in 0 : vector<32x64xbf16>, vector<32x64xbf16>, vector<32x64xbf16> -> vector<96x64xbf16>
    %c448_257 = arith.constant 448 : index
    %c0_258 = arith.constant 0 : index
    %510 = vector.load %arg1[%c448_257, %c0_258] : memref<856x128xbf16, #tpu.memory_space<vmem>>, vector<4x96xbf16>
    %c448_259 = arith.constant 448 : index
    %c0_260 = arith.constant 0 : index
    %511 = vector.load %arg2[%c448_259, %c0_260] : memref<856x1xf32, #tpu.memory_space<vmem>>, vector<4x1xf32>
    %cst_261 = arith.constant dense<0.000000e+00> : vector<4x64xf32>
    %512 = tpu.matmul %510, %509, %cst_261 {dimension_numbers = #tpu.dot_dimension_numbers<[1], [0], [0], [1], [0, 0, 1, 1], [], []>} : vector<4x96xbf16>, vector<96x64xbf16>, vector<4x64xf32> -> vector<4x64xf32>
    %513 = vector.broadcast %511 : vector<4x1xf32> to vector<4x64xf32>
    %514 = arith.addf %512, %513 : vector<4x64xf32>
    %515 = vector.extract_strided_slice %351 {offsets = [32, 0], sizes = [32, 16], strides = [1, 1]} : vector<64x16xf32> to vector<32x16xf32>
    %516 = arith.truncf %515 : vector<32x16xf32> to vector<32x16xbf16>
    %cst_262 = arith.constant 0.000000e+00 : bf16
    %517 = vector.broadcast %cst_262 : bf16 to vector<32x1xbf16>
    %518 = vector.extract_strided_slice %516 {offsets = [0, 0], sizes = [32, 15], strides = [1, 1]} : vector<32x16xbf16> to vector<32x15xbf16>
    %519 = tpu.concatenate %517, %518 in 1 : vector<32x1xbf16>, vector<32x15xbf16> -> vector<32x16xbf16>
    %520 = vector.extract_strided_slice %516 {offsets = [0, 1], sizes = [32, 15], strides = [1, 1]} : vector<32x16xbf16> to vector<32x15xbf16>
    %521 = tpu.concatenate %520, %517 in 1 : vector<32x15xbf16>, vector<32x1xbf16> -> vector<32x16xbf16>
    %522 = tpu.concatenate %519, %516, %521 in 0 : vector<32x16xbf16>, vector<32x16xbf16>, vector<32x16xbf16> -> vector<96x16xbf16>
    %c456_263 = arith.constant 456 : index
    %c0_264 = arith.constant 0 : index
    %523 = vector.load %arg1[%c456_263, %c0_264] : memref<856x128xbf16, #tpu.memory_space<vmem>>, vector<32x96xbf16>
    %c456_265 = arith.constant 456 : index
    %c0_266 = arith.constant 0 : index
    %524 = vector.load %arg2[%c456_265, %c0_266] : memref<856x1xf32, #tpu.memory_space<vmem>>, vector<32x1xf32>
    %cst_267 = arith.constant dense<0.000000e+00> : vector<32x16xf32>
    %525 = tpu.matmul %523, %522, %cst_267 {dimension_numbers = #tpu.dot_dimension_numbers<[1], [0], [0], [1], [0, 0, 1, 1], [], []>} : vector<32x96xbf16>, vector<96x16xbf16>, vector<32x16xf32> -> vector<32x16xf32>
    %526 = vector.broadcast %524 : vector<32x1xf32> to vector<32x16xf32>
    %527 = arith.addf %525, %526 : vector<32x16xf32>
    %cst_268 = arith.constant 0.000000e+00 : f32
    %528 = vector.broadcast %cst_268 : f32 to vector<32x16xf32>
    %529 = arith.maximumf %527, %528 : vector<32x16xf32>
    %cst_269 = arith.constant 0.000000e+00 : f32
    %530 = vector.broadcast %cst_269 : f32 to vector<32x16xf32>
    %531 = arith.maximumf %529, %530 : vector<32x16xf32>
    %532 = arith.truncf %531 : vector<32x16xf32> to vector<32x16xbf16>
    %cst_270 = arith.constant 0.000000e+00 : bf16
    %533 = vector.broadcast %cst_270 : bf16 to vector<32x3xbf16>
    %534 = vector.extract_strided_slice %532 {offsets = [0, 0], sizes = [32, 13], strides = [1, 1]} : vector<32x16xbf16> to vector<32x13xbf16>
    %535 = tpu.concatenate %533, %534 in 1 : vector<32x3xbf16>, vector<32x13xbf16> -> vector<32x16xbf16>
    %536 = vector.extract_strided_slice %532 {offsets = [0, 3], sizes = [32, 13], strides = [1, 1]} : vector<32x16xbf16> to vector<32x13xbf16>
    %537 = tpu.concatenate %536, %533 in 1 : vector<32x13xbf16>, vector<32x3xbf16> -> vector<32x16xbf16>
    %538 = tpu.concatenate %535, %532, %537 in 0 : vector<32x16xbf16>, vector<32x16xbf16>, vector<32x16xbf16> -> vector<96x16xbf16>
    %c488_271 = arith.constant 488 : index
    %c0_272 = arith.constant 0 : index
    %539 = vector.load %arg1[%c488_271, %c0_272] : memref<856x128xbf16, #tpu.memory_space<vmem>>, vector<32x96xbf16>
    %c488_273 = arith.constant 488 : index
    %c0_274 = arith.constant 0 : index
    %540 = vector.load %arg2[%c488_273, %c0_274] : memref<856x1xf32, #tpu.memory_space<vmem>>, vector<32x1xf32>
    %cst_275 = arith.constant dense<0.000000e+00> : vector<32x16xf32>
    %541 = tpu.matmul %539, %538, %cst_275 {dimension_numbers = #tpu.dot_dimension_numbers<[1], [0], [0], [1], [0, 0, 1, 1], [], []>} : vector<32x96xbf16>, vector<96x16xbf16>, vector<32x16xf32> -> vector<32x16xf32>
    %542 = vector.broadcast %540 : vector<32x1xf32> to vector<32x16xf32>
    %543 = arith.addf %541, %542 : vector<32x16xf32>
    %cst_276 = arith.constant 0.000000e+00 : f32
    %544 = vector.broadcast %cst_276 : f32 to vector<32x16xf32>
    %545 = arith.maximumf %543, %544 : vector<32x16xf32>
    %546 = arith.truncf %545 : vector<32x16xf32> to vector<32x16xbf16>
    %c520_277 = arith.constant 520 : index
    %c0_278 = arith.constant 0 : index
    %547 = vector.load %arg1[%c520_277, %c0_278] : memref<856x128xbf16, #tpu.memory_space<vmem>>, vector<32x32xbf16>
    %c520_279 = arith.constant 520 : index
    %c0_280 = arith.constant 0 : index
    %548 = vector.load %arg2[%c520_279, %c0_280] : memref<856x1xf32, #tpu.memory_space<vmem>>, vector<32x1xf32>
    %cst_281 = arith.constant dense<0.000000e+00> : vector<32x16xf32>
    %549 = tpu.matmul %547, %546, %cst_281 {dimension_numbers = #tpu.dot_dimension_numbers<[1], [0], [0], [1], [0, 0, 1, 1], [], []>} : vector<32x32xbf16>, vector<32x16xbf16>, vector<32x16xf32> -> vector<32x16xf32>
    %550 = vector.broadcast %548 : vector<32x1xf32> to vector<32x16xf32>
    %551 = arith.addf %549, %550 : vector<32x16xf32>
    %552 = arith.addf %529, %551 : vector<32x16xf32>
    %cst_282 = arith.constant 0.000000e+00 : f32
    %553 = vector.broadcast %cst_282 : f32 to vector<32x16xf32>
    %554 = arith.maximumf %552, %553 : vector<32x16xf32>
    %555 = arith.truncf %554 : vector<32x16xf32> to vector<32x16xbf16>
    %cst_283 = arith.constant 0.000000e+00 : bf16
    %556 = vector.broadcast %cst_283 : bf16 to vector<32x1xbf16>
    %557 = vector.extract_strided_slice %555 {offsets = [0, 0], sizes = [32, 15], strides = [1, 1]} : vector<32x16xbf16> to vector<32x15xbf16>
    %558 = tpu.concatenate %556, %557 in 1 : vector<32x1xbf16>, vector<32x15xbf16> -> vector<32x16xbf16>
    %559 = vector.extract_strided_slice %555 {offsets = [0, 1], sizes = [32, 15], strides = [1, 1]} : vector<32x16xbf16> to vector<32x15xbf16>
    %560 = tpu.concatenate %559, %556 in 1 : vector<32x15xbf16>, vector<32x1xbf16> -> vector<32x16xbf16>
    %561 = tpu.concatenate %558, %555, %560 in 0 : vector<32x16xbf16>, vector<32x16xbf16>, vector<32x16xbf16> -> vector<96x16xbf16>
    %c552_284 = arith.constant 552 : index
    %c0_285 = arith.constant 0 : index
    %562 = vector.load %arg1[%c552_284, %c0_285] : memref<856x128xbf16, #tpu.memory_space<vmem>>, vector<32x96xbf16>
    %c552_286 = arith.constant 552 : index
    %c0_287 = arith.constant 0 : index
    %563 = vector.load %arg2[%c552_286, %c0_287] : memref<856x1xf32, #tpu.memory_space<vmem>>, vector<32x1xf32>
    %cst_288 = arith.constant dense<0.000000e+00> : vector<32x16xf32>
    %564 = tpu.matmul %562, %561, %cst_288 {dimension_numbers = #tpu.dot_dimension_numbers<[1], [0], [0], [1], [0, 0, 1, 1], [], []>} : vector<32x96xbf16>, vector<96x16xbf16>, vector<32x16xf32> -> vector<32x16xf32>
    %565 = vector.broadcast %563 : vector<32x1xf32> to vector<32x16xf32>
    %566 = arith.addf %564, %565 : vector<32x16xf32>
    %cst_289 = arith.constant 0.000000e+00 : f32
    %567 = vector.broadcast %cst_289 : f32 to vector<32x16xf32>
    %568 = arith.maximumf %566, %567 : vector<32x16xf32>
    %569 = arith.truncf %568 : vector<32x16xf32> to vector<32x16xbf16>
    %c584_290 = arith.constant 584 : index
    %c0_291 = arith.constant 0 : index
    %570 = vector.load %arg1[%c584_290, %c0_291] : memref<856x128xbf16, #tpu.memory_space<vmem>>, vector<32x32xbf16>
    %c584_292 = arith.constant 584 : index
    %c0_293 = arith.constant 0 : index
    %571 = vector.load %arg2[%c584_292, %c0_293] : memref<856x1xf32, #tpu.memory_space<vmem>>, vector<32x1xf32>
    %cst_294 = arith.constant dense<0.000000e+00> : vector<32x16xf32>
    %572 = tpu.matmul %570, %569, %cst_294 {dimension_numbers = #tpu.dot_dimension_numbers<[1], [0], [0], [1], [0, 0, 1, 1], [], []>} : vector<32x32xbf16>, vector<32x16xbf16>, vector<32x16xf32> -> vector<32x16xf32>
    %573 = vector.broadcast %571 : vector<32x1xf32> to vector<32x16xf32>
    %574 = arith.addf %572, %573 : vector<32x16xf32>
    %575 = arith.addf %552, %574 : vector<32x16xf32>
    %c48_295 = arith.constant 48 : index
    %c0_296 = arith.constant 0 : index
    %576 = vector.load %arg3[%c48_295, %c0_296] : memref<384x256xbf16, #tpu.memory_space<vmem>>, vector<16x64xbf16>
    %577 = arith.truncf %575 : vector<32x16xf32> to vector<32x16xbf16>
    %cst_297 = arith.constant dense<0.000000e+00> : vector<32x64xf32>
    %578 = tpu.matmul %577, %576, %cst_297 {dimension_numbers = #tpu.dot_dimension_numbers<[1], [0], [0], [1], [0, 0, 1, 1], [], []>} : vector<32x16xbf16>, vector<16x64xbf16>, vector<32x64xf32> -> vector<32x64xf32>
    %579 = arith.truncf %578 : vector<32x64xf32> to vector<32x64xbf16>
    %cst_298 = arith.constant 0.000000e+00 : bf16
    %580 = vector.broadcast %cst_298 : bf16 to vector<32x1xbf16>
    %581 = vector.extract_strided_slice %579 {offsets = [0, 0], sizes = [32, 63], strides = [1, 1]} : vector<32x64xbf16> to vector<32x63xbf16>
    %582 = tpu.concatenate %580, %581 in 1 : vector<32x1xbf16>, vector<32x63xbf16> -> vector<32x64xbf16>
    %583 = vector.extract_strided_slice %579 {offsets = [0, 1], sizes = [32, 63], strides = [1, 1]} : vector<32x64xbf16> to vector<32x63xbf16>
    %584 = tpu.concatenate %583, %580 in 1 : vector<32x63xbf16>, vector<32x1xbf16> -> vector<32x64xbf16>
    %585 = tpu.concatenate %582, %579, %584 in 0 : vector<32x64xbf16>, vector<32x64xbf16>, vector<32x64xbf16> -> vector<96x64xbf16>
    %c616_299 = arith.constant 616 : index
    %c0_300 = arith.constant 0 : index
    %586 = vector.load %arg1[%c616_299, %c0_300] : memref<856x128xbf16, #tpu.memory_space<vmem>>, vector<32x96xbf16>
    %c616_301 = arith.constant 616 : index
    %c0_302 = arith.constant 0 : index
    %587 = vector.load %arg2[%c616_301, %c0_302] : memref<856x1xf32, #tpu.memory_space<vmem>>, vector<32x1xf32>
    %cst_303 = arith.constant dense<0.000000e+00> : vector<32x64xf32>
    %588 = tpu.matmul %586, %585, %cst_303 {dimension_numbers = #tpu.dot_dimension_numbers<[1], [0], [0], [1], [0, 0, 1, 1], [], []>} : vector<32x96xbf16>, vector<96x64xbf16>, vector<32x64xf32> -> vector<32x64xf32>
    %589 = vector.broadcast %587 : vector<32x1xf32> to vector<32x64xf32>
    %590 = arith.addf %588, %589 : vector<32x64xf32>
    %cst_304 = arith.constant 0.000000e+00 : f32
    %591 = vector.broadcast %cst_304 : f32 to vector<32x64xf32>
    %592 = arith.maximumf %590, %591 : vector<32x64xf32>
    %593 = arith.truncf %592 : vector<32x64xf32> to vector<32x64xbf16>
    %cst_305 = arith.constant 0.000000e+00 : bf16
    %594 = vector.broadcast %cst_305 : bf16 to vector<32x3xbf16>
    %595 = vector.extract_strided_slice %593 {offsets = [0, 0], sizes = [32, 61], strides = [1, 1]} : vector<32x64xbf16> to vector<32x61xbf16>
    %596 = tpu.concatenate %594, %595 in 1 : vector<32x3xbf16>, vector<32x61xbf16> -> vector<32x64xbf16>
    %597 = vector.extract_strided_slice %593 {offsets = [0, 3], sizes = [32, 61], strides = [1, 1]} : vector<32x64xbf16> to vector<32x61xbf16>
    %598 = tpu.concatenate %597, %594 in 1 : vector<32x61xbf16>, vector<32x3xbf16> -> vector<32x64xbf16>
    %599 = tpu.concatenate %596, %593, %598 in 0 : vector<32x64xbf16>, vector<32x64xbf16>, vector<32x64xbf16> -> vector<96x64xbf16>
    %c648_306 = arith.constant 648 : index
    %c0_307 = arith.constant 0 : index
    %600 = vector.load %arg1[%c648_306, %c0_307] : memref<856x128xbf16, #tpu.memory_space<vmem>>, vector<32x96xbf16>
    %c648_308 = arith.constant 648 : index
    %c0_309 = arith.constant 0 : index
    %601 = vector.load %arg2[%c648_308, %c0_309] : memref<856x1xf32, #tpu.memory_space<vmem>>, vector<32x1xf32>
    %cst_310 = arith.constant dense<0.000000e+00> : vector<32x64xf32>
    %602 = tpu.matmul %600, %599, %cst_310 {dimension_numbers = #tpu.dot_dimension_numbers<[1], [0], [0], [1], [0, 0, 1, 1], [], []>} : vector<32x96xbf16>, vector<96x64xbf16>, vector<32x64xf32> -> vector<32x64xf32>
    %603 = vector.broadcast %601 : vector<32x1xf32> to vector<32x64xf32>
    %604 = arith.addf %602, %603 : vector<32x64xf32>
    %cst_311 = arith.constant 0.000000e+00 : f32
    %605 = vector.broadcast %cst_311 : f32 to vector<32x64xf32>
    %606 = arith.maximumf %604, %605 : vector<32x64xf32>
    %607 = arith.truncf %606 : vector<32x64xf32> to vector<32x64xbf16>
    %c680_312 = arith.constant 680 : index
    %c0_313 = arith.constant 0 : index
    %608 = vector.load %arg1[%c680_312, %c0_313] : memref<856x128xbf16, #tpu.memory_space<vmem>>, vector<32x32xbf16>
    %c680_314 = arith.constant 680 : index
    %c0_315 = arith.constant 0 : index
    %609 = vector.load %arg2[%c680_314, %c0_315] : memref<856x1xf32, #tpu.memory_space<vmem>>, vector<32x1xf32>
    %cst_316 = arith.constant dense<0.000000e+00> : vector<32x64xf32>
    %610 = tpu.matmul %608, %607, %cst_316 {dimension_numbers = #tpu.dot_dimension_numbers<[1], [0], [0], [1], [0, 0, 1, 1], [], []>} : vector<32x32xbf16>, vector<32x64xbf16>, vector<32x64xf32> -> vector<32x64xf32>
    %611 = vector.broadcast %609 : vector<32x1xf32> to vector<32x64xf32>
    %612 = arith.addf %610, %611 : vector<32x64xf32>
    %613 = arith.addf %590, %612 : vector<32x64xf32>
    %cst_317 = arith.constant 0.000000e+00 : f32
    %614 = vector.broadcast %cst_317 : f32 to vector<32x64xf32>
    %615 = arith.maximumf %613, %614 : vector<32x64xf32>
    %616 = arith.truncf %615 : vector<32x64xf32> to vector<32x64xbf16>
    %cst_318 = arith.constant 0.000000e+00 : bf16
    %617 = vector.broadcast %cst_318 : bf16 to vector<32x1xbf16>
    %618 = vector.extract_strided_slice %616 {offsets = [0, 0], sizes = [32, 63], strides = [1, 1]} : vector<32x64xbf16> to vector<32x63xbf16>
    %619 = tpu.concatenate %617, %618 in 1 : vector<32x1xbf16>, vector<32x63xbf16> -> vector<32x64xbf16>
    %620 = vector.extract_strided_slice %616 {offsets = [0, 1], sizes = [32, 63], strides = [1, 1]} : vector<32x64xbf16> to vector<32x63xbf16>
    %621 = tpu.concatenate %620, %617 in 1 : vector<32x63xbf16>, vector<32x1xbf16> -> vector<32x64xbf16>
    %622 = tpu.concatenate %619, %616, %621 in 0 : vector<32x64xbf16>, vector<32x64xbf16>, vector<32x64xbf16> -> vector<96x64xbf16>
    %c712_319 = arith.constant 712 : index
    %c0_320 = arith.constant 0 : index
    %623 = vector.load %arg1[%c712_319, %c0_320] : memref<856x128xbf16, #tpu.memory_space<vmem>>, vector<32x96xbf16>
    %c712_321 = arith.constant 712 : index
    %c0_322 = arith.constant 0 : index
    %624 = vector.load %arg2[%c712_321, %c0_322] : memref<856x1xf32, #tpu.memory_space<vmem>>, vector<32x1xf32>
    %cst_323 = arith.constant dense<0.000000e+00> : vector<32x64xf32>
    %625 = tpu.matmul %623, %622, %cst_323 {dimension_numbers = #tpu.dot_dimension_numbers<[1], [0], [0], [1], [0, 0, 1, 1], [], []>} : vector<32x96xbf16>, vector<96x64xbf16>, vector<32x64xf32> -> vector<32x64xf32>
    %626 = vector.broadcast %624 : vector<32x1xf32> to vector<32x64xf32>
    %627 = arith.addf %625, %626 : vector<32x64xf32>
    %cst_324 = arith.constant 0.000000e+00 : f32
    %628 = vector.broadcast %cst_324 : f32 to vector<32x64xf32>
    %629 = arith.maximumf %627, %628 : vector<32x64xf32>
    %630 = arith.truncf %629 : vector<32x64xf32> to vector<32x64xbf16>
    %c744_325 = arith.constant 744 : index
    %c0_326 = arith.constant 0 : index
    %631 = vector.load %arg1[%c744_325, %c0_326] : memref<856x128xbf16, #tpu.memory_space<vmem>>, vector<32x32xbf16>
    %c744_327 = arith.constant 744 : index
    %c0_328 = arith.constant 0 : index
    %632 = vector.load %arg2[%c744_327, %c0_328] : memref<856x1xf32, #tpu.memory_space<vmem>>, vector<32x1xf32>
    %cst_329 = arith.constant dense<0.000000e+00> : vector<32x64xf32>
    %633 = tpu.matmul %631, %630, %cst_329 {dimension_numbers = #tpu.dot_dimension_numbers<[1], [0], [0], [1], [0, 0, 1, 1], [], []>} : vector<32x32xbf16>, vector<32x64xbf16>, vector<32x64xf32> -> vector<32x64xf32>
    %634 = vector.broadcast %632 : vector<32x1xf32> to vector<32x64xf32>
    %635 = arith.addf %633, %634 : vector<32x64xf32>
    %636 = arith.addf %613, %635 : vector<32x64xf32>
    %c64_330 = arith.constant 64 : index
    %c0_331 = arith.constant 0 : index
    %637 = vector.load %arg3[%c64_330, %c0_331] : memref<384x256xbf16, #tpu.memory_space<vmem>>, vector<64x256xbf16>
    %638 = arith.truncf %636 : vector<32x64xf32> to vector<32x64xbf16>
    %cst_332 = arith.constant dense<0.000000e+00> : vector<32x256xf32>
    %639 = tpu.matmul %638, %637, %cst_332 {dimension_numbers = #tpu.dot_dimension_numbers<[1], [0], [0], [1], [0, 0, 1, 1], [], []>} : vector<32x64xbf16>, vector<64x256xbf16>, vector<32x256xf32> -> vector<32x256xf32>
    %640 = arith.truncf %639 : vector<32x256xf32> to vector<32x256xbf16>
    %cst_333 = arith.constant 0.000000e+00 : bf16
    %641 = vector.broadcast %cst_333 : bf16 to vector<32x1xbf16>
    %642 = vector.extract_strided_slice %640 {offsets = [0, 0], sizes = [32, 255], strides = [1, 1]} : vector<32x256xbf16> to vector<32x255xbf16>
    %643 = tpu.concatenate %641, %642 in 1 : vector<32x1xbf16>, vector<32x255xbf16> -> vector<32x256xbf16>
    %644 = vector.extract_strided_slice %640 {offsets = [0, 1], sizes = [32, 255], strides = [1, 1]} : vector<32x256xbf16> to vector<32x255xbf16>
    %645 = tpu.concatenate %644, %641 in 1 : vector<32x255xbf16>, vector<32x1xbf16> -> vector<32x256xbf16>
    %646 = tpu.concatenate %643, %640, %645 in 0 : vector<32x256xbf16>, vector<32x256xbf16>, vector<32x256xbf16> -> vector<96x256xbf16>
    %c776_334 = arith.constant 776 : index
    %c0_335 = arith.constant 0 : index
    %647 = vector.load %arg1[%c776_334, %c0_335] : memref<856x128xbf16, #tpu.memory_space<vmem>>, vector<32x96xbf16>
    %c776_336 = arith.constant 776 : index
    %c0_337 = arith.constant 0 : index
    %648 = vector.load %arg2[%c776_336, %c0_337] : memref<856x1xf32, #tpu.memory_space<vmem>>, vector<32x1xf32>
    %cst_338 = arith.constant dense<0.000000e+00> : vector<32x256xf32>
    %649 = tpu.matmul %647, %646, %cst_338 {dimension_numbers = #tpu.dot_dimension_numbers<[1], [0], [0], [1], [0, 0, 1, 1], [], []>} : vector<32x96xbf16>, vector<96x256xbf16>, vector<32x256xf32> -> vector<32x256xf32>
    %650 = vector.broadcast %648 : vector<32x1xf32> to vector<32x256xf32>
    %651 = arith.addf %649, %650 : vector<32x256xf32>
    %652 = arith.truncf %651 : vector<32x256xf32> to vector<32x256xbf16>
    %cst_339 = arith.constant 0.000000e+00 : bf16
    %653 = vector.broadcast %cst_339 : bf16 to vector<32x1xbf16>
    %654 = vector.extract_strided_slice %652 {offsets = [0, 0], sizes = [32, 255], strides = [1, 1]} : vector<32x256xbf16> to vector<32x255xbf16>
    %655 = tpu.concatenate %653, %654 in 1 : vector<32x1xbf16>, vector<32x255xbf16> -> vector<32x256xbf16>
    %656 = vector.extract_strided_slice %652 {offsets = [0, 1], sizes = [32, 255], strides = [1, 1]} : vector<32x256xbf16> to vector<32x255xbf16>
    %657 = tpu.concatenate %656, %653 in 1 : vector<32x255xbf16>, vector<32x1xbf16> -> vector<32x256xbf16>
    %658 = tpu.concatenate %655, %652, %657 in 0 : vector<32x256xbf16>, vector<32x256xbf16>, vector<32x256xbf16> -> vector<96x256xbf16>
    %c808_340 = arith.constant 808 : index
    %c0_341 = arith.constant 0 : index
    %659 = vector.load %arg1[%c808_340, %c0_341] : memref<856x128xbf16, #tpu.memory_space<vmem>>, vector<32x96xbf16>
    %c808_342 = arith.constant 808 : index
    %c0_343 = arith.constant 0 : index
    %660 = vector.load %arg2[%c808_342, %c0_343] : memref<856x1xf32, #tpu.memory_space<vmem>>, vector<32x1xf32>
    %cst_344 = arith.constant dense<0.000000e+00> : vector<32x256xf32>
    %661 = tpu.matmul %659, %658, %cst_344 {dimension_numbers = #tpu.dot_dimension_numbers<[1], [0], [0], [1], [0, 0, 1, 1], [], []>} : vector<32x96xbf16>, vector<96x256xbf16>, vector<32x256xf32> -> vector<32x256xf32>
    %662 = vector.broadcast %660 : vector<32x1xf32> to vector<32x256xf32>
    %663 = arith.addf %661, %662 : vector<32x256xf32>
    %cst_345 = arith.constant 0.000000e+00 : f32
    %664 = vector.broadcast %cst_345 : f32 to vector<32x256xf32>
    %665 = arith.maximumf %663, %664 : vector<32x256xf32>
    %666 = arith.truncf %665 : vector<32x256xf32> to vector<32x256xbf16>
    %cst_346 = arith.constant 0.000000e+00 : bf16
    %667 = vector.broadcast %cst_346 : bf16 to vector<32x1xbf16>
    %668 = vector.extract_strided_slice %666 {offsets = [0, 0], sizes = [32, 255], strides = [1, 1]} : vector<32x256xbf16> to vector<32x255xbf16>
    %669 = tpu.concatenate %667, %668 in 1 : vector<32x1xbf16>, vector<32x255xbf16> -> vector<32x256xbf16>
    %670 = vector.extract_strided_slice %666 {offsets = [0, 1], sizes = [32, 255], strides = [1, 1]} : vector<32x256xbf16> to vector<32x255xbf16>
    %671 = tpu.concatenate %670, %667 in 1 : vector<32x255xbf16>, vector<32x1xbf16> -> vector<32x256xbf16>
    %672 = tpu.concatenate %669, %666, %671 in 0 : vector<32x256xbf16>, vector<32x256xbf16>, vector<32x256xbf16> -> vector<96x256xbf16>
    %c840_347 = arith.constant 840 : index
    %c0_348 = arith.constant 0 : index
    %673 = vector.load %arg1[%c840_347, %c0_348] : memref<856x128xbf16, #tpu.memory_space<vmem>>, vector<4x96xbf16>
    %c840_349 = arith.constant 840 : index
    %c0_350 = arith.constant 0 : index
    %674 = vector.load %arg2[%c840_349, %c0_350] : memref<856x1xf32, #tpu.memory_space<vmem>>, vector<4x1xf32>
    %cst_351 = arith.constant dense<0.000000e+00> : vector<4x256xf32>
    %675 = tpu.matmul %673, %672, %cst_351 {dimension_numbers = #tpu.dot_dimension_numbers<[1], [0], [0], [1], [0, 0, 1, 1], [], []>} : vector<4x96xbf16>, vector<96x256xbf16>, vector<4x256xf32> -> vector<4x256xf32>
    %676 = vector.broadcast %674 : vector<4x1xf32> to vector<4x256xf32>
    %677 = arith.addf %675, %676 : vector<4x256xf32>
    %c128_352 = arith.constant 128 : index
    %c0_353 = arith.constant 0 : index
    %678 = vector.load %arg3[%c128_352, %c0_353] : memref<384x256xbf16, #tpu.memory_space<vmem>>, vector<256x64xbf16>
    %679 = arith.truncf %677 : vector<4x256xf32> to vector<4x256xbf16>
    %cst_354 = arith.constant dense<0.000000e+00> : vector<4x64xf32>
    %680 = tpu.matmul %679, %678, %cst_354 {dimension_numbers = #tpu.dot_dimension_numbers<[1], [0], [0], [1], [0, 0, 1, 1], [], []>} : vector<4x256xbf16>, vector<256x64xbf16>, vector<4x64xf32> -> vector<4x64xf32>
    %681 = tpu.concatenate %514, %680 in 0 : vector<4x64xf32>, vector<4x64xf32> -> vector<8x64xf32>
    %682 = arith.truncf %681 : vector<8x64xf32> to vector<8x64xbf16>
    %c848_355 = arith.constant 848 : index
    %c0_356 = arith.constant 0 : index
    %683 = vector.load %arg1[%c848_355, %c0_356] : memref<856x128xbf16, #tpu.memory_space<vmem>>, vector<4x8xbf16>
    %c848_357 = arith.constant 848 : index
    %c0_358 = arith.constant 0 : index
    %684 = vector.load %arg2[%c848_357, %c0_358] : memref<856x1xf32, #tpu.memory_space<vmem>>, vector<4x1xf32>
    %cst_359 = arith.constant dense<0.000000e+00> : vector<4x64xf32>
    %685 = tpu.matmul %683, %682, %cst_359 {dimension_numbers = #tpu.dot_dimension_numbers<[1], [0], [0], [1], [0, 0, 1, 1], [], []>} : vector<4x8xbf16>, vector<8x64xbf16>, vector<4x64xf32> -> vector<4x64xf32>
    %686 = vector.broadcast %684 : vector<4x1xf32> to vector<4x64xf32>
    %687 = arith.addf %685, %686 : vector<4x64xf32>
    %688 = tpu.concatenate %343, %687 in 1 : vector<4x64xf32>, vector<4x64xf32> -> vector<4x128xf32>
    %c0_360 = arith.constant 0 : index
    %c0_361 = arith.constant 0 : index
    %689 = vector.load %arg4[%c0_360, %c0_361] : memref<4x128xf32, #tpu.memory_space<vmem>>, vector<4x128xf32>
    tpu.vector_store %arg4[%c0_360, %c0_361], %688 {strides = array<i32>} : memref<4x128xf32, #tpu.memory_space<vmem>>, vector<4x128xf32>,
    return
  }
}

</mosaic_0001>

<bundles_post_ra>
// kernel: decoder_forward.1
= control target key start
LH: loop header
LB: loop body
LE: loop exit
PB: predicated region body
PF: predicated region fallthrough
CT: control target
= control target key end

     0   :  { %v10075_v3 = vmov 0   ;;  %vm100_vm0 = vcmask 261120   ;;  %s7659_s9 = smov 127   ;;  %s7660_s10 = smov 1   ;;  %vm243_vm1 = vcmask 785408   ;;  %vm198_vm2 = vcmask 121856   ;;  %s10070_s0 = inlined_call_operand.vmem [shape: f32[2,32,16], index: 0, kind: input, shape index: {}]   ;;  %s10071_s1 = inlined_call_operand.vmem [shape: bf16[856,128], index: 1, kind: input, shape index: {}]   ;;  %s10072_s2 = inlined_call_operand.vmem [shape: f32[856,1], index: 2, kind: input, shape index: {}]   ;;  %s10073_s3 = inlined_call_operand.vmem [shape: bf16[384,256], index: 3, kind: input, shape index: {}]   ;;  %s10074_s4 = inlined_call_operand.vmem [shape: f32[4,128], index: 4, kind: output, shape index: {}]  }
   0x1   :  { %v20_v0 = vld [vmem:[%s10070_s0 + $0x10] sm:$0xff]  ;;  %v21_v1 = vld [vmem:[%s10070_s0 + $0x18] sm:$0xff]  ;;  %v18_v2 = vld [vmem:[%s10070_s0] sm:$0xff]  ;;  %7489 = vset.pattern.permute.xlu0 %v10075_v3  ;;  %7490 = vset.pattern.permute.xlu1 %v10075_v3  ;;  %vm10154_vm3 = vcmask 7168   ;;  %s7661_s27 = smov 125   ;;  %s7662_s28 = smov 3  }
   0x2   :  { %v23_v4 = vpack.c.bf16 %v21_v1, %v20_v0  ;;  %v19_v5 = vld [vmem:[%s10070_s0 + $0x8] sm:$0xff]  ;;  %v7491_v7 = vld [vmem:[%s10071_s1] sm:$0xff]   ;;  %v34_v8 = vld [vmem:[%s10072_s2 + $0x10] sm:$0xff]  ;;  %vm326_vm5 = vcmask 105472   ;;  %vm315_vm6 = vcmask 23552   ;;  %vm763_vm8 = vcmask 130048  }
   0x3   :  { %v22_v6 = vpack.c.bf16 %v19_v5, %v18_v2  ;;  %6745 = vmatprep.mubr.msk.bf16.mxu0 %vm100_vm0, %v7491_v7  ;;  %v35_v9 = vld [vmem:[%s10072_s2 + $0x18] sm:$0xff]  ;;  %v32_v10 = vld [vmem:[%s10072_s2] sm:$0xff]  ;;  %v7492_v11 = vld [vmem:[%s10071_s1 + $0x8] sm:$0xff]   ;;  %52 = vperm.xlu0 %7489, %v34_v8   ;;  %vm837_vm9 = vcmask 252928   ;;  %vm959_vm10 = vcmask 236544   ;;  %vm1477_vm11 = vcmask 515072  }
   0x4   :  { %6741 = vmatprep.subr.bf16.mxu0 %v23_v4  ;;  %v33_v12 = vld [vmem:[%s10072_s2 + $0x8] sm:$0xff]  ;;  %42 = vperm.xlu1 %7490, %v32_v10   ;;  %v211_v27 = vld [vmem:[%s10072_s2 + $0x50] sm:$0xff]  ;;  %v212_v28 = vld [vmem:[%s10072_s2 + $0x58] sm:$0xff]  ;;  %vm7664_vm12 = vmmov 0   ;;  %vm2545_vm13 = vcmask 498688   ;;  %vm3022_vm14 = vcmask 523264  }
   0x5   :  { %6742 = vmatpush3.bf16.msra.mxu0 %v23_v4  ;;  %v7493_v29 = vld [vmem:[%s10071_s1 + $0x20] sm:$0xff]   ;;  %v210_v31 = vld [vmem:[%s10072_s2 + $0x48] sm:$0xff]  ;;  %vm7762_vm4 = vmneg %vm10154_vm3  ;;  %vm3117_vm15 = vcmask 1039360   ;;  %s7665_s6 = smov 64  }
   0x6   :  { %6743 = vmatprep.subr.bf16.mxu0 %v22_v6  ;;  %v209_v30 = vld [vmem:[%s10072_s2 + $0x40] sm:$0xff]  ;;  %6765 = vmatprep.mubr.msk.bf16.mxu1 %vm243_vm1, %v7493_v29  ;;  %v7494_v39 = vld [vmem:[%s10071_s1 + $0x28] sm:$0xff]   ;;  %v7495_v52 = vld [vmem:[%s10071_s1 + $0x10] sm:$0xff]  }
   0x7   :  { %57 = vperm.xlu0 %7489, %v35_v9   ;;  %v7496_v56 = vld [vmem:[%s10071_s1 + $0x18] sm:$0xff]   ;;  %v339_v0 = vld [vmem:[%s10072_s2 + $0x70] sm:$0xff]  ;;  %v337_v4 = vld [vmem:[%s10072_s2 + $0x60] sm:$0xff] }
   0x8   :  { %47 = vperm.xlu1 %7490, %v33_v12   ;;  %v340_v1 = vld [vmem:[%s10072_s2 + $0x78] sm:$0xff]  ;;  %v7497_v2 = vld [vmem:[%s10071_s1 + $0x30] sm:$0xff]   ;;  %v338_v5 = vld [vmem:[%s10072_s2 + $0x68] sm:$0xff] }
   0x9   :  { %6744 = vmatpush3.bf16.msra.mxu0 %v22_v6  ;;  %v438_v6 = vld [vmem:[%s10072_s2 + $0x90] sm:$0xff]  ;;  %v439_v7 = vld [vmem:[%s10072_s2 + $0x98] sm:$0xff]  ;;  %v436_v8 = vld [vmem:[%s10072_s2 + $0x80] sm:$0xff] }
   0xa   :  { %v437_v9 = vld [vmem:[%s10072_s2 + $0x88] sm:$0xff]  ;;  %vm7854_vm7 = vmneg %vm315_vm6  ;;  %vm3643_vm6 = vcmask 1043456  }
   0xc   :  { %6746 = vmatmul.mubr.msk.bf16.vlgmr.msra.gmra.mxu0 %vm100_vm0, %v7492_v11 }
   0xd   :  { %6749 = vmatprep.mubr.msk.bf16.mxu0 %vm100_vm0, %v7495_v52 }
  0x14   :  { %6750 = vmatmul.mubr.msk.bf16.gmra.mxu0 %vm100_vm0, %v7496_v56 }
  0x15   :  { %6781 = vmatprep.mubr.msk.bf16.mxu0 %vm243_vm1, %v7497_v2 }
  0x7e   :  { %v7725_v13 = vpop.permute.xlu0 %52 }
  0x7f   :  { %v7727_v14 = vpop.permute.xlu1 %42 }
  0x82   :  { %v7729_v17 = vpop.permute.xlu0 %57 }
  0x83   :  { %v7733_v21 = vpop.permute.xlu1 %47 }
  0xcc   :  { %v6747_v15 = vpop.f32.mrf.mxu0 }
  0xcd   :  { %v156_v19 = vadd.f32 %v6747_v15, %v7725_v13 }
  0xce   :  { %v147_v16 = vpop.f32.mrf.mxu0 }
  0xcf   :  { %v148_v23 = vadd.f32 %v147_v16, %v7727_v14 }
  0xd0   :  { %v6748_v18 = vpop.f32.mrf.mxu0 }
  0xd1   :  { %v159_v20 = vadd.f32 %v6748_v18, %v7729_v17 }
  0xd2   :  { %v150_v22 = vpop.f32.mrf.mxu0 }
  0xd3   :  { %v179_v24 = vpack.c.bf16 %v159_v20, %v156_v19  ;;  %v151_v25 = vadd.f32 %v150_v22, %v7733_v21  ;;  %v7498_v20 = vld [vmem:[%s10071_s1 + $0x38] sm:$0xff]   ;;  %v7499_v22 = vld [vmem:[%s10071_s1 + $0x40] sm:$0xff]  }
  0xd5   :  { %v178_v26 = vpack.c.bf16 %v151_v25, %v148_v23  ;;  %196 = vrot.lane.b32.xlu0 %v179_v24, %s7659_s9  ;;  %v7874_v23 = vpop.f32.mrf.mxu0 }
  0xd7   :  { %194 = vrot.lane.b32.xlu1 %v178_v26, %s7659_s9 }
  0xd9   :  { %184 = vrot.lane.b32.xlu0 %v179_v24, %s7660_s10 }
  0xdb   :  { %182 = vrot.lane.b32.xlu1 %v178_v26, %s7660_s10 }
  0xdd   :  { %225 = vperm.xlu0 %7489, %v211_v27  }
  0xdf   :  { %230 = vperm.xlu1 %7490, %v212_v28  }
  0xe1   :  { %215 = vperm.xlu0 %7489, %v209_v30  }
  0xe3   :  { %220 = vperm.xlu1 %7490, %v210_v31  }
 0x147   :  { %v197_v32 = vpop.permute.xlu0 %196 }
 0x148   :  { %7425 = vmatprep.subr.msk.bf16.mxu1 %vm198_vm2, %v197_v32  ;;  %v203_v33 = vsel %vm198_vm2, %v197_v32, 0 }
 0x149   :  { %6754 = vmatpush3.bf16.msra.mxu1 %v203_v33  ;;  %v195_v34 = vpop.permute.xlu1 %194 }
 0x14a   :  { %7426 = vmatprep.subr.msk.bf16.mxu1 %vm198_vm2, %v195_v34  ;;  %v200_v35 = vsel %vm198_vm2, %v195_v34, 0 }
 0x14b   :  { %v185_v37 = vpop.permute.xlu0 %184 }
 0x14d   :  { %6756 = vmatpush3.bf16.msra.mxu1 %v200_v35  ;;  %v183_v38 = vpop.permute.xlu1 %182 }
 0x14e   :  { %6757 = vmatprep.subr.bf16.mxu1 %v179_v24 }
 0x151   :  { %6758 = vmatpush3.bf16.msra.mxu1 %v179_v24  ;;  %v7876_v24 = vpop.f32.mrf.mxu0 }
 0x152   :  { %6759 = vmatprep.subr.bf16.mxu1 %v178_v26 }
 0x153   :  { %v7878_v25 = vpop.f32.mrf.mxu0 }
 0x155   :  { %6760 = vmatpush3.bf16.msra.mxu1 %v178_v26  ;;  %v7882_v27 = vpop.f32.mrf.mxu0 }
 0x156   :  { %6761 = vmatprep.subr.msk.bf16.mxu1 %vm7762_vm4, %v185_v37 }
 0x158   :  { %v7778_v40 = vpop.permute.xlu0 %225 }
 0x159   :  { %6762 = vmatpush3.bf16.msk.msra.mxu1 %vm7762_vm4, %v185_v37 }
 0x15a   :  { %6763 = vmatprep.subr.msk.bf16.mxu1 %vm7762_vm4, %v183_v38  ;;  %v7780_v41 = vpop.permute.xlu1 %230 }
 0x15c   :  { %v7785_v44 = vpop.permute.xlu0 %215 }
 0x15d   :  { %6764 = vmatpush3.bf16.msk.msra.mxu1 %vm7762_vm4, %v183_v38 }
 0x15e   :  { %v7794_v50 = vpop.permute.xlu1 %220 }
 0x160   :  { %6766 = vmatmul.mubr.msk.bf16.vlgmr.msra.gmra.mxu1 %vm243_vm1, %v7494_v39 }
 0x161   :  { %6789 = vmatprep.mubr.msk.bf16.mxu1 %vm100_vm0, %v7499_v22  ;;  %v662_v22 = vld [vmem:[%s10072_s2 + $0xd0] sm:$0xff] }
 0x220   :  { %v6767_v42 = vpop.f32.mrf.mxu1 }
 0x221   :  { %v7783_v43 = vadd.f32 %v6767_v42, %v7778_v40 }
 0x222   :  { %v284_v45 = vpop.f32.mrf.mxu1 }
 0x223   :  { %v7788_v46 = vadd.f32 %v284_v45, %v7785_v44  ;;  %v301_v48 = vmax.f32 %v7783_v43, 0.0 }
 0x224   :  { %v6768_v47 = vpop.f32.mrf.mxu1 }
 0x225   :  { %v7792_v49 = vadd.f32 %v6768_v47, %v7780_v41  ;;  %v299_v53 = vmax.f32 %v7788_v46, 0.0  ;;  %v305_v57 = vmax.f32 %v301_v48, 0.0 }
 0x226   :  { %v287_v51 = vpop.f32.mrf.mxu1 }
 0x227   :  { %v302_v54 = vmax.f32 %v7792_v49, 0.0  ;;  %v7802_v55 = vadd.f32 %v287_v51, %v7794_v50  ;;  %v303_v60 = vmax.f32 %v299_v53, 0.0 }
 0x229   :  { %v306_v58 = vmax.f32 %v302_v54, 0.0  ;;  %v300_v59 = vmax.f32 %v7802_v55, 0.0  ;;  %v7501_v55 = vld [vmem:[%s10071_s1 + $0x50] sm:$0xff]  }
 0x22b   :  { %v308_v61 = vpack.c.bf16 %v306_v58, %v305_v57  ;;  %v304_v62 = vmax.f32 %v300_v59, 0.0  ;;  %v7500_v57 = vld [vmem:[%s10071_s1 + $0x48] sm:$0xff]  }
 0x22d   :  { %v307_v63 = vpack.c.bf16 %v304_v62, %v303_v60  ;;  %324 = vrot.lane.b32.xlu0 %v308_v61, %s7661_s27 }
 0x22f   :  { %322 = vrot.lane.b32.xlu1 %v307_v63, %s7661_s27 }
 0x231   :  { %313 = vrot.lane.b32.xlu0 %v308_v61, %s7662_s28 }
 0x233   :  { %311 = vrot.lane.b32.xlu1 %v307_v63, %s7662_s28 }
 0x235   :  { %353 = vperm.xlu0 %7489, %v339_v0  }
 0x237   :  { %358 = vperm.xlu1 %7490, %v340_v1  }
 0x239   :  { %343 = vperm.xlu0 %7489, %v337_v4  }
 0x23b   :  { %348 = vperm.xlu1 %7490, %v338_v5  }
 0x23d   :  { %452 = vperm.xlu0 %7489, %v438_v6  }
 0x23f   :  { %457 = vperm.xlu1 %7490, %v439_v7  }
 0x241   :  { %442 = vperm.xlu0 %7489, %v436_v8  }
 0x243   :  { %447 = vperm.xlu1 %7490, %v437_v9  }
 0x29f   :  { %v325_v10 = vpop.permute.xlu0 %324 }
 0x2a0   :  { %7427 = vmatprep.subr.msk.bf16.mxu0 %vm326_vm5, %v325_v10  ;;  %v331_v11 = vsel %vm326_vm5, %v325_v10, 0 }
 0x2a1   :  { %6770 = vmatpush3.bf16.msra.mxu0 %v331_v11  ;;  %v323_v12 = vpop.permute.xlu1 %322 }
 0x2a2   :  { %7428 = vmatprep.subr.msk.bf16.mxu0 %vm326_vm5, %v323_v12  ;;  %v328_v15 = vsel %vm326_vm5, %v323_v12, 0 }
 0x2a3   :  { %v314_v18 = vpop.permute.xlu0 %313 }
 0x2a5   :  { %6772 = vmatpush3.bf16.msra.mxu0 %v328_v15  ;;  %v312_v19 = vpop.permute.xlu1 %311 }
 0x2a6   :  { %6773 = vmatprep.subr.bf16.mxu0 %v308_v61 }
 0x2a9   :  { %6774 = vmatpush3.bf16.msra.mxu0 %v308_v61 }
 0x2aa   :  { %6775 = vmatprep.subr.bf16.mxu0 %v307_v63 }
 0x2ad   :  { %6776 = vmatpush3.bf16.msra.mxu0 %v307_v63 }
 0x2ae   :  { %6777 = vmatprep.subr.msk.bf16.mxu0 %vm7854_vm7, %v314_v18 }
 0x2b0   :  { %v7880_v26 = vpop.permute.xlu0 %353 }
 0x2b1   :  { %6778 = vmatpush3.bf16.msk.msra.mxu0 %vm7854_vm7, %v314_v18  ;;  %v562_v18 = vld [vmem:[%s10072_s2 + $0xa8] sm:$0xff] }
 0x2b2   :  { %6779 = vmatprep.subr.msk.bf16.mxu0 %vm7854_vm7, %v312_v19  ;;  %v7884_v28 = vpop.permute.xlu1 %358 }
 0x2b4   :  { %v7887_v32 = vpop.permute.xlu0 %343 }
 0x2b5   :  { %6780 = vmatpush3.bf16.msk.msra.mxu0 %vm7854_vm7, %v312_v19  ;;  %v660_v19 = vld [vmem:[%s10072_s2 + $0xc0] sm:$0xff] }
 0x2b6   :  { %v7891_v37 = vpop.permute.xlu1 %348 }
 0x2b8   :  { %6782 = vmatmul.mubr.msk.bf16.vlgmr.msra.gmra.mxu0 %vm243_vm1, %v7498_v20  ;;  %v7898_v58 = vpop.permute.xlu0 %452  ;;  %v661_v20 = vld [vmem:[%s10072_s2 + $0xc8] sm:$0xff] }
 0x2b9   :  { %6805 = vmatprep.mubr.msk.bf16.mxu0 %vm243_vm1, %v7501_v55 }
 0x2ba   :  { %v7900_v60 = vpop.permute.xlu1 %457 }
 0x2bc   :  { %v7903_v63 = vpop.permute.xlu0 %442 }
 0x2be   :  { %v7911_v6 = vpop.permute.xlu1 %447 }
 0x378   :  { %v6783_v29 = vpop.f32.mrf.mxu0 }
 0x379   :  { %v420_v31 = vadd.f32 %v6783_v29, %v7880_v26  ;;  %v663_v29 = vld [vmem:[%s10072_s2 + $0xd8] sm:$0xff] }
 0x37a   :  { %v411_v30 = vpop.f32.mrf.mxu0 }
 0x37b   :  { %v412_v34 = vadd.f32 %v411_v30, %v7887_v32  ;;  %v428_v39 = vmax.f32 %v420_v31, 0.0 }
 0x37c   :  { %v6784_v33 = vpop.f32.mrf.mxu0 }
 0x37d   :  { %v423_v35 = vadd.f32 %v6784_v33, %v7884_v28  ;;  %v426_v47 = vmax.f32 %v412_v34, 0.0 }
 0x37e   :  { %v414_v38 = vpop.f32.mrf.mxu0 }
 0x37f   :  { %v429_v42 = vmax.f32 %v423_v35, 0.0  ;;  %v415_v45 = vadd.f32 %v414_v38, %v7891_v37 }
 0x381   :  { %v431_v51 = vpack.c.bf16 %v429_v42, %v428_v39  ;;  %v427_v52 = vmax.f32 %v415_v45, 0.0  ;;  %v7502_v39 = vld [vmem:[%s10071_s1 + $0x58] sm:$0xff]   ;;  %v7503_v42 = vld [vmem:[%s10071_s1 + $0x60] sm:$0xff]  }
 0x383   :  { %6785 = vmatprep.subr.bf16.mxu1 %v431_v51  ;;  %v430_v56 = vpack.c.bf16 %v427_v52, %v426_v47 }
 0x384   :  { %6786 = vmatpush3.bf16.msra.mxu1 %v431_v51 }
 0x385   :  { %6787 = vmatprep.subr.bf16.mxu1 %v430_v56 }
 0x388   :  { %6788 = vmatpush3.bf16.msra.mxu1 %v430_v56 }
 0x38b   :  { %6790 = vmatmul.mubr.msk.bf16.vlgmr.msra.gmra.mxu1 %vm100_vm0, %v7500_v57 }
 0x38c   :  { %6813 = vmatprep.mubr.msk.bf16.mxu1 %vm100_vm0, %v7503_v42 }
 0x44b   :  { %v6791_v61 = vpop.f32.mrf.mxu1 }
 0x44c   :  { %v519_v62 = vadd.f32 %v6791_v61, %v7898_v58 }
 0x44d   :  { %v510_v0 = vpop.f32.mrf.mxu1 }
 0x44e   :  { %v511_v1 = vadd.f32 %v510_v0, %v7903_v63  ;;  %v7908_v4 = vadd.f32 %v519_v62, %v301_v48 }
 0x44f   :  { %v6792_v2 = vpop.f32.mrf.mxu1 }
 0x450   :  { %v522_v5 = vadd.f32 %v6792_v2, %v7900_v60  ;;  %v7915_v8 = vadd.f32 %v511_v1, %v299_v53  ;;  %v531_v11 = vmax.f32 %v7908_v4, 0.0  ;;  %v563_v53 = vld [vmem:[%s10072_s2 + $0xb0] sm:$0xff] }
 0x451   :  { %v513_v7 = vpop.f32.mrf.mxu1 }
 0x452   :  { %v7919_v9 = vadd.f32 %v522_v5, %v302_v54  ;;  %v514_v10 = vadd.f32 %v513_v7, %v7911_v6  ;;  %v529_v12 = vmax.f32 %v7915_v8, 0.0  ;;  %v564_v54 = vld [vmem:[%s10072_s2 + $0xb8] sm:$0xff] }
 0x454   :  { %v532_v43 = vmax.f32 %v7919_v9, 0.0  ;;  %v7926_v48 = vadd.f32 %v514_v10, %v300_v59  ;;  %v561_v59 = vld [vmem:[%s10072_s2 + $0xa0] sm:$0xff] }
 0x456   :  { %v534_v15 = vpack.c.bf16 %v532_v43, %v531_v11  ;;  %v530_v46 = vmax.f32 %v7926_v48, 0.0 }
 0x458   :  { %549 = vrot.lane.b32.xlu0 %v534_v15, %s7659_s9  ;;  %v533_v49 = vpack.c.bf16 %v530_v46, %v529_v12  ;;  %v7504_v46 = vld [vmem:[%s10071_s1 + $0x68] sm:$0xff]  }
 0x45a   :  { %547 = vrot.lane.b32.xlu1 %v533_v49, %s7659_s9 }
 0x45c   :  { %539 = vrot.lane.b32.xlu0 %v534_v15, %s7660_s10 }
 0x45e   :  { %537 = vrot.lane.b32.xlu1 %v533_v49, %s7660_s10 }
 0x460   :  { %577 = vperm.xlu0 %7489, %v563_v53  }
 0x462   :  { %582 = vperm.xlu1 %7490, %v564_v54  }
 0x464   :  { %567 = vperm.xlu0 %7489, %v561_v59  }
 0x466   :  { %572 = vperm.xlu1 %7490, %v562_v18  }
 0x468   :  { %666 = vperm.xlu0 %7489, %v660_v19  }
 0x46a   :  { %671 = vperm.xlu1 %7490, %v661_v20  }
 0x46c   :  { %676 = vperm.xlu0 %7489, %v662_v22  }
 0x46e   :  { %681 = vperm.xlu1 %7490, %v663_v29  }
 0x4ca   :  { %v550_v30 = vpop.permute.xlu0 %549 }
 0x4cb   :  { %7429 = vmatprep.subr.msk.bf16.mxu0 %vm198_vm2, %v550_v30  ;;  %v555_v31 = vsel %vm198_vm2, %v550_v30, 0 }
 0x4cc   :  { %6794 = vmatpush3.bf16.msra.mxu0 %v555_v31  ;;  %v548_v33 = vpop.permute.xlu1 %547 }
 0x4cd   :  { %7430 = vmatprep.subr.msk.bf16.mxu0 %vm198_vm2, %v548_v33  ;;  %v552_v34 = vsel %vm198_vm2, %v548_v33, 0 }
 0x4ce   :  { %v540_v35 = vpop.permute.xlu0 %539 }
 0x4d0   :  { %6796 = vmatpush3.bf16.msra.mxu0 %v552_v34  ;;  %v538_v38 = vpop.permute.xlu1 %537 }
 0x4d1   :  { %6797 = vmatprep.subr.bf16.mxu0 %v534_v15 }
 0x4d4   :  { %6798 = vmatpush3.bf16.msra.mxu0 %v534_v15 }
 0x4d5   :  { %6799 = vmatprep.subr.bf16.mxu0 %v533_v49 }
 0x4d8   :  { %6800 = vmatpush3.bf16.msra.mxu0 %v533_v49  ;;  %v7505_v49 = vld [vmem:[%s10073_s3] ss:$8 sps:$4 sm:$0xff]  }
 0x4d9   :  { %6801 = vmatprep.subr.msk.bf16.mxu0 %vm7762_vm4, %v540_v35 }
 0x4db   :  { %v7982_v45 = vpop.permute.xlu0 %577 }
 0x4dc   :  { %6802 = vmatpush3.bf16.msk.msra.mxu0 %vm7762_vm4, %v540_v35 }
 0x4dd   :  { %6803 = vmatprep.subr.msk.bf16.mxu0 %vm7762_vm4, %v538_v38  ;;  %v7984_v47 = vpop.permute.xlu1 %582 }
 0x4df   :  { %v7987_v57 = vpop.permute.xlu0 %567 }
 0x4e0   :  { %6804 = vmatpush3.bf16.msk.msra.mxu0 %vm7762_vm4, %v538_v38 }
 0x4e1   :  { %v7991_v1 = vpop.permute.xlu1 %572 }
 0x4e3   :  { %6806 = vmatmul.mubr.msk.bf16.vlgmr.msra.gmra.mxu0 %vm243_vm1, %v7502_v39  ;;  %v8003_v54 = vpop.permute.xlu0 %666 }
 0x4e5   :  { %v8001_v53 = vpop.permute.xlu1 %671 }
 0x4e7   :  { %v8007_v20 = vpop.permute.xlu0 %676 }
 0x4e9   :  { %v8005_v18 = vpop.permute.xlu1 %681 }
 0x5a3   :  { %v6807_v51 = vpop.f32.mrf.mxu0 }
 0x5a4   :  { %v644_v56 = vadd.f32 %v6807_v51, %v7982_v45 }
 0x5a5   :  { %v635_v52 = vpop.f32.mrf.mxu0 }
 0x5a6   :  { %v636_v62 = vadd.f32 %v635_v52, %v7987_v57  ;;  %v652_v5 = vmax.f32 %v644_v56, 0.0 }
 0x5a7   :  { %v6808_v61 = vpop.f32.mrf.mxu0 }
 0x5a8   :  { %v647_v0 = vadd.f32 %v6808_v61, %v7984_v47  ;;  %v650_v11 = vmax.f32 %v636_v62, 0.0 }
 0x5a9   :  { %v638_v2 = vpop.f32.mrf.mxu0 }
 0x5aa   :  { %v653_v7 = vmax.f32 %v647_v0, 0.0  ;;  %v639_v10 = vadd.f32 %v638_v2, %v7991_v1 }
 0x5ac   :  { %v655_v43 = vpack.c.bf16 %v653_v7, %v652_v5  ;;  %v651_v12 = vmax.f32 %v639_v10, 0.0  ;;  %v849_v5 = vld [vmem:[%s10072_s2 + $0xe8] sm:$0xff] }
 0x5ae   :  { %6809 = vmatprep.subr.bf16.mxu1 %v655_v43  ;;  %v654_v15 = vpack.c.bf16 %v651_v12, %v650_v11 }
 0x5af   :  { %6810 = vmatpush3.bf16.msra.mxu1 %v655_v43 }
 0x5b0   :  { %6811 = vmatprep.subr.bf16.mxu1 %v654_v15 }
 0x5b3   :  { %6812 = vmatpush3.bf16.msra.mxu1 %v654_v15 }
 0x5b4   :  { %6817 = vmatprep.subr.bf16.mxu1 %v7505_v49 }
 0x5b6   :  { %6814 = vmatmul.mubr.msk.bf16.vlgmr.msra.gmra.mxu1 %vm100_vm0, %v7504_v46  ;;  %v7507_v46 = vld [vmem:[%s10071_s1 + $0x78] sm:$0xff]  }
 0x5b7   :  { %6818 = vmatpush3.bf16.msra.mxu1 %v7505_v49 }
 0x676   :  { %v6815_v55 = vpop.f32.mrf.mxu1 }
 0x677   :  { %v743_v30 = vadd.f32 %v6815_v55, %v8007_v20 }
 0x678   :  { %v734_v59 = vpop.f32.mrf.mxu1 }
 0x679   :  { %v735_v22 = vadd.f32 %v734_v59, %v8003_v54  ;;  %v751_v39 = vadd.f32 %v743_v30, %v7908_v4  ;;  %v850_v4 = vld [vmem:[%s10072_s2 + $0xf0] sm:$0xff] }
 0x67a   :  { %v6816_v19 = vpop.f32.mrf.mxu1 }
 0x67b   :  { %v746_v29 = vadd.f32 %v6816_v19, %v8005_v18  ;;  %v749_v35 = vadd.f32 %v735_v22, %v7915_v8  ;;  %v851_v8 = vld [vmem:[%s10072_s2 + $0xf8] sm:$0xff] }
 0x67c   :  { %v737_v31 = vpop.f32.mrf.mxu1 }
 0x67d   :  { %v738_v33 = vadd.f32 %v737_v31, %v8001_v53  ;;  %v752_v34 = vadd.f32 %v746_v29, %v7919_v9  ;;  %v7506_v9 = vld [vmem:[%s10071_s1 + $0x70] sm:$0xff]  }
 0x67f   :  { %v750_v38 = vadd.f32 %v738_v33, %v7926_v48  ;;  %v756_v51 = vpack.c.bf16 %v752_v34, %v751_v39  ;;  %v848_v48 = vld [vmem:[%s10072_s2 + $0xe0] sm:$0xff] }
 0x681   :  { %v755_v42 = vpack.c.bf16 %v750_v38, %v749_v35 }
 0x683   :  { %6819 = vmatprep.mubr.msk.bf16.mxu1 %vm763_vm8, %v755_v42 }
 0x684   :  { %6820 = vmatmul.mubr.msk.bf16.vlgmr.msra.gmra.mxu1 %vm763_vm8, %v756_v51 }
 0x685   :  { %6835 = vmatprep.mubr.msk.bf16.mxu1 %vm243_vm1, %v7506_v9  ;;  %v1071_v9 = vld [vmem:[%s10072_s2 + $0x130] sm:$0xff] }
 0x744   :  { %v6821_v52 = vpop.f32.mrf.mxu1 }
 0x746   :  { %v804_v56 = vpop.f32.mrf.mxu1 }
 0x748   :  { %v6822_v61 = vpop.f32.mrf.mxu1 }
 0x749   :  { %v820_v62 = vpack.c.bf16 %v6822_v61, %v6821_v52 }
 0x74a   :  { %v807_v0 = vpop.f32.mrf.mxu1 }
 0x74b   :  { %v819_v2 = vpack.c.bf16 %v807_v0, %v804_v56  ;;  %835 = vrot.lane.b32.xlu0 %v820_v62, %s7659_s9  ;;  %v973_v0 = vld [vmem:[%s10072_s2 + $0x118] sm:$0xff] }
 0x74d   :  { %833 = vrot.lane.b32.xlu1 %v819_v2, %s7659_s9 }
 0x74f   :  { %825 = vrot.lane.b32.xlu0 %v820_v62, %s7660_s10 }
 0x751   :  { %823 = vrot.lane.b32.xlu1 %v819_v2, %s7660_s10 }
 0x753   :  { %864 = vperm.xlu0 %7489, %v850_v4   ;;  %v970_v4 = vld [vmem:[%s10072_s2 + $0x100] sm:$0xff] }
 0x755   :  { %869 = vperm.xlu1 %7490, %v851_v8   ;;  %v971_v8 = vld [vmem:[%s10072_s2 + $0x108] sm:$0xff] }
 0x757   :  { %854 = vperm.xlu0 %7489, %v848_v48   ;;  %v1072_v48 = vld [vmem:[%s10072_s2 + $0x138] sm:$0xff] }
 0x759   :  { %859 = vperm.xlu1 %7490, %v849_v5   ;;  %v1069_v5 = vld [vmem:[%s10072_s2 + $0x120] sm:$0xff] }
 0x7bd   :  { %v836_v7 = vpop.permute.xlu0 %835 }
 0x7be   :  { %7431 = vmatprep.subr.msk.bf16.mxu1 %vm837_vm9, %v836_v7  ;;  %v842_v10 = vsel %vm837_vm9, %v836_v7, 0  ;;  %v1070_v7 = vld [vmem:[%s10072_s2 + $0x128] sm:$0xff] }
 0x7bf   :  { %6824 = vmatpush3.bf16.msra.mxu1 %v842_v10  ;;  %v834_v11 = vpop.permute.xlu1 %833 }
 0x7c0   :  { %7432 = vmatprep.subr.msk.bf16.mxu1 %vm837_vm9, %v834_v11  ;;  %v839_v43 = vsel %vm837_vm9, %v834_v11, 0 }
 0x7c1   :  { %v826_v12 = vpop.permute.xlu0 %825 }
 0x7c3   :  { %6826 = vmatpush3.bf16.msra.mxu1 %v839_v43  ;;  %v824_v15 = vpop.permute.xlu1 %823 }
 0x7c4   :  { %6827 = vmatprep.subr.bf16.mxu1 %v820_v62 }
 0x7c7   :  { %6828 = vmatpush3.bf16.msra.mxu1 %v820_v62  ;;  %v972_v62 = vld [vmem:[%s10072_s2 + $0x110] sm:$0xff] }
 0x7c8   :  { %6829 = vmatprep.subr.bf16.mxu1 %v819_v2 }
 0x7cb   :  { %6830 = vmatpush3.bf16.msra.mxu1 %v819_v2  ;;  %v7508_v2 = vld [vmem:[%s10071_s1 + $0x80] sm:$0xff]  }
 0x7cc   :  { %6831 = vmatprep.subr.msk.bf16.mxu1 %vm7762_vm4, %v826_v12  ;;  %6851 = vmatprep.mubr.msk.bf16.mxu0 %vm243_vm1, %v7508_v2 }
 0x7ce   :  { %v8055_v49 = vpop.permute.xlu0 %864 }
 0x7cf   :  { %6832 = vmatpush3.bf16.msk.msra.mxu1 %vm7762_vm4, %v826_v12 }
 0x7d0   :  { %6833 = vmatprep.subr.msk.bf16.mxu1 %vm7762_vm4, %v824_v15  ;;  %v8057_v55 = vpop.permute.xlu1 %869 }
 0x7d2   :  { %v8062_v29 = vpop.permute.xlu0 %854 }
 0x7d3   :  { %6834 = vmatpush3.bf16.msk.msra.mxu1 %vm7762_vm4, %v824_v15 }
 0x7d4   :  { %v8070_v34 = vpop.permute.xlu1 %859 }
 0x7d6   :  { %6836 = vmatmul.mubr.msk.bf16.vlgmr.msra.gmra.mxu1 %vm243_vm1, %v7507_v46 }
 0x896   :  { %v6837_v59 = vpop.f32.mrf.mxu1 }
 0x897   :  { %v8060_v22 = vadd.f32 %v6837_v59, %v8055_v49  ;;  %v7509_v59 = vld [vmem:[%s10071_s1 + $0x88] sm:$0xff]  }
 0x898   :  { %v922_v19 = vpop.f32.mrf.mxu1 }
 0x899   :  { %v8065_v31 = vadd.f32 %v922_v19, %v8062_v29  ;;  %v939_v38 = vmax.f32 %v8060_v22, 0.0  ;;  %v7510_v19 = vld [vmem:[%s10071_s1 + $0x90] sm:$0xff]  }
 0x89a   :  { %v6838_v30 = vpop.f32.mrf.mxu1  ;;  %6859 = vmatprep.mubr.msk.bf16.mxu1 %vm100_vm0, %v7510_v19 }
 0x89b   :  { %v8068_v33 = vadd.f32 %v6838_v30, %v8057_v55  ;;  %v937_v51 = vmax.f32 %v8065_v31, 0.0 }
 0x89c   :  { %v925_v35 = vpop.f32.mrf.mxu1 }
 0x89d   :  { %v940_v39 = vmax.f32 %v8068_v33, 0.0  ;;  %v8075_v42 = vadd.f32 %v925_v35, %v8070_v34 }
 0x89f   :  { %v942_v52 = vpack.c.bf16 %v940_v39, %v939_v38  ;;  %v938_v56 = vmax.f32 %v8075_v42, 0.0 }
 0x8a1   :  { %v941_v61 = vpack.c.bf16 %v938_v56, %v937_v51  ;;  %957 = vrot.lane.b32.xlu0 %v942_v52, %s7661_s27 }
 0x8a3   :  { %955 = vrot.lane.b32.xlu1 %v941_v61, %s7661_s27 }
 0x8a5   :  { %947 = vrot.lane.b32.xlu0 %v942_v52, %s7662_s28 }
 0x8a7   :  { %945 = vrot.lane.b32.xlu1 %v941_v61, %s7662_s28 }
 0x8a9   :  { %986 = vperm.xlu0 %7489, %v972_v62  }
 0x8ab   :  { %991 = vperm.xlu1 %7490, %v973_v0  }
 0x8ad   :  { %976 = vperm.xlu0 %7489, %v970_v4  }
 0x8af   :  { %981 = vperm.xlu1 %7490, %v971_v8  }
 0x8b1   :  { %1085 = vperm.xlu0 %7489, %v1071_v9  }
 0x8b3   :  { %1090 = vperm.xlu1 %7490, %v1072_v48  }
 0x8b5   :  { %1075 = vperm.xlu0 %7489, %v1069_v5  }
 0x8b7   :  { %1080 = vperm.xlu1 %7490, %v1070_v7  }
 0x913   :  { %v958_v10 = vpop.permute.xlu0 %957 }
 0x914   :  { %7433 = vmatprep.subr.msk.bf16.mxu0 %vm959_vm10, %v958_v10  ;;  %v964_v11 = vsel %vm959_vm10, %v958_v10, 0 }
 0x915   :  { %6840 = vmatpush3.bf16.msra.mxu0 %v964_v11  ;;  %v956_v43 = vpop.permute.xlu1 %955  ;;  %v7511_v11 = vld [vmem:[%s10071_s1 + $0x98] sm:$0xff]  }
 0x916   :  { %7434 = vmatprep.subr.msk.bf16.mxu0 %vm959_vm10, %v956_v43  ;;  %v961_v12 = vsel %vm959_vm10, %v956_v43, 0 }
 0x917   :  { %v948_v15 = vpop.permute.xlu0 %947 }
 0x919   :  { %6842 = vmatpush3.bf16.msra.mxu0 %v961_v12  ;;  %v946_v46 = vpop.permute.xlu1 %945 }
 0x91a   :  { %6843 = vmatprep.subr.bf16.mxu0 %v942_v52 }
 0x91d   :  { %6844 = vmatpush3.bf16.msra.mxu0 %v942_v52 }
 0x91e   :  { %6845 = vmatprep.subr.bf16.mxu0 %v941_v61 }
 0x921   :  { %6846 = vmatpush3.bf16.msra.mxu0 %v941_v61 }
 0x922   :  { %6847 = vmatprep.subr.msk.bf16.mxu0 %vm7854_vm7, %v948_v15 }
 0x924   :  { %v8131_v30 = vpop.permute.xlu0 %986 }
 0x925   :  { %6848 = vmatpush3.bf16.msk.msra.mxu0 %vm7854_vm7, %v948_v15 }
 0x926   :  { %6849 = vmatprep.subr.msk.bf16.mxu0 %vm7854_vm7, %v946_v46  ;;  %v8133_v35 = vpop.permute.xlu1 %991 }
 0x928   :  { %v8136_v52 = vpop.permute.xlu0 %976 }
 0x929   :  { %6850 = vmatpush3.bf16.msk.msra.mxu0 %vm7854_vm7, %v946_v46 }
 0x92a   :  { %v8140_v0 = vpop.permute.xlu1 %981 }
 0x92c   :  { %6852 = vmatmul.mubr.msk.bf16.vlgmr.msra.gmra.mxu0 %vm243_vm1, %v7509_v59  ;;  %v8147_v43 = vpop.permute.xlu0 %1085 }
 0x92d   :  { %10159 = vst [vmem:[#allocation2_spill] sm:$0xff] %v8147_v43 }
 0x92e   :  { %v8149_v12 = vpop.permute.xlu1 %1090 }
 0x92f   :  { %10160 = vst [vmem:[#allocation3_spill] sm:$0xff] %v8149_v12 }
 0x930   :  { %v8152_v59 = vpop.permute.xlu0 %1075 }
 0x931   :  { %10161 = vst [vmem:[#allocation4_spill] sm:$0xff] %v8152_v59 }
 0x9ec   :  { %v6853_v38 = vpop.f32.mrf.mxu0 }
 0x9ed   :  { %v1053_v51 = vadd.f32 %v6853_v38, %v8131_v30 }
 0x9ee   :  { %v1044_v39 = vpop.f32.mrf.mxu0 }
 0x9ef   :  { %v1045_v61 = vadd.f32 %v1044_v39, %v8136_v52  ;;  %v1061_v4 = vmax.f32 %v1053_v51, 0.0 }
 0x9f0   :  { %v6854_v56 = vpop.f32.mrf.mxu0 }
 0x9f1   :  { %v1056_v62 = vadd.f32 %v6854_v56, %v8133_v35  ;;  %v1059_v48 = vmax.f32 %v1045_v61, 0.0  ;;  %v8159_v61 = vpop.permute.xlu1 %1080 }
 0x9f2   :  { %v1047_v2 = vpop.f32.mrf.mxu0  ;;  %10162 = vst [vmem:[#allocation5_spill] sm:$0xff] %v8159_v61 }
 0x9f3   :  { %v1062_v8 = vmax.f32 %v1056_v62, 0.0  ;;  %v1048_v9 = vadd.f32 %v1047_v2, %v8140_v0 }
 0x9f5   :  { %v1064_v5 = vpack.c.bf16 %v1062_v8, %v1061_v4  ;;  %v1060_v7 = vmax.f32 %v1048_v9, 0.0 }
 0x9f7   :  { %6855 = vmatprep.subr.bf16.mxu1 %v1064_v5  ;;  %v1063_v10 = vpack.c.bf16 %v1060_v7, %v1059_v48 }
 0x9f8   :  { %6856 = vmatpush3.bf16.msra.mxu1 %v1064_v5 }
 0x9f9   :  { %6857 = vmatprep.subr.bf16.mxu1 %v1063_v10 }
 0x9fc   :  { %6858 = vmatpush3.bf16.msra.mxu1 %v1063_v10 }
 0x9ff   :  { %6860 = vmatmul.mubr.msk.bf16.vlgmr.msra.gmra.mxu1 %vm100_vm0, %v7511_v11  ;;  %v7512_v11 = vld [vmem:[%s10071_s1 + $0xa0] sm:$0xff]  }
 0xa00   :  { %6875 = vmatprep.mubr.msk.bf16.mxu0 %vm243_vm1, %v7512_v11 }
 0xabf   :  { %v6861_v15 = vpop.f32.mrf.mxu1 }
 0xac0   :  { %v1152_v46 = vadd.f32 %v6861_v15, %v8147_v43  ;;  %v1194_v15 = vld [vmem:[%s10072_s2 + $0x140] sm:$0xff] }
 0xac1   :  { %v1143_v19 = vpop.f32.mrf.mxu1 }
 0xac2   :  { %v1144_v38 = vadd.f32 %v1143_v19, %v8152_v59  ;;  %v8156_v51 = vadd.f32 %v1152_v46, %v8060_v22  ;;  %v1195_v46 = vld [vmem:[%s10072_s2 + $0x148] sm:$0xff]  ;;  %v1293_v19 = vld [vmem:[%s10072_s2 + $0x160] sm:$0xff] }
 0xac3   :  { %v6862_v39 = vpop.f32.mrf.mxu1 }
 0xac4   :  { %v1155_v56 = vadd.f32 %v6862_v39, %v8149_v12  ;;  %v8162_v2 = vadd.f32 %v1144_v38, %v8065_v31  ;;  %v1164_v9 = vmax.f32 %v8156_v51, 0.0  ;;  %v1294_v38 = vld [vmem:[%s10072_s2 + $0x168] sm:$0xff]  ;;  %v1295_v39 = vld [vmem:[%s10072_s2 + $0x170] sm:$0xff] }
 0xac5   :  { %v1146_v62 = vpop.f32.mrf.mxu1 }
 0xac6   :  { %v8165_v4 = vadd.f32 %v1155_v56, %v8068_v33  ;;  %v1147_v8 = vadd.f32 %v1146_v62, %v8159_v61  ;;  %v1162_v5 = vmax.f32 %v8162_v2, 0.0  ;;  %v1196_v33 = vld [vmem:[%s10072_s2 + $0x150] sm:$0xff]  ;;  %v1296_v56 = vld [vmem:[%s10072_s2 + $0x178] sm:$0xff] }
 0xac8   :  { %v1165_v48 = vmax.f32 %v8165_v4, 0.0  ;;  %v8171_v22 = vadd.f32 %v1147_v8, %v8075_v42  ;;  %v1197_v42 = vld [vmem:[%s10072_s2 + $0x158] sm:$0xff] }
 0xaca   :  { %v1167_v7 = vpack.c.bf16 %v1165_v48, %v1164_v9  ;;  %v1163_v10 = vmax.f32 %v8171_v22, 0.0 }
 0xacc   :  { %1182 = vrot.lane.b32.xlu0 %v1167_v7, %s7659_s9  ;;  %v1166_v31 = vpack.c.bf16 %v1163_v10, %v1162_v5 }
 0xace   :  { %1180 = vrot.lane.b32.xlu1 %v1166_v31, %s7659_s9 }
 0xad0   :  { %1172 = vrot.lane.b32.xlu0 %v1167_v7, %s7660_s10 }
 0xad2   :  { %1170 = vrot.lane.b32.xlu1 %v1166_v31, %s7660_s10 }
 0xad4   :  { %1210 = vperm.xlu0 %7489, %v1196_v33   ;;  %v7513_v33 = vld [vmem:[%s10071_s1 + $0xa8] sm:$0xff]  }
 0xad6   :  { %1215 = vperm.xlu1 %7490, %v1197_v42  }
 0xad8   :  { %1200 = vperm.xlu0 %7489, %v1194_v15  }
 0xada   :  { %1205 = vperm.xlu1 %7490, %v1195_v46  }
 0xadc   :  { %1299 = vperm.xlu0 %7489, %v1293_v19  }
 0xade   :  { %1304 = vperm.xlu1 %7490, %v1294_v38  }
 0xae0   :  { %1309 = vperm.xlu0 %7489, %v1295_v39  }
 0xae2   :  { %1314 = vperm.xlu1 %7490, %v1296_v56  }
 0xb3e   :  { %v1183_v62 = vpop.permute.xlu0 %1182 }
 0xb3f   :  { %7435 = vmatprep.subr.msk.bf16.mxu0 %vm837_vm9, %v1183_v62  ;;  %v1188_v8 = vsel %vm837_vm9, %v1183_v62, 0 }
 0xb40   :  { %6864 = vmatpush3.bf16.msra.mxu0 %v1188_v8  ;;  %v1181_v9 = vpop.permute.xlu1 %1180 }
 0xb41   :  { %7436 = vmatprep.subr.msk.bf16.mxu0 %vm837_vm9, %v1181_v9  ;;  %v1185_v48 = vsel %vm837_vm9, %v1181_v9, 0 }
 0xb42   :  { %v1173_v5 = vpop.permute.xlu0 %1172 }
 0xb44   :  { %6866 = vmatpush3.bf16.msra.mxu0 %v1185_v48  ;;  %v1171_v10 = vpop.permute.xlu1 %1170 }
 0xb45   :  { %6867 = vmatprep.subr.bf16.mxu0 %v1167_v7 }
 0xb48   :  { %6868 = vmatpush3.bf16.msra.mxu0 %v1167_v7  ;;  %v7514_v7 = vld [vmem:[%s10071_s1 + $0xb0] sm:$0xff]  }
 0xb49   :  { %6869 = vmatprep.subr.bf16.mxu0 %v1166_v31  ;;  %6883 = vmatprep.mubr.msk.bf16.mxu1 %vm100_vm0, %v7514_v7 }
 0xb4c   :  { %6870 = vmatpush3.bf16.msra.mxu0 %v1166_v31 }
 0xb4d   :  { %6871 = vmatprep.subr.msk.bf16.mxu0 %vm7762_vm4, %v1173_v5 }
 0xb4f   :  { %v8227_v31 = vpop.permute.xlu0 %1210 }
 0xb50   :  { %6872 = vmatpush3.bf16.msk.msra.mxu0 %vm7762_vm4, %v1173_v5  ;;  %10163 = vst [vmem:[#allocation6_spill] sm:$0xff] %v8227_v31 }
 0xb51   :  { %6873 = vmatprep.subr.msk.bf16.mxu0 %vm7762_vm4, %v1171_v10  ;;  %v8229_v42 = vpop.permute.xlu1 %1215 }
 0xb52   :  { %10164 = vst [vmem:[#allocation7_spill] sm:$0xff] %v8229_v42 }
 0xb53   :  { %v8232_v19 = vpop.permute.xlu0 %1200 }
 0xb54   :  { %6874 = vmatpush3.bf16.msk.msra.mxu0 %vm7762_vm4, %v1171_v10  ;;  %10165 = vst [vmem:[#allocation8_spill] sm:$0xff] %v8232_v19 }
 0xb55   :  { %v8236_v62 = vpop.permute.xlu1 %1205 }
 0xb56   :  { %10166 = vst [vmem:[#allocation9_spill] sm:$0xff] %v8236_v62 }
 0xb57   :  { %6876 = vmatmul.mubr.msk.bf16.vlgmr.msra.gmra.mxu0 %vm243_vm1, %v7513_v33 }
 0xc17   :  { %v6877_v11 = vpop.f32.mrf.mxu0 }
 0xc18   :  { %v1277_v46 = vadd.f32 %v6877_v11, %v8227_v31  ;;  %v7515_v11 = vld [vmem:[%s10071_s1 + $0xb8] sm:$0xff]  }
 0xc19   :  { %v1268_v15 = vpop.f32.mrf.mxu0 }
 0xc1a   :  { %v1269_v39 = vadd.f32 %v1268_v15, %v8232_v19  ;;  %v1285_v9 = vmax.f32 %v1277_v46, 0.0  ;;  %v7516_v15 = vld [vmem:[%s10073_s3 + $0x20] ss:$8 sps:$4 sm:$0xff]   ;;  %v7517_v46 = vld [vmem:[%s10073_s3 + $0x10] ss:$8 sps:$4 sm:$0xff]  }
 0xc1b   :  { %v6878_v38 = vpop.f32.mrf.mxu0 }
 0xc1c   :  { %v1280_v56 = vadd.f32 %v6878_v38, %v8229_v42  ;;  %v1283_v10 = vmax.f32 %v1269_v39, 0.0  ;;  %v8249_v38 = vpop.permute.xlu1 %1304  ;;  %v8251_v39 = vpop.permute.xlu0 %1299 }
 0xc1d   :  { %v1271_v8 = vpop.f32.mrf.mxu0  ;;  %10167 = vst [vmem:[#allocation10_spill] sm:$0xff] %v8249_v38  ;;  %10168 = vst [vmem:[#allocation11_spill] sm:$0xff] %v8251_v39 }
 0xc1e   :  { %v1286_v48 = vmax.f32 %v1280_v56, 0.0  ;;  %v1272_v5 = vadd.f32 %v1271_v8, %v8236_v62 }
 0xc20   :  { %v1288_v33 = vpack.c.bf16 %v1286_v48, %v1285_v9  ;;  %v1284_v7 = vmax.f32 %v1272_v5, 0.0  ;;  %v8253_v8 = vpop.permute.xlu1 %1314  ;;  %v8255_v48 = vpop.permute.xlu0 %1309 }
 0xc21   :  { %10169 = vst [vmem:[#allocation12_spill] sm:$0xff] %v8253_v8  ;;  %10170 = vst [vmem:[#allocation13_spill] sm:$0xff] %v8255_v48 }
 0xc22   :  { %6879 = vmatprep.subr.bf16.mxu1 %v1288_v33  ;;  %v1287_v3 = vpack.c.bf16 %v1284_v7, %v1283_v10 }
 0xc23   :  { %6880 = vmatpush3.bf16.msra.mxu1 %v1288_v33 }
 0xc24   :  { %6881 = vmatprep.subr.bf16.mxu1 %v1287_v3 }
 0xc27   :  { %6882 = vmatpush3.bf16.msra.mxu1 %v1287_v3 }
 0xc28   :  { %6887 = vmatprep.subr.bf16.mxu1 %v7516_v15 }
 0xc2a   :  { %6884 = vmatmul.mubr.msk.bf16.vlgmr.msra.gmra.mxu1 %vm100_vm0, %v7515_v11 }
 0xc2b   :  { %6888 = vmatpush3.bf16.msra.mxu1 %v7516_v15 }
 0xc2c   :  { %6889 = vmatprep.subr.bf16.mxu1 %v7517_v46 }
 0xc2f   :  { %6890 = vmatpush3.bf16.msra.mxu1 %v7517_v46 }
 0xcea   :  { %v6885_v56 = vpop.f32.mrf.mxu1 }
 0xceb   :  { %v1376_v33 = vadd.f32 %v6885_v56, %v8255_v48 }
 0xcec   :  { %v1367_v3 = vpop.f32.mrf.mxu1 }
 0xced   :  { %v1368_v5 = vadd.f32 %v1367_v3, %v8251_v39  ;;  %v1384_v42 = vadd.f32 %v1376_v33, %v8156_v51  ;;  %v1490_v51 = vld [vmem:[%s10072_s2 + $0x190] sm:$0xff] }
 0xcee   :  { %v6886_v9 = vpop.f32.mrf.mxu1 }
 0xcef   :  { %v1379_v10 = vadd.f32 %v6886_v9, %v8253_v8  ;;  %v1382_v46 = vadd.f32 %v1368_v5, %v8162_v2  ;;  %v1491_v2 = vld [vmem:[%s10072_s2 + $0x198] sm:$0xff] }
 0xcf0   :  { %v1370_v7 = vpop.f32.mrf.mxu1 }
 0xcf1   :  { %v1371_v11 = vadd.f32 %v1370_v7, %v8249_v38  ;;  %v1385_v15 = vadd.f32 %v1379_v10, %v8165_v4  ;;  %v7518_v4 = vld [vmem:[%s10071_s1 + $0xc0] sm:$0xff]  }
 0xcf3   :  { %v1383_v62 = vadd.f32 %v1371_v11, %v8171_v22  ;;  %v1391_v31 = vpack.c.bf16 %v1385_v15, %v1384_v42  ;;  %v1488_v22 = vld [vmem:[%s10072_s2 + $0x180] sm:$0xff]  ;;  %v38_v42 = vld [vmem:[%s10072_s2 + $0x30] sm:$0xff] }
 0xcf5   :  { %v1390_v19 = vpack.c.bf16 %v1383_v62, %v1382_v46  ;;  %v36_v62 = vld [vmem:[%s10072_s2 + $0x20] sm:$0xff] }
 0xcf7   :  { %6891 = vmatprep.mubr.msk.bf16.mxu1 %vm100_vm0, %v1390_v19  ;;  %v39_v19 = vld [vmem:[%s10072_s2 + $0x38] sm:$0xff] }
 0xcf8   :  { %6892 = vmatmul.mubr.msk.bf16.vlgmr.msra.gmra.mxu1 %vm100_vm0, %v1391_v31  ;;  %v1489_v31 = vld [vmem:[%s10072_s2 + $0x188] sm:$0xff] }
 0xcf9   :  { %6907 = vmatprep.mubr.msk.bf16.mxu1 %vm243_vm1, %v7518_v4 }
 0xdb8   :  { %v6893_v3 = vpop.f32.mrf.mxu1 }
 0xdba   :  { %v1444_v9 = vpop.f32.mrf.mxu1 }
 0xdbc   :  { %v6894_v56 = vpop.f32.mrf.mxu1 }
 0xdbd   :  { %v1460_v48 = vpack.c.bf16 %v6894_v56, %v6893_v3  ;;  %v7519_v3 = vld [vmem:[%s10071_s1 + $0xc8] sm:$0xff]  }
 0xdbe   :  { %v1447_v8 = vpop.f32.mrf.mxu1 }
 0xdbf   :  { %v1459_v7 = vpack.c.bf16 %v1447_v8, %v1444_v9  ;;  %1475 = vrot.lane.b32.xlu0 %v1460_v48, %s7659_s9  ;;  %v37_v8 = vld [vmem:[%s10072_s2 + $0x28] sm:$0xff] }
 0xdc1   :  { %1473 = vrot.lane.b32.xlu1 %v1459_v7, %s7659_s9 }
 0xdc3   :  { %1465 = vrot.lane.b32.xlu0 %v1460_v48, %s7660_s10 }
 0xdc5   :  { %1463 = vrot.lane.b32.xlu1 %v1459_v7, %s7660_s10 }
 0xdc7   :  { %1504 = vperm.xlu0 %7489, %v1490_v51  }
 0xdc9   :  { %1509 = vperm.xlu1 %7490, %v1491_v2  }
 0xdcb   :  { %1494 = vperm.xlu0 %7489, %v1488_v22  }
 0xdcd   :  { %1499 = vperm.xlu1 %7490, %v1489_v31  }
 0xdcf   :  { %72 = vperm.xlu0 %7489, %v38_v42  }
 0xdd1   :  { %77 = vperm.xlu1 %7490, %v39_v19  }
 0xdd3   :  { %62 = vperm.xlu0 %7489, %v36_v62  }
 0xdd5   :  { %67 = vperm.xlu1 %7490, %v37_v8  }
 0xe31   :  { %v1476_v5 = vpop.permute.xlu0 %1475 }
 0xe32   :  { %7437 = vmatprep.subr.msk.bf16.mxu1 %vm1477_vm11, %v1476_v5  ;;  %v1482_v10 = vsel %vm1477_vm11, %v1476_v5, 0 }
 0xe33   :  { %6896 = vmatpush3.bf16.msra.mxu1 %v1482_v10  ;;  %v1474_v33 = vpop.permute.xlu1 %1473 }
 0xe34   :  { %7438 = vmatprep.subr.msk.bf16.mxu1 %vm1477_vm11, %v1474_v33  ;;  %v1479_v11 = vsel %vm1477_vm11, %v1474_v33, 0 }
 0xe35   :  { %v1466_v15 = vpop.permute.xlu0 %1465 }
 0xe37   :  { %6898 = vmatpush3.bf16.msra.mxu1 %v1479_v11  ;;  %v1464_v46 = vpop.permute.xlu1 %1463 }
 0xe38   :  { %6899 = vmatprep.subr.bf16.mxu1 %v1460_v48 }
 0xe3b   :  { %6900 = vmatpush3.bf16.msra.mxu1 %v1460_v48 }
 0xe3c   :  { %6901 = vmatprep.subr.bf16.mxu1 %v1459_v7 }
 0xe3f   :  { %6902 = vmatpush3.bf16.msra.mxu1 %v1459_v7 }
 0xe40   :  { %6903 = vmatprep.subr.msk.bf16.mxu1 %vm7762_vm4, %v1466_v15 }
 0xe42   :  { %v8317_v9 = vpop.permute.xlu0 %1504 }
 0xe43   :  { %6904 = vmatpush3.bf16.msk.msra.mxu1 %vm7762_vm4, %v1466_v15  ;;  %10172 = vst [vmem:[#allocation15_spill] sm:$0xff] %v8317_v9 }
 0xe44   :  { %6905 = vmatprep.subr.msk.bf16.mxu1 %vm7762_vm4, %v1464_v46  ;;  %v8315_v48 = vpop.permute.xlu1 %1509 }
 0xe45   :  { %10171 = vst [vmem:[#allocation14_spill] sm:$0xff] %v8315_v48 }
 0xe46   :  { %v8321_v7 = vpop.permute.xlu0 %1494 }
 0xe47   :  { %6906 = vmatpush3.bf16.msk.msra.mxu1 %vm7762_vm4, %v1464_v46  ;;  %10174 = vst [vmem:[#allocation17_spill] sm:$0xff] %v8321_v7 }
 0xe48   :  { %v8319_v56 = vpop.permute.xlu1 %1499 }
 0xe49   :  { %10173 = vst [vmem:[#allocation16_spill] sm:$0xff] %v8319_v56 }
 0xe4a   :  { %6908 = vmatmul.mubr.msk.bf16.vlgmr.msra.gmra.mxu1 %vm243_vm1, %v7519_v3  ;;  %v8327_v19 = vpop.permute.xlu0 %72 }
 0xe4b   :  { %v172_v3 = vadd.f32 %v7874_v23, %v8327_v19  ;;  %v1607_v23 = vld [vmem:[%s10072_s2 + $0x1b0] sm:$0xff] }
 0xe4c   :  { %v8323_v4 = vpop.permute.xlu1 %77 }
 0xe4d   :  { %v175_v15 = vadd.f32 %v7878_v25, %v8323_v4  ;;  %v7520_v25 = vld [vmem:[%s10071_s1 + $0xd0] sm:$0xff]  }
 0xe4e   :  { %v8337_v46 = vpop.permute.xlu0 %62  ;;  %6923 = vmatprep.mubr.msk.bf16.mxu0 %vm243_vm1, %v7520_v25 }
 0xe4f   :  { %10176 = vst [vmem:[#allocation19_spill] sm:$0xff] %v8337_v46 }
 0xe50   :  { %v8332_v11 = vpop.permute.xlu1 %67 }
 0xe51   :  { %10175 = vst [vmem:[#allocation18_spill] sm:$0xff] %v8332_v11 }
 0xf0a   :  { %v6909_v51 = vpop.f32.mrf.mxu1 }
 0xf0b   :  { %v1571_v31 = vadd.f32 %v6909_v51, %v8317_v9  ;;  %v167_v51 = vadd.f32 %v7882_v27, %v8332_v11  ;;  %v1605_v27 = vld [vmem:[%s10072_s2 + $0x1a0] sm:$0xff] }
 0xf0c   :  { %v1562_v2 = vpop.f32.mrf.mxu1 }
 0xf0d   :  { %v1563_v8 = vadd.f32 %v1562_v2, %v8321_v7  ;;  %v1773_v2 = vpack.c.bf16 %v175_v15, %v172_v3  ;;  %v1801_v15 = vld [vmem:[%s10072_s2 + $0x1d0] sm:$0xff] }
 0xf0e   :  { %v6910_v22 = vpop.f32.mrf.mxu1 }
 0xf0f   :  { %v1574_v42 = vadd.f32 %v6910_v22, %v8315_v48  ;;  %v164_v22 = vadd.f32 %v7876_v24, %v8337_v46  ;;  %v1608_v24 = vld [vmem:[%s10072_s2 + $0x1b8] sm:$0xff] }
 0xf10   :  { %v1565_v62 = vpop.f32.mrf.mxu1 }
 0xf11   :  { %v1578_v5 = vpack.c.bf16 %v1574_v42, %v1571_v31  ;;  %v1566_v10 = vadd.f32 %v1565_v62, %v8319_v56  ;;  %v1772_v31 = vpack.c.bf16 %v167_v51, %v164_v22  ;;  %v1606_v42 = vld [vmem:[%s10072_s2 + $0x1a8] sm:$0xff]  ;;  %v1802_v62 = vld [vmem:[%s10072_s2 + $0x1d8] sm:$0xff] }
 0xf13   :  { %v1577_v33 = vpack.c.bf16 %v1566_v10, %v1563_v8  ;;  %1593 = vrot.lane.b32.xlu0 %v1578_v5, %s7659_s9  ;;  %v1803_v8 = vld [vmem:[%s10072_s2 + $0x1e0] sm:$0xff]  ;;  %v1800_v10 = vld [vmem:[%s10072_s2 + $0x1c8] sm:$0xff] }
 0xf15   :  { %1591 = vrot.lane.b32.xlu1 %v1577_v33, %s7659_s9 }
 0xf17   :  { %1583 = vrot.lane.b32.xlu0 %v1578_v5, %s7660_s10 }
 0xf19   :  { %1581 = vrot.lane.b32.xlu1 %v1577_v33, %s7660_s10 }
 0xf1b   :  { %1788 = vrot.lane.b32.xlu0 %v1773_v2, %s7659_s9 }
 0xf1d   :  { %1786 = vrot.lane.b32.xlu1 %v1772_v31, %s7659_s9 }
 0xf1f   :  { %1778 = vrot.lane.b32.xlu0 %v1773_v2, %s7660_s10 }
 0xf21   :  { %1776 = vrot.lane.b32.xlu1 %v1772_v31, %s7660_s10 }
 0xf23   :  { %1621 = vperm.xlu0 %7489, %v1607_v23  }
 0xf25   :  { %1626 = vperm.xlu1 %7490, %v1608_v24  }
 0xf27   :  { %1611 = vperm.xlu0 %7489, %v1605_v27   ;;  %v7521_v27 = vld [vmem:[%s10071_s1 + $0xd8] sm:$0xff]  }
 0xf29   :  { %1616 = vperm.xlu1 %7490, %v1606_v42  }
 0xf2b   :  { %1816 = vperm.xlu0 %7489, %v1802_v62  }
 0xf2d   :  { %1821 = vperm.xlu1 %7490, %v1803_v8  }
 0xf2f   :  { %1806 = vperm.xlu0 %7489, %v1800_v10  }
 0xf31   :  { %1811 = vperm.xlu1 %7490, %v1801_v15  }
 0xf85   :  { %v1594_v3 = vpop.permute.xlu0 %1593 }
 0xf86   :  { %7439 = vmatprep.subr.msk.bf16.mxu0 %vm1477_vm11, %v1594_v3  ;;  %v1599_v51 = vsel %vm1477_vm11, %v1594_v3, 0  ;;  %v7523_v3 = vld [vmem:[%s10071_s1 + $0xec] sm:$0xff]  }
 0xf87   :  { %6912 = vmatpush3.bf16.msra.mxu0 %v1599_v51  ;;  %v1592_v22 = vpop.permute.xlu1 %1591 }
 0xf88   :  { %7440 = vmatprep.subr.msk.bf16.mxu0 %vm1477_vm11, %v1592_v22  ;;  %v1596_v25 = vsel %vm1477_vm11, %v1592_v22, 0 }
 0xf89   :  { %v1584_v23 = vpop.permute.xlu0 %1583 }
 0xf8b   :  { %6914 = vmatpush3.bf16.msra.mxu0 %v1596_v25  ;;  %v1582_v24 = vpop.permute.xlu1 %1581 }
 0xf8c   :  { %6915 = vmatprep.subr.bf16.mxu0 %v1578_v5 }
 0xf8d   :  { %v1789_v42 = vpop.permute.xlu0 %1788 }
 0xf8f   :  { %6916 = vmatpush3.bf16.msra.mxu0 %v1578_v5  ;;  %v7522_v5 = vld [vmem:[%s10071_s1 + $0xe4] sm:$0xff]   ;;  %v1787_v62 = vpop.permute.xlu1 %1786 }
 0xf90   :  { %6917 = vmatprep.subr.bf16.mxu0 %v1577_v33  ;;  %v1791_v8 = vsel %vm198_vm2, %v1787_v62, 0 }
 0xf91   :  { %v1779_v10 = vpop.permute.xlu0 %1778 }
 0xf93   :  { %6918 = vmatpush3.bf16.msra.mxu0 %v1577_v33  ;;  %v1794_v33 = vsel %vm198_vm2, %v1789_v42, 0  ;;  %v1777_v15 = vpop.permute.xlu1 %1776 }
 0xf94   :  { %6919 = vmatprep.subr.msk.bf16.mxu0 %vm7762_vm4, %v1584_v23 }
 0xf97   :  { %6920 = vmatpush3.bf16.msk.msra.mxu0 %vm7762_vm4, %v1584_v23 }
 0xf98   :  { %6921 = vmatprep.subr.msk.bf16.mxu0 %vm7762_vm4, %v1582_v24 }
 0xf9b   :  { %6922 = vmatpush3.bf16.msk.msra.mxu0 %vm7762_vm4, %v1582_v24 }
 0xf9c   :  { %7441 = vmatprep.subr.msk.bf16.mxu0 %vm198_vm2, %v1789_v42 }
 0xf9e   :  { %6924 = vmatmul.mubr.msk.bf16.vlgmr.msra.gmra.mxu0 %vm243_vm1, %v7521_v27 }
 0xf9f   :  { %6944 = vmatpush3.bf16.msra.mxu0 %v1794_v33  ;;  %6955 = vmatprep.mubr.msk.bf16.mxu0 %vm243_vm1, %v7522_v5 }
 0xfa0   :  { %7442 = vmatprep.subr.msk.bf16.mxu0 %vm198_vm2, %v1787_v62  ;;  %v8418_v51 = vpop.permute.xlu1 %1626 }
 0xfa1   :  { %10178 = vst [vmem:[#allocation21_spill] sm:$0xff] %v8418_v51 }
 0xfa3   :  { %6946 = vmatpush3.bf16.msra.mxu0 %v1791_v8 }
 0xfa4   :  { %6947 = vmatprep.subr.bf16.mxu0 %v1773_v2  ;;  %v8425_v33 = vpop.permute.xlu1 %1616 }
 0xfa5   :  { %10180 = vst [vmem:[#allocation23_spill] sm:$0xff] %v8425_v33 }
 0xfa7   :  { %6948 = vmatpush3.bf16.msra.mxu0 %v1773_v2  ;;  %v8415_v2 = vpop.permute.xlu0 %1621 }
 0xfa8   :  { %6949 = vmatprep.subr.bf16.mxu0 %v1772_v31  ;;  %10177 = vst [vmem:[#allocation20_spill] sm:$0xff] %v8415_v2 }
 0xfab   :  { %6950 = vmatpush3.bf16.msra.mxu0 %v1772_v31  ;;  %v10083_v31 = vmov 0.0   ;;  %v8421_v24 = vpop.permute.xlu0 %1611 }
 0xfac   :  { %6951 = vmatprep.subr.msk.bf16.mxu0 %vm7762_vm4, %v1779_v10  ;;  %6927 = vmatprep.subr.bf16.mxu1 %v10083_v31  ;;  %10179 = vst [vmem:[#allocation22_spill] sm:$0xff] %v8421_v24 }
 0xfaf   :  { %6952 = vmatpush3.bf16.msk.msra.mxu0 %vm7762_vm4, %v1779_v10 }
 0xfb0   :  { %6953 = vmatprep.subr.msk.bf16.mxu0 %vm7762_vm4, %v1777_v15 }
 0xfb3   :  { %6954 = vmatpush3.bf16.msk.msra.mxu0 %vm7762_vm4, %v1777_v15 }
 0xfb6   :  { %6956 = vmatmul.mubr.msk.bf16.vlgmr.msra.gmra.mxu0 %vm243_vm1, %v7523_v3 }
0x105e   :  { %v6925_v22 = vpop.f32.mrf.mxu0 }
0x105f   :  { %v1688_v23 = vadd.f32 %v6925_v22, %v8415_v2 }
0x1060   :  { %v1679_v25 = vpop.f32.mrf.mxu0 }
0x1061   :  { %v1680_v42 = vadd.f32 %v1679_v25, %v8421_v24  ;;  %v1696_v8 = vmax.f32 %v1688_v23, 0.0  ;;  %v8432_v25 = vpop.permute.xlu0 %1816  ;;  %v8436_v23 = vpop.permute.xlu1 %1821 }
0x1062   :  { %v6926_v27 = vpop.f32.mrf.mxu0  ;;  %10181 = vst [vmem:[#allocation24_spill] sm:$0xff] %v8432_v25  ;;  %10183 = vst [vmem:[#allocation25_spill] sm:$0xff] %v8436_v23 }
0x1063   :  { %v1691_v5 = vadd.f32 %v6926_v27, %v8418_v51  ;;  %v1694_v3 = vmax.f32 %v1680_v42, 0.0  ;;  %v10182_v27 = vmov 0.0  }
0x1064   :  { %v1682_v62 = vpop.f32.mrf.mxu0  ;;  %6939 = vmatprep.mubr.msk.bf16.mxu1 %vm7664_vm12, %v10182_v27 }
0x1065   :  { %v1697_v10 = vmax.f32 %v1691_v5, 0.0  ;;  %v1683_v15 = vadd.f32 %v1682_v62, %v8425_v33  ;;  %v8441_v62 = vpop.permute.xlu0 %1806  ;;  %v8450_v33 = vpop.permute.xlu1 %1811 }
0x1066   :  { %10184 = vst [vmem:[#allocation26_spill] sm:$0xff] %v8441_v62  ;;  %10185 = vst [vmem:[#allocation27_spill] sm:$0xff] %v8450_v33 }
0x1067   :  { %v1699_v31 = vpack.c.bf16 %v1697_v10, %v1696_v8  ;;  %v1695_v46 = vmax.f32 %v1683_v15, 0.0 }
0x1069   :  { %1714 = vrot.lane.b32.xlu0 %v1699_v31, %s7659_s9  ;;  %v1698_v22 = vpack.c.bf16 %v1695_v46, %v1694_v3 }
0x106b   :  { %1712 = vrot.lane.b32.xlu1 %v1698_v22, %s7659_s9 }
0x106d   :  { %1704 = vrot.lane.b32.xlu0 %v1699_v31, %s7660_s10 }
0x106f   :  { %1702 = vrot.lane.b32.xlu1 %v1698_v22, %s7660_s10 }
0x1076   :  { %v6957_v42 = vpop.f32.mrf.mxu0 }
0x1077   :  { %v8439_v5 = vadd.f32 %v6957_v42, %v8432_v25 }
0x1078   :  { %v1874_v46 = vpop.f32.mrf.mxu0 }
0x1079   :  { %v8444_v8 = vadd.f32 %v1874_v46, %v8441_v62  ;;  %v10098_v15 = vmax.f32 %v8439_v5, 0.0 }
0x107a   :  { %v6958_v10 = vpop.f32.mrf.mxu0 }
0x107b   :  { %v8448_v3 = vadd.f32 %v6958_v10, %v8436_v23  ;;  %v10097_v24 = vmax.f32 %v8444_v8, 0.0  ;;  %v1895_v46 = vmax.f32 %v10098_v15, 0.0 }
0x107c   :  { %v1877_v51 = vpop.f32.mrf.mxu0 }
0x107d   :  { %v10096_v42 = vmax.f32 %v8448_v3, 0.0  ;;  %v8455_v25 = vadd.f32 %v1877_v51, %v8450_v33  ;;  %v1893_v10 = vmax.f32 %v10097_v24, 0.0  ;;  %v1927_v51 = vld [vmem:[%s10072_s2 + $0x1f8] sm:$0xff] }
0x107f   :  { %v1896_v62 = vmax.f32 %v10096_v42, 0.0  ;;  %v10095_v2 = vmax.f32 %v8455_v25, 0.0 }
0x1081   :  { %v1898_v23 = vpack.c.bf16 %v1896_v62, %v1895_v46  ;;  %v1894_v11 = vmax.f32 %v10095_v2, 0.0  ;;  %v1928_v62 = vld [vmem:[%s10072_s2 + $0x200] sm:$0xff]  ;;  %v1926_v46 = vld [vmem:[%s10072_s2 + $0x1f0] sm:$0xff] }
0x1082   :  { %v2027_v2 = vld [vmem:[%s10072_s2 + $0x220] sm:$0xff] }
0x1083   :  { %v1897_v56 = vpack.c.bf16 %v1894_v11, %v1893_v10  ;;  %1913 = vrot.lane.b32.xlu0 %v1898_v23, %s7661_s27  ;;  %v1925_v11 = vld [vmem:[%s10072_s2 + $0x1e8] sm:$0xff]  ;;  %v2026_v10 = vld [vmem:[%s10072_s2 + $0x218] sm:$0xff] }
0x1085   :  { %1911 = vrot.lane.b32.xlu1 %v1897_v56, %s7661_s27 }
0x1087   :  { %1903 = vrot.lane.b32.xlu0 %v1898_v23, %s7662_s28 }
0x1089   :  { %1901 = vrot.lane.b32.xlu1 %v1897_v56, %s7662_s28 }
0x108b   :  { %1941 = vperm.xlu0 %7489, %v1927_v51   ;;  %v2024_v51 = vld [vmem:[%s10072_s2 + $0x208] sm:$0xff] }
0x108d   :  { %1946 = vperm.xlu1 %7490, %v1928_v62   ;;  %v2025_v62 = vld [vmem:[%s10072_s2 + $0x210] sm:$0xff] }
0x108f   :  { %1931 = vperm.xlu0 %7489, %v1925_v11  }
0x1091   :  { %1936 = vperm.xlu1 %7490, %v1926_v46  }
0x1093   :  { %2040 = vperm.xlu0 %7489, %v2026_v10  }
0x1095   :  { %2045 = vperm.xlu1 %7490, %v2027_v2  }
0x1097   :  { %2030 = vperm.xlu0 %7489, %v2024_v51   ;;  %v1722_v51 = vld [vmem:[%s10071_s1 + $0xe0] sm:$0x3] }
0x1099   :  { %2035 = vperm.xlu1 %7490, %v2025_v62  }
0x10db   :  { %v1715_v11 = vpop.permute.xlu0 %1714 }
0x10dc   :  { %v1720_v42 = vsel %vm1477_vm11, %v1715_v11, 0 }
0x10dd   :  { %6928 = vmatpush3.bf16.msra.mxu1 %v1720_v42  ;;  %v1713_v46 = vpop.permute.xlu1 %1712 }
0x10de   :  { %6929 = vmatprep.subr.bf16.mxu1 %v10182_v27  ;;  %v1717_v10 = vsel %vm1477_vm11, %v1713_v46, 0 }
0x10df   :  { %v1705_v2 = vpop.permute.xlu0 %1704 }
0x10e1   :  { %6930 = vmatpush3.bf16.msra.mxu1 %v1717_v10  ;;  %v1703_v42 = vpop.permute.xlu1 %1702 }
0x10e2   :  { %6931 = vmatprep.subr.bf16.mxu1 %v10182_v27 }
0x10e5   :  { %6932 = vmatpush3.bf16.msra.mxu1 %v1699_v31  ;;  %v7524_v31 = vld [vmem:[%s10071_s1 + $0xf4] sm:$0xff]  }
0x10e6   :  { %6933 = vmatprep.subr.bf16.mxu1 %v10182_v27 }
0x10e9   :  { %6934 = vmatpush3.bf16.msra.mxu1 %v1698_v22 }
0x10ea   :  { %6935 = vmatprep.subr.bf16.mxu1 %v10182_v27 }
0x10ed   :  { %6936 = vmatpush3.bf16.msk.msra.mxu1 %vm7762_vm4, %v1705_v2 }
0x10ee   :  { %6937 = vmatprep.subr.bf16.mxu1 %v10182_v27 }
0x10f1   :  { %6938 = vmatpush3.bf16.msk.msra.mxu1 %vm7762_vm4, %v1703_v42  ;;  %v7525_v42 = vld [vmem:[%s10071_s1 + $0xfc] sm:$0xff]  }
0x10f4   :  { %6940 = vmatmul.mubr.msk.bf16.vlgmr.msra.gmra.mxu1 %vm243_vm1, %v1722_v51 }
0x10f5   :  { %v1914_v22 = vpop.permute.xlu0 %1913  ;;  %6971 = vmatprep.mubr.msk.bf16.mxu1 %vm243_vm1, %v7524_v31 }
0x10f6   :  { %7443 = vmatprep.subr.msk.bf16.mxu1 %vm326_vm5, %v1914_v22  ;;  %v1919_v62 = vsel %vm326_vm5, %v1914_v22, 0 }
0x10f7   :  { %6960 = vmatpush3.bf16.msra.mxu1 %v1919_v62  ;;  %v1912_v11 = vpop.permute.xlu1 %1911 }
0x10f8   :  { %7444 = vmatprep.subr.msk.bf16.mxu1 %vm326_vm5, %v1912_v11  ;;  %v1916_v46 = vsel %vm326_vm5, %v1912_v11, 0 }
0x10f9   :  { %v1904_v10 = vpop.permute.xlu0 %1903 }
0x10fb   :  { %6962 = vmatpush3.bf16.msra.mxu1 %v1916_v46  ;;  %v1902_v2 = vpop.permute.xlu1 %1901 }
0x10fc   :  { %6963 = vmatprep.subr.bf16.mxu1 %v1898_v23 }
0x10ff   :  { %6964 = vmatpush3.bf16.msra.mxu1 %v1898_v23 }
0x1100   :  { %6965 = vmatprep.subr.bf16.mxu1 %v1897_v56 }
0x1103   :  { %6966 = vmatpush3.bf16.msra.mxu1 %v1897_v56  ;;  %v7526_v56 = vld [vmem:[%s10071_s1 + $0x104] sm:$0xff]  }
0x1104   :  { %6967 = vmatprep.subr.msk.bf16.mxu1 %vm7854_vm7, %v1904_v10  ;;  %6979 = vmatprep.mubr.msk.bf16.mxu0 %vm100_vm0, %v7526_v56 }
0x1106   :  { %v8535_v62 = vpop.permute.xlu0 %1941 }
0x1107   :  { %6968 = vmatpush3.bf16.msk.msra.mxu1 %vm7854_vm7, %v1904_v10  ;;  %10186 = vst [vmem:[#allocation28_spill] sm:$0xff] %v8535_v62 }
0x1108   :  { %6969 = vmatprep.subr.msk.bf16.mxu1 %vm7854_vm7, %v1902_v2  ;;  %v8537_v11 = vpop.permute.xlu1 %1946 }
0x1109   :  { %10187 = vst [vmem:[#allocation29_spill] sm:$0xff] %v8537_v11 }
0x110b   :  { %6970 = vmatpush3.bf16.msk.msra.mxu1 %vm7854_vm7, %v1902_v2 }
0x110c   :  { %v8544_v33 = vpop.permute.xlu1 %1936 }
0x110d   :  { %10189 = vst [vmem:[#allocation31_spill] sm:$0xff] %v8544_v33 }
0x110e   :  { %6972 = vmatmul.mubr.msk.bf16.vlgmr.msra.gmra.mxu1 %vm243_vm1, %v7525_v42  ;;  %v8540_v42 = vpop.permute.xlu0 %1931 }
0x110f   :  { %10188 = vst [vmem:[#allocation30_spill] sm:$0xff] %v8540_v42 }
0x11b4   :  { %v8533_v23 = vpop.f32.mrf.mxu1 }
0x11b6   :  { %v6941_v51 = vpop.f32.mrf.mxu1 }
0x11b8   :  { %v1769_v31 = vpop.f32.mrf.mxu1 }
0x11ba   :  { %v6942_v22 = vpop.f32.mrf.mxu1 }
0x11ce   :  { %v6973_v46 = vpop.f32.mrf.mxu1 }
0x11cf   :  { %v2008_v2 = vadd.f32 %v6973_v46, %v8535_v62  ;;  %v7527_v46 = vld [vmem:[%s10071_s1 + $0x10c] sm:$0xff]  }
0x11d0   :  { %v1999_v10 = vpop.f32.mrf.mxu1 }
0x11d1   :  { %v2000_v15 = vadd.f32 %v1999_v10, %v8540_v42  ;;  %v2016_v31 = vmax.f32 %v2008_v2, 0.0  ;;  %v8553_v10 = vpop.permute.xlu1 %2045 }
0x11d2   :  { %v6974_v24 = vpop.f32.mrf.mxu1  ;;  %10191 = vst [vmem:[#allocation33_spill] sm:$0xff] %v8553_v10 }
0x11d3   :  { %v2011_v56 = vadd.f32 %v6974_v24, %v8537_v11  ;;  %v2014_v48 = vmax.f32 %v2000_v15, 0.0  ;;  %v8551_v24 = vpop.permute.xlu0 %2040 }
0x11d4   :  { %v2002_v51 = vpop.f32.mrf.mxu1  ;;  %10190 = vst [vmem:[#allocation32_spill] sm:$0xff] %v8551_v24 }
0x11d5   :  { %v2017_v22 = vmax.f32 %v2011_v56, 0.0  ;;  %v2003_v7 = vadd.f32 %v2002_v51, %v8544_v33 }
0x11d7   :  { %v2019_v9 = vpack.c.bf16 %v2017_v22, %v2016_v31  ;;  %v2015_v38 = vmax.f32 %v2003_v7, 0.0  ;;  %v8556_v56 = vpop.permute.xlu0 %2030  ;;  %v10193_v7 = vmax.f32 %v8439_v5, 0.0  ;;  %v8564_v31 = vpop.permute.xlu1 %2035 }
0x11d8   :  { %10192 = vst [vmem:[#allocation34_spill] sm:$0xff] %v8556_v56  ;;  %10194 = vst [vmem:[#allocation35_spill] sm:$0xff] %v8564_v31 }
0x11d9   :  { %v2018_v39 = vpack.c.bf16 %v2015_v38, %v2014_v48  ;;  %6975 = vmatprep.subr.bf16.mxu0 %v2019_v9 }
0x11da   :  { %6976 = vmatpush3.bf16.msra.mxu0 %v2019_v9 }
0x11db   :  { %6977 = vmatprep.subr.bf16.mxu0 %v2018_v39 }
0x11de   :  { %6978 = vmatpush3.bf16.msra.mxu0 %v2018_v39 }
0x11e1   :  { %6980 = vmatmul.mubr.msk.bf16.vlgmr.msra.gmra.mxu0 %vm100_vm0, %v7527_v46  ;;  %v10195_v46 = vmax.f32 %v8444_v8, 0.0 }
0x12a1   :  { %v6981_v2 = vpop.f32.mrf.mxu0 }
0x12a2   :  { %v2107_v15 = vadd.f32 %v6981_v2, %v8551_v24  ;;  %v10196_v2 = vmax.f32 %v8448_v3, 0.0 }
0x12a3   :  { %v2098_v38 = vpop.f32.mrf.mxu0 }
0x12a4   :  { %v2099_v48 = vadd.f32 %v2098_v38, %v8556_v56  ;;  %v8561_v51 = vadd.f32 %v2107_v15, %v10193_v7  ;;  %v10197_v15 = vmax.f32 %v8455_v25, 0.0  ;;  %v2152_v25 = vld [vmem:[%s10072_s2 + $0x240] sm:$0xff] }
0x12a5   :  { %v6982_v9 = vpop.f32.mrf.mxu0 }
0x12a6   :  { %v2110_v39 = vadd.f32 %v6982_v9, %v8553_v10  ;;  %v8568_v33 = vadd.f32 %v2099_v48, %v10195_v46  ;;  %v2119_v56 = vmax.f32 %v8561_v51, 0.0  ;;  %v2151_v48 = vld [vmem:[%s10072_s2 + $0x238] sm:$0xff]  ;;  %v2248_v46 = vld [vmem:[%s10072_s2 + $0x248] sm:$0xff] }
0x12a7   :  { %v2101_v22 = vpop.f32.mrf.mxu0 }
0x12a8   :  { %v8572_v24 = vadd.f32 %v2110_v39, %v10196_v2  ;;  %v2102_v38 = vadd.f32 %v2101_v22, %v8564_v31  ;;  %v2117_v7 = vmax.f32 %v8568_v33, 0.0  ;;  %v2149_v39 = vld [vmem:[%s10072_s2 + $0x228] sm:$0xff]  ;;  %v2150_v22 = vld [vmem:[%s10072_s2 + $0x230] sm:$0xff] }
0x12a9   :  { %v2249_v2 = vld [vmem:[%s10072_s2 + $0x250] sm:$0xff] }
0x12aa   :  { %v2120_v5 = vmax.f32 %v8572_v24, 0.0  ;;  %v8579_v9 = vadd.f32 %v2102_v38, %v10197_v15  ;;  %v2250_v38 = vld [vmem:[%s10072_s2 + $0x258] sm:$0xff] }
0x12ac   :  { %v2122_v10 = vpack.c.bf16 %v2120_v5, %v2119_v56  ;;  %v2118_v8 = vmax.f32 %v8579_v9, 0.0  ;;  %v7528_v56 = vld [vmem:[%s10071_s1 + $0x114] sm:$0xff]   ;;  %v2251_v5 = vld [vmem:[%s10072_s2 + $0x260] sm:$0xff] }
0x12ad   :  { %6995 = vmatprep.mubr.msk.bf16.mxu0 %vm243_vm1, %v7528_v56 }
0x12ae   :  { %2137 = vrot.lane.b32.xlu0 %v2122_v10, %s7659_s9  ;;  %v2121_v3 = vpack.c.bf16 %v2118_v8, %v2117_v7 }
0x12b0   :  { %2135 = vrot.lane.b32.xlu1 %v2121_v3, %s7659_s9 }
0x12b2   :  { %2127 = vrot.lane.b32.xlu0 %v2122_v10, %s7660_s10 }
0x12b4   :  { %2125 = vrot.lane.b32.xlu1 %v2121_v3, %s7660_s10 }
0x12b6   :  { %2165 = vperm.xlu0 %7489, %v2151_v48  }
0x12b8   :  { %2170 = vperm.xlu1 %7490, %v2152_v25  }
0x12ba   :  { %2155 = vperm.xlu0 %7489, %v2149_v39   ;;  %v7529_v39 = vld [vmem:[%s10071_s1 + $0x11c] sm:$0xff]  }
0x12bc   :  { %2160 = vperm.xlu1 %7490, %v2150_v22  }
0x12be   :  { %2254 = vperm.xlu0 %7489, %v2248_v46  }
0x12c0   :  { %2259 = vperm.xlu1 %7490, %v2249_v2  }
0x12c2   :  { %2264 = vperm.xlu0 %7489, %v2250_v38  }
0x12c4   :  { %2269 = vperm.xlu1 %7490, %v2251_v5  }
0x1320   :  { %v2138_v15 = vpop.permute.xlu0 %2137 }
0x1321   :  { %7445 = vmatprep.subr.msk.bf16.mxu0 %vm198_vm2, %v2138_v15  ;;  %v2143_v7 = vsel %vm198_vm2, %v2138_v15, 0 }
0x1322   :  { %6984 = vmatpush3.bf16.msra.mxu0 %v2143_v7  ;;  %v2136_v8 = vpop.permute.xlu1 %2135 }
0x1323   :  { %7446 = vmatprep.subr.msk.bf16.mxu0 %vm198_vm2, %v2136_v8  ;;  %v2140_v48 = vsel %vm198_vm2, %v2136_v8, 0 }
0x1324   :  { %v2128_v25 = vpop.permute.xlu0 %2127 }
0x1326   :  { %6986 = vmatpush3.bf16.msra.mxu0 %v2140_v48  ;;  %v2126_v56 = vpop.permute.xlu1 %2125 }
0x1327   :  { %6987 = vmatprep.subr.bf16.mxu0 %v2122_v10 }
0x132a   :  { %6988 = vmatpush3.bf16.msra.mxu0 %v2122_v10  ;;  %v7530_v10 = vld [vmem:[%s10071_s1 + $0x124] sm:$0xff]  }
0x132b   :  { %6989 = vmatprep.subr.bf16.mxu0 %v2121_v3  ;;  %7003 = vmatprep.mubr.msk.bf16.mxu1 %vm100_vm0, %v7530_v10 }
0x132e   :  { %6990 = vmatpush3.bf16.msra.mxu0 %v2121_v3 }
0x132f   :  { %6991 = vmatprep.subr.msk.bf16.mxu0 %vm7762_vm4, %v2128_v25 }
0x1331   :  { %v8635_v3 = vpop.permute.xlu0 %2165 }
0x1332   :  { %6992 = vmatpush3.bf16.msk.msra.mxu0 %vm7762_vm4, %v2128_v25  ;;  %10198 = vst [vmem:[#allocation36_spill] sm:$0xff] %v8635_v3 }
0x1333   :  { %6993 = vmatprep.subr.msk.bf16.mxu0 %vm7762_vm4, %v2126_v56  ;;  %v8637_v22 = vpop.permute.xlu1 %2170 }
0x1334   :  { %10199 = vst [vmem:[#allocation37_spill] sm:$0xff] %v8637_v22 }
0x1335   :  { %v8640_v5 = vpop.permute.xlu0 %2155 }
0x1336   :  { %6994 = vmatpush3.bf16.msk.msra.mxu0 %vm7762_vm4, %v2126_v56  ;;  %10200 = vst [vmem:[#allocation38_spill] sm:$0xff] %v8640_v5 }
0x1337   :  { %v8644_v48 = vpop.permute.xlu1 %2160 }
0x1338   :  { %10201 = vst [vmem:[#allocation39_spill] sm:$0xff] %v8644_v48 }
0x1339   :  { %6996 = vmatmul.mubr.msk.bf16.vlgmr.msra.gmra.mxu0 %vm243_vm1, %v7529_v39 }
0x13f9   :  { %v6997_v46 = vpop.f32.mrf.mxu0 }
0x13fa   :  { %v2232_v38 = vadd.f32 %v6997_v46, %v8635_v3  ;;  %v7531_v46 = vld [vmem:[%s10071_s1 + $0x12c] sm:$0xff]  }
0x13fb   :  { %v2223_v2 = vpop.f32.mrf.mxu0 }
0x13fc   :  { %v2224_v7 = vadd.f32 %v2223_v2, %v8640_v5  ;;  %v2240_v56 = vmax.f32 %v2232_v38, 0.0  ;;  %v7532_v2 = vld [vmem:[%s10073_s3 + $0x30] ss:$8 sps:$4 sm:$0xff]   ;;  %v8654_v38 = vpop.permute.xlu1 %2259 }
0x13fd   :  { %v6998_v15 = vpop.f32.mrf.mxu0  ;;  %10202 = vst [vmem:[#allocation40_spill] sm:$0xff] %v8654_v38 }
0x13fe   :  { %v2235_v8 = vadd.f32 %v6998_v15, %v8637_v22  ;;  %v2238_v31 = vmax.f32 %v2224_v7, 0.0  ;;  %v8656_v15 = vpop.permute.xlu0 %2254 }
0x13ff   :  { %v2226_v25 = vpop.f32.mrf.mxu0  ;;  %10203 = vst [vmem:[#allocation41_spill] sm:$0xff] %v8656_v15 }
0x1400   :  { %v2241_v39 = vmax.f32 %v2235_v8, 0.0  ;;  %v2227_v10 = vadd.f32 %v2226_v25, %v8644_v48 }
0x1402   :  { %v2243_v11 = vpack.c.bf16 %v2241_v39, %v2240_v56  ;;  %v2239_v42 = vmax.f32 %v2227_v10, 0.0  ;;  %v8660_v8 = vpop.permute.xlu0 %2264 }
0x1403   :  { %10205 = vst [vmem:[#allocation43_spill] sm:$0xff] %v8660_v8 }
0x1404   :  { %v2242_v62 = vpack.c.bf16 %v2239_v42, %v2238_v31  ;;  %6999 = vmatprep.subr.bf16.mxu1 %v2243_v11  ;;  %v8658_v31 = vpop.permute.xlu1 %2269 }
0x1405   :  { %7000 = vmatpush3.bf16.msra.mxu1 %v2243_v11  ;;  %10204 = vst [vmem:[#allocation42_spill] sm:$0xff] %v8658_v31 }
0x1406   :  { %7001 = vmatprep.subr.bf16.mxu1 %v2242_v62 }
0x1409   :  { %7002 = vmatpush3.bf16.msra.mxu1 %v2242_v62 }
0x140a   :  { %7007 = vmatprep.subr.bf16.mxu1 %v7532_v2 }
0x140c   :  { %7004 = vmatmul.mubr.msk.bf16.vlgmr.msra.gmra.mxu1 %vm100_vm0, %v7531_v46 }
0x140d   :  { %7008 = vmatpush3.bf16.msra.mxu1 %v7532_v2 }
0x14cc   :  { %v7005_v42 = vpop.f32.mrf.mxu1 }
0x14cd   :  { %v2331_v56 = vadd.f32 %v7005_v42, %v8660_v8 }
0x14ce   :  { %v2322_v11 = vpop.f32.mrf.mxu1 }
0x14cf   :  { %v2323_v62 = vadd.f32 %v2322_v11, %v8656_v15  ;;  %v2339_v22 = vadd.f32 %v2331_v56, %v8561_v51  ;;  %v7533_v51 = vld [vmem:[%s10071_s1 + $0x134] sm:$0xff]   ;;  %v7534_v56 = vld [vmem:[%s10071_s1 + $0x13c] sm:$0xff]  }
0x14d0   :  { %v7006_v7 = vpop.f32.mrf.mxu1  ;;  %7025 = vmatprep.mubr.msk.bf16.mxu0 %vm243_vm1, %v7533_v51 }
0x14d1   :  { %v2334_v25 = vadd.f32 %v7006_v7, %v8658_v31  ;;  %v2337_v2 = vadd.f32 %v2323_v62, %v8568_v33  ;;  %v2436_v33 = vld [vmem:[%s10072_s2 + $0x278] sm:$0xff] }
0x14d2   :  { %v2325_v39 = vpop.f32.mrf.mxu1 }
0x14d3   :  { %v2326_v10 = vadd.f32 %v2325_v39, %v8654_v38  ;;  %v2340_v46 = vadd.f32 %v2334_v25, %v8572_v24  ;;  %v2437_v24 = vld [vmem:[%s10072_s2 + $0x280] sm:$0xff] }
0x14d5   :  { %v2338_v48 = vadd.f32 %v2326_v10, %v8579_v9  ;;  %v2344_v3 = vpack.c.bf16 %v2340_v46, %v2339_v22  ;;  %v2434_v9 = vld [vmem:[%s10072_s2 + $0x268] sm:$0xff] }
0x14d7   :  { %v2343_v5 = vpack.c.bf16 %v2338_v48, %v2337_v2 }
0x14d9   :  { %7009 = vmatprep.mubr.msk.bf16.mxu1 %vm763_vm8, %v2343_v5 }
0x14da   :  { %7010 = vmatmul.mubr.msk.bf16.vlgmr.msra.gmra.mxu1 %vm763_vm8, %v2344_v3  ;;  %v2435_v3 = vld [vmem:[%s10072_s2 + $0x270] sm:$0xff] }
0x159a   :  { %v7011_v11 = vpop.f32.mrf.mxu1 }
0x159c   :  { %v2391_v7 = vpop.f32.mrf.mxu1 }
0x159e   :  { %v7012_v42 = vpop.f32.mrf.mxu1 }
0x159f   :  { %v2407_v8 = vpack.c.bf16 %v7012_v42, %v7011_v11 }
0x15a0   :  { %v2394_v31 = vpop.f32.mrf.mxu1 }
0x15a1   :  { %v2406_v39 = vpack.c.bf16 %v2394_v31, %v2391_v7  ;;  %2422 = vrot.lane.b32.xlu0 %v2407_v8, %s7659_s9 }
0x15a3   :  { %2420 = vrot.lane.b32.xlu1 %v2406_v39, %s7659_s9 }
0x15a5   :  { %2412 = vrot.lane.b32.xlu0 %v2407_v8, %s7660_s10 }
0x15a7   :  { %2410 = vrot.lane.b32.xlu1 %v2406_v39, %s7660_s10 }
0x15a9   :  { %2450 = vperm.xlu0 %7489, %v2436_v33  }
0x15ab   :  { %2455 = vperm.xlu1 %7490, %v2437_v24  }
0x15ad   :  { %2440 = vperm.xlu0 %7489, %v2434_v9  }
0x15af   :  { %2445 = vperm.xlu1 %7490, %v2435_v3  }
0x1613   :  { %v2423_v22 = vpop.permute.xlu0 %2422 }
0x1614   :  { %7447 = vmatprep.subr.msk.bf16.mxu0 %vm1477_vm11, %v2423_v22  ;;  %v2428_v5 = vsel %vm1477_vm11, %v2423_v22, 0 }
0x1615   :  { %7014 = vmatpush3.bf16.msra.mxu0 %v2428_v5  ;;  %v2421_v48 = vpop.permute.xlu1 %2420 }
0x1616   :  { %7448 = vmatprep.subr.msk.bf16.mxu0 %vm1477_vm11, %v2421_v48  ;;  %v2425_v31 = vsel %vm1477_vm11, %v2421_v48, 0 }
0x1617   :  { %v2413_v62 = vpop.permute.xlu0 %2412 }
0x1619   :  { %7016 = vmatpush3.bf16.msra.mxu0 %v2425_v31  ;;  %v2411_v25 = vpop.permute.xlu1 %2410 }
0x161a   :  { %7017 = vmatprep.subr.bf16.mxu0 %v2407_v8 }
0x161d   :  { %7018 = vmatpush3.bf16.msra.mxu0 %v2407_v8 }
0x161e   :  { %7019 = vmatprep.subr.bf16.mxu0 %v2406_v39 }
0x1621   :  { %7020 = vmatpush3.bf16.msra.mxu0 %v2406_v39 }
0x1622   :  { %7021 = vmatprep.subr.msk.bf16.mxu0 %vm7762_vm4, %v2413_v62 }
0x1624   :  { %v8708_v8 = vpop.permute.xlu0 %2450 }
0x1625   :  { %7022 = vmatpush3.bf16.msk.msra.mxu0 %vm7762_vm4, %v2413_v62  ;;  %10206 = vst [vmem:[#allocation44_spill] sm:$0xff] %v8708_v8 }
0x1626   :  { %7023 = vmatprep.subr.msk.bf16.mxu0 %vm7762_vm4, %v2411_v25  ;;  %v8710_v10 = vpop.permute.xlu1 %2455 }
0x1627   :  { %10207 = vst [vmem:[#allocation45_spill] sm:$0xff] %v8710_v10 }
0x1628   :  { %v8715_v7 = vpop.permute.xlu0 %2440 }
0x1629   :  { %7024 = vmatpush3.bf16.msk.msra.mxu0 %vm7762_vm4, %v2411_v25  ;;  %10208 = vst [vmem:[#allocation46_spill] sm:$0xff] %v8715_v7  ;;  %v2558_v25 = vld [vmem:[%s10072_s2 + $0x298] sm:$0xff] }
0x162a   :  { %v8723_v24 = vpop.permute.xlu1 %2445 }
0x162b   :  { %10209 = vst [vmem:[#allocation47_spill] sm:$0xff] %v8723_v24 }
0x162c   :  { %7026 = vmatmul.mubr.msk.bf16.vlgmr.msra.gmra.mxu0 %vm243_vm1, %v7534_v56  ;;  %v2559_v56 = vld [vmem:[%s10072_s2 + $0x2a0] sm:$0xff] }
0x16ec   :  { %v7027_v46 = vpop.f32.mrf.mxu0 }
0x16ed   :  { %v8713_v11 = vadd.f32 %v7027_v46, %v8708_v8  ;;  %v7535_v46 = vld [vmem:[%s10071_s1 + $0x144] sm:$0xff]  }
0x16ee   :  { %v2508_v2 = vpop.f32.mrf.mxu0  ;;  %7041 = vmatprep.mubr.msk.bf16.mxu1 %vm243_vm1, %v7535_v46 }
0x16ef   :  { %v8718_v39 = vadd.f32 %v2508_v2, %v8715_v7  ;;  %v2525_v9 = vmax.f32 %v8713_v11, 0.0  ;;  %v2556_v2 = vld [vmem:[%s10072_s2 + $0x288] sm:$0xff] }
0x16f0   :  { %v7028_v42 = vpop.f32.mrf.mxu0 }
0x16f1   :  { %v8721_v33 = vadd.f32 %v7028_v42, %v8710_v10  ;;  %v2523_v5 = vmax.f32 %v8718_v39, 0.0  ;;  %v2557_v42 = vld [vmem:[%s10072_s2 + $0x290] sm:$0xff] }
0x16f2   :  { %v2511_v51 = vpop.f32.mrf.mxu0 }
0x16f3   :  { %v2526_v3 = vmax.f32 %v8721_v33, 0.0  ;;  %v8728_v22 = vadd.f32 %v2511_v51, %v8723_v24  ;;  %v2657_v51 = vld [vmem:[%s10072_s2 + $0x2b8] sm:$0xff] }
0x16f5   :  { %v2528_v48 = vpack.c.bf16 %v2526_v3, %v2525_v9  ;;  %v2524_v31 = vmax.f32 %v8728_v22, 0.0  ;;  %v2658_v9 = vld [vmem:[%s10072_s2 + $0x2c0] sm:$0xff]  ;;  %v2655_v3 = vld [vmem:[%s10072_s2 + $0x2a8] sm:$0xff] }
0x16f7   :  { %v2527_v62 = vpack.c.bf16 %v2524_v31, %v2523_v5  ;;  %2543 = vrot.lane.b32.xlu0 %v2528_v48, %s7661_s27  ;;  %v2656_v5 = vld [vmem:[%s10072_s2 + $0x2b0] sm:$0xff] }
0x16f9   :  { %2541 = vrot.lane.b32.xlu1 %v2527_v62, %s7661_s27 }
0x16fb   :  { %2533 = vrot.lane.b32.xlu0 %v2528_v48, %s7662_s28 }
0x16fd   :  { %2531 = vrot.lane.b32.xlu1 %v2527_v62, %s7662_s28 }
0x16ff   :  { %2572 = vperm.xlu0 %7489, %v2558_v25  }
0x1701   :  { %2577 = vperm.xlu1 %7490, %v2559_v56  }
0x1703   :  { %2562 = vperm.xlu0 %7489, %v2556_v2  }
0x1705   :  { %2567 = vperm.xlu1 %7490, %v2557_v42  }
0x1707   :  { %2671 = vperm.xlu0 %7489, %v2657_v51   ;;  %v7536_v51 = vld [vmem:[%s10071_s1 + $0x14c] sm:$0xff]  }
0x1709   :  { %2676 = vperm.xlu1 %7490, %v2658_v9  }
0x170b   :  { %2661 = vperm.xlu0 %7489, %v2655_v3  }
0x170d   :  { %2666 = vperm.xlu1 %7490, %v2656_v5  }
0x1769   :  { %v2544_v31 = vpop.permute.xlu0 %2543 }
0x176a   :  { %7449 = vmatprep.subr.msk.bf16.mxu1 %vm2545_vm13, %v2544_v31  ;;  %v2550_v25 = vsel %vm2545_vm13, %v2544_v31, 0 }
0x176b   :  { %7030 = vmatpush3.bf16.msra.mxu1 %v2550_v25  ;;  %v2542_v56 = vpop.permute.xlu1 %2541 }
0x176c   :  { %7450 = vmatprep.subr.msk.bf16.mxu1 %vm2545_vm13, %v2542_v56  ;;  %v2547_v46 = vsel %vm2545_vm13, %v2542_v56, 0 }
0x176d   :  { %v2534_v2 = vpop.permute.xlu0 %2533 }
0x176f   :  { %7032 = vmatpush3.bf16.msra.mxu1 %v2547_v46  ;;  %v2532_v42 = vpop.permute.xlu1 %2531 }
0x1770   :  { %7033 = vmatprep.subr.bf16.mxu1 %v2528_v48 }
0x1773   :  { %7034 = vmatpush3.bf16.msra.mxu1 %v2528_v48  ;;  %v7537_v48 = vld [vmem:[%s10071_s1 + $0x154] sm:$0xff]  }
0x1774   :  { %7035 = vmatprep.subr.bf16.mxu1 %v2527_v62  ;;  %7049 = vmatprep.mubr.msk.bf16.mxu0 %vm100_vm0, %v7537_v48 }
0x1777   :  { %7036 = vmatpush3.bf16.msra.mxu1 %v2527_v62 }
0x1778   :  { %7037 = vmatprep.subr.msk.bf16.mxu1 %vm7854_vm7, %v2534_v2 }
0x177a   :  { %v8784_v62 = vpop.permute.xlu0 %2572 }
0x177b   :  { %7038 = vmatpush3.bf16.msk.msra.mxu1 %vm7854_vm7, %v2534_v2  ;;  %10210 = vst [vmem:[#allocation48_spill] sm:$0xff] %v8784_v62 }
0x177c   :  { %7039 = vmatprep.subr.msk.bf16.mxu1 %vm7854_vm7, %v2532_v42  ;;  %v8786_v9 = vpop.permute.xlu1 %2577 }
0x177d   :  { %10211 = vst [vmem:[#allocation49_spill] sm:$0xff] %v8786_v9 }
0x177e   :  { %v8789_v25 = vpop.permute.xlu0 %2562 }
0x177f   :  { %7040 = vmatpush3.bf16.msk.msra.mxu1 %vm7854_vm7, %v2532_v42  ;;  %10212 = vst [vmem:[#allocation50_spill] sm:$0xff] %v8789_v25 }
0x1780   :  { %v8793_v42 = vpop.permute.xlu1 %2567 }
0x1781   :  { %10213 = vst [vmem:[#allocation51_spill] sm:$0xff] %v8793_v42 }
0x1782   :  { %7042 = vmatmul.mubr.msk.bf16.vlgmr.msra.gmra.mxu1 %vm243_vm1, %v7536_v51 }
0x1842   :  { %v7043_v3 = vpop.f32.mrf.mxu1 }
0x1843   :  { %v2639_v31 = vadd.f32 %v7043_v3, %v8784_v62  ;;  %v7538_v3 = vld [vmem:[%s10071_s1 + $0x15c] sm:$0xff]  }
0x1844   :  { %v2630_v5 = vpop.f32.mrf.mxu1 }
0x1845   :  { %v2631_v46 = vadd.f32 %v2630_v5, %v8789_v25  ;;  %v2647_v24 = vmax.f32 %v2639_v31, 0.0  ;;  %v8800_v5 = vpop.permute.xlu0 %2671  ;;  %v8802_v31 = vpop.permute.xlu1 %2676 }
0x1846   :  { %v7044_v56 = vpop.f32.mrf.mxu1  ;;  %10214 = vst [vmem:[#allocation52_spill] sm:$0xff] %v8800_v5  ;;  %10215 = vst [vmem:[#allocation53_spill] sm:$0xff] %v8802_v31 }
0x1847   :  { %v2642_v2 = vadd.f32 %v7044_v56, %v8786_v9  ;;  %v2645_v7 = vmax.f32 %v2631_v46, 0.0 }
0x1848   :  { %v2633_v51 = vpop.f32.mrf.mxu1 }
0x1849   :  { %v2648_v48 = vmax.f32 %v2642_v2, 0.0  ;;  %v2634_v10 = vadd.f32 %v2633_v51, %v8793_v42  ;;  %v8812_v2 = vpop.permute.xlu1 %2666 }
0x184a   :  { %10217 = vst [vmem:[#allocation55_spill] sm:$0xff] %v8812_v2 }
0x184b   :  { %v2650_v8 = vpack.c.bf16 %v2648_v48, %v2647_v24  ;;  %v2646_v38 = vmax.f32 %v2634_v10, 0.0  ;;  %v8805_v24 = vpop.permute.xlu0 %2661 }
0x184c   :  { %10216 = vst [vmem:[#allocation54_spill] sm:$0xff] %v8805_v24 }
0x184d   :  { %v2649_v15 = vpack.c.bf16 %v2646_v38, %v2645_v7  ;;  %7045 = vmatprep.subr.bf16.mxu0 %v2650_v8 }
0x184e   :  { %7046 = vmatpush3.bf16.msra.mxu0 %v2650_v8 }
0x184f   :  { %7047 = vmatprep.subr.bf16.mxu0 %v2649_v15 }
0x1852   :  { %7048 = vmatpush3.bf16.msra.mxu0 %v2649_v15 }
0x1855   :  { %7050 = vmatmul.mubr.msk.bf16.vlgmr.msra.gmra.mxu0 %vm100_vm0, %v7538_v3 }
0x1915   :  { %v7051_v56 = vpop.f32.mrf.mxu0 }
0x1916   :  { %v2738_v46 = vadd.f32 %v7051_v56, %v8800_v5 }
0x1917   :  { %v2729_v38 = vpop.f32.mrf.mxu0 }
0x1918   :  { %v2730_v8 = vadd.f32 %v2729_v38, %v8805_v24  ;;  %v8809_v7 = vadd.f32 %v2738_v46, %v8713_v11 }
0x1919   :  { %v7052_v10 = vpop.f32.mrf.mxu0 }
0x191a   :  { %v2741_v15 = vadd.f32 %v7052_v10, %v8802_v31  ;;  %v8815_v48 = vadd.f32 %v2730_v8, %v8718_v39  ;;  %v2750_v5 = vmax.f32 %v8809_v7, 0.0  ;;  %v2782_v39 = vld [vmem:[%s10072_s2 + $0x2d8] sm:$0xff]  ;;  %v2879_v8 = vld [vmem:[%s10072_s2 + $0x2e8] sm:$0xff] }
0x191b   :  { %v2732_v51 = vpop.f32.mrf.mxu0 }
0x191c   :  { %v8818_v3 = vadd.f32 %v2741_v15, %v8721_v33  ;;  %v2733_v56 = vadd.f32 %v2732_v51, %v8812_v2  ;;  %v2748_v46 = vmax.f32 %v8815_v48, 0.0  ;;  %v2783_v33 = vld [vmem:[%s10072_s2 + $0x2e0] sm:$0xff]  ;;  %v2880_v15 = vld [vmem:[%s10072_s2 + $0x2f0] sm:$0xff]  ;;  %v2881_v51 = vld [vmem:[%s10072_s2 + $0x2f8] sm:$0xff] }
0x191e   :  { %v2751_v38 = vmax.f32 %v8818_v3, 0.0  ;;  %v8824_v11 = vadd.f32 %v2733_v56, %v8728_v22  ;;  %v7539_v22 = vld [vmem:[%s10071_s1 + $0x164] sm:$0xff]  }
0x191f   :  { %7065 = vmatprep.mubr.msk.bf16.mxu1 %vm243_vm1, %v7539_v22  ;;  %v2882_v56 = vld [vmem:[%s10072_s2 + $0x300] sm:$0xff] }
0x1920   :  { %v2753_v10 = vpack.c.bf16 %v2751_v38, %v2750_v5  ;;  %v2749_v31 = vmax.f32 %v8824_v11, 0.0  ;;  %v2780_v5 = vld [vmem:[%s10072_s2 + $0x2c8] sm:$0xff] }
0x1922   :  { %v2752_v24 = vpack.c.bf16 %v2749_v31, %v2748_v46  ;;  %2768 = vrot.lane.b32.xlu0 %v2753_v10, %s7659_s9  ;;  %v2781_v31 = vld [vmem:[%s10072_s2 + $0x2d0] sm:$0xff] }
0x1924   :  { %2766 = vrot.lane.b32.xlu1 %v2752_v24, %s7659_s9 }
0x1926   :  { %2758 = vrot.lane.b32.xlu0 %v2753_v10, %s7660_s10 }
0x1928   :  { %2756 = vrot.lane.b32.xlu1 %v2752_v24, %s7660_s10 }
0x192a   :  { %2796 = vperm.xlu0 %7489, %v2782_v39  }
0x192c   :  { %2801 = vperm.xlu1 %7490, %v2783_v33  }
0x192e   :  { %2786 = vperm.xlu0 %7489, %v2780_v5  }
0x1930   :  { %2791 = vperm.xlu1 %7490, %v2781_v31   ;;  %v7540_v31 = vld [vmem:[%s10071_s1 + $0x16c] sm:$0xff]  }
0x1932   :  { %2885 = vperm.xlu0 %7489, %v2879_v8  }
0x1934   :  { %2890 = vperm.xlu1 %7490, %v2880_v15  }
0x1936   :  { %2895 = vperm.xlu0 %7489, %v2881_v51  }
0x1938   :  { %2900 = vperm.xlu1 %7490, %v2882_v56  }
0x1994   :  { %v2769_v38 = vpop.permute.xlu0 %2768 }
0x1995   :  { %7451 = vmatprep.subr.msk.bf16.mxu1 %vm1477_vm11, %v2769_v38  ;;  %v2774_v46 = vsel %vm1477_vm11, %v2769_v38, 0 }
0x1996   :  { %7054 = vmatpush3.bf16.msra.mxu1 %v2774_v46  ;;  %v2767_v39 = vpop.permute.xlu1 %2766 }
0x1997   :  { %7452 = vmatprep.subr.msk.bf16.mxu1 %vm1477_vm11, %v2767_v39  ;;  %v2771_v33 = vsel %vm1477_vm11, %v2767_v39, 0 }
0x1998   :  { %v2759_v22 = vpop.permute.xlu0 %2758 }
0x199a   :  { %7056 = vmatpush3.bf16.msra.mxu1 %v2771_v33  ;;  %v2757_v5 = vpop.permute.xlu1 %2756 }
0x199b   :  { %7057 = vmatprep.subr.bf16.mxu1 %v2753_v10 }
0x199e   :  { %7058 = vmatpush3.bf16.msra.mxu1 %v2753_v10  ;;  %v7541_v10 = vld [vmem:[%s10071_s1 + $0x174] sm:$0xff]  }
0x199f   :  { %7059 = vmatprep.subr.bf16.mxu1 %v2752_v24  ;;  %7073 = vmatprep.mubr.msk.bf16.mxu0 %vm100_vm0, %v7541_v10 }
0x19a2   :  { %7060 = vmatpush3.bf16.msra.mxu1 %v2752_v24  ;;  %v10218_v24 = vmov 0  }
0x19a3   :  { %7061 = vmatprep.subr.msk.bf16.mxu1 %vm7762_vm4, %v2759_v22 }
0x19a5   :  { %v8881_v8 = vpop.permute.xlu0 %2796 }
0x19a6   :  { %7062 = vmatpush3.bf16.msk.msra.mxu1 %vm7762_vm4, %v2759_v22  ;;  %10219 = vst [vmem:[#allocation56_spill] sm:$0xff] %v8881_v8 }
0x19a7   :  { %7063 = vmatprep.subr.msk.bf16.mxu1 %vm7762_vm4, %v2757_v5  ;;  %v8883_v15 = vpop.permute.xlu1 %2801 }
0x19a8   :  { %10220 = vst [vmem:[#allocation57_spill] sm:$0xff] %v8883_v15 }
0x19a9   :  { %v8886_v46 = vpop.permute.xlu0 %2786 }
0x19aa   :  { %7064 = vmatpush3.bf16.msk.msra.mxu1 %vm7762_vm4, %v2757_v5  ;;  %10221 = vst [vmem:[#allocation58_spill] sm:$0xff] %v8886_v46 }
0x19ab   :  { %v8890_v5 = vpop.permute.xlu1 %2791 }
0x19ac   :  { %10222 = vst [vmem:[#allocation59_spill] sm:$0xff] %v8890_v5 }
0x19ad   :  { %7066 = vmatmul.mubr.msk.bf16.vlgmr.msra.gmra.mxu1 %vm243_vm1, %v7540_v31 }
0x19ae   :  { %3205 = vmatprep.mubr.bf16.mxu1 %v10218_v24 }
0x1a6d   :  { %v7067_v51 = vpop.f32.mrf.mxu1 }
0x1a6e   :  { %v2863_v38 = vadd.f32 %v7067_v51, %v8881_v8  ;;  %v7545_v51 = vld [vmem:[%s10073_s3 + $0x74] ss:$8 sps:$4 sm:$0xff]  }
0x1a6f   :  { %v2854_v56 = vpop.f32.mrf.mxu1 }
0x1a70   :  { %v2855_v33 = vadd.f32 %v2854_v56, %v8886_v46  ;;  %v2871_v2 = vmax.f32 %v2863_v38, 0.0  ;;  %v7542_v56 = vld [vmem:[%s10071_s1 + $0x17c] sm:$0xff]   ;;  %v7543_v38 = vld [vmem:[%s10073_s3 + $0x70] ss:$8 sps:$4 sm:$0xff]  }
0x1a71   :  { %v7068_v39 = vpop.f32.mrf.mxu1 }
0x1a72   :  { %v2866_v22 = vadd.f32 %v7068_v39, %v8883_v15  ;;  %v2869_v9 = vmax.f32 %v2855_v33, 0.0 }
0x1a73   :  { %v2857_v31 = vpop.f32.mrf.mxu1 }
0x1a74   :  { %v2872_v10 = vmax.f32 %v2866_v22, 0.0  ;;  %v2858_v42 = vadd.f32 %v2857_v31, %v8890_v5  ;;  %v8922_v22 = vpop.permute.xlu0 %2885  ;;  %v8924_v31 = vpop.permute.xlu1 %2890 }
0x1a75   :  { %10223 = vst [vmem:[#allocation60_spill] sm:$0xff] %v8922_v22  ;;  %10224 = vst [vmem:[#allocation61_spill] sm:$0xff] %v8924_v31 }
0x1a76   :  { %v2874_v25 = vpack.c.bf16 %v2872_v10, %v2871_v2  ;;  %v2870_v62 = vmax.f32 %v2858_v42, 0.0  ;;  %v7554_v42 = vld [vmem:[%s10073_s3 + $0x44] ss:$8 sps:$4 sm:$0xff]   ;;  %v7552_v2 = vld [vmem:[%s10073_s3 + $0x40] ss:$8 sps:$4 sm:$0xff]  }
0x1a78   :  { %v2873_v61 = vpack.c.bf16 %v2870_v62, %v2869_v9  ;;  %7069 = vmatprep.subr.bf16.mxu0 %v2874_v25  ;;  %v7548_v62 = vld [vmem:[%s10073_s3 + $0x64] ss:$8 sps:$4 sm:$0xff]   ;;  %v7546_v9 = vld [vmem:[%s10073_s3 + $0x60] ss:$8 sps:$4 sm:$0xff]  }
0x1a79   :  { %7070 = vmatpush3.bf16.msra.mxu0 %v2874_v25  ;;  %v7549_v25 = vld [vmem:[%s10073_s3 + $0x50] ss:$8 sps:$4 sm:$0xff]  }
0x1a7a   :  { %7071 = vmatprep.subr.bf16.mxu0 %v2873_v61 }
0x1a7d   :  { %7072 = vmatpush3.bf16.msra.mxu0 %v2873_v61  ;;  %v7551_v61 = vld [vmem:[%s10073_s3 + $0x54] ss:$8 sps:$4 sm:$0xff]  }
0x1a7e   :  { %3037 = vmatprep.subr.bf16.mxu0 %v7545_v51 }
0x1a80   :  { %7074 = vmatmul.mubr.msk.bf16.vlgmr.msra.gmra.mxu0 %vm100_vm0, %v7542_v56 }
0x1a81   :  { %3038 = vmatpush1.bf16.msra.mxu0 %v7543_v38  ;;  %3061 = vmatprep.mubr.bf16.mxu0 %v10218_v24 }
0x1a82   :  { %3039 = vmatprep.subr.bf16.mxu0 %v7548_v62 }
0x1a85   :  { %3040 = vmatpush1.bf16.msra.mxu0 %v7546_v9 }
0x1a86   :  { %3041 = vmatprep.subr.bf16.mxu0 %v7551_v61  ;;  %v8930_v61 = vpop.permute.xlu1 %2900 }
0x1a87   :  { %10225 = vst [vmem:[#allocation62_spill] sm:$0xff] %v8930_v61 }
0x1a89   :  { %3042 = vmatpush1.bf16.msra.mxu0 %v7549_v25 }
0x1a8a   :  { %3043 = vmatprep.subr.bf16.mxu0 %v7554_v42 }
0x1a8d   :  { %3044 = vmatpush1.bf16.msra.mxu0 %v7552_v2  ;;  %v8933_v2 = vpop.permute.xlu0 %2895 }
0x1a8e   :  { %10226 = vst [vmem:[#allocation63_spill] sm:$0xff] %v8933_v2 }
0x1b40   :  { %v7075_v39 = vpop.f32.mrf.mxu0 }
0x1b41   :  { %v2962_v5 = vadd.f32 %v7075_v39, %v8933_v2 }
0x1b42   :  { %v2953_v33 = vpop.f32.mrf.mxu0 }
0x1b43   :  { %v2954_v51 = vadd.f32 %v2953_v33, %v8922_v22 }
0x1b44   :  { %v7076_v10 = vpop.f32.mrf.mxu0 }
0x1b45   :  { %v2968_v62 = vadd.f32 %v2954_v51, %v8815_v48  ;;  %v2965_v25 = vadd.f32 %v7076_v10, %v8930_v61  ;;  %v2970_v48 = vadd.f32 %v2962_v5, %v8809_v7  ;;  %v3135_v5 = vld [vmem:[%s10072_s2 + $0x318] sm:$0xff] }
0x1b46   :  { %v2956_v56 = vpop.f32.mrf.mxu0 }
0x1b47   :  { %v2957_v38 = vadd.f32 %v2956_v56, %v8924_v31  ;;  %v2971_v33 = vadd.f32 %v2965_v25, %v8818_v3  ;;  %v3136_v25 = vld [vmem:[%s10072_s2 + $0x320] sm:$0xff] }
0x1b49   :  { %v2969_v9 = vadd.f32 %v2957_v38, %v8824_v11  ;;  %v2981_v51 = vpack.c.bf16 %v2971_v33, %v2970_v48  ;;  %v3133_v33 = vld [vmem:[%s10072_s2 + $0x308] sm:$0xff]  ;;  %v3134_v48 = vld [vmem:[%s10072_s2 + $0x310] sm:$0xff] }
0x1b4b   :  { %v2980_v42 = vpack.c.bf16 %v2969_v9, %v2968_v62 }
0x1b4d   :  { %6168 = vmatmul.mubr.msk.bf16.vlgmr.msra.gmra.mxu0 %vm3022_vm14, %v2980_v42 }
0x1b4e   :  { %3071 = vmatprep.mubr.bf16.mxu0 %v10218_v24 }
0x1b55   :  { %6169 = vmatmul.mubr.msk.bf16.gmra.mxu0 %vm3022_vm14, %v2981_v51 }
0x1b56   :  { %3346 = vmatprep.mubr.bf16.mxu0 %v10218_v24 }
0x1c0d   :  { %v3063_v11 = vpop.f32.mrf.mxu0 }
0x1c0f   :  { %v3065_v10 = vpop.f32.mrf.mxu0 }
0x1c11   :  { %v3067_v56 = vpop.f32.mrf.mxu0 }
0x1c12   :  { %v3082_v3 = vpack.c.bf16 %v3067_v56, %v3063_v11 }
0x1c13   :  { %v3069_v38 = vpop.f32.mrf.mxu0 }
0x1c14   :  { %v3083_v7 = vpack.c.bf16 %v3069_v38, %v3065_v10 }
0x1c15   :  { %v3073_v62 = vpop.f32.mrf.mxu0 }
0x1c17   :  { %v3075_v9 = vpop.f32.mrf.mxu0 }
0x1c19   :  { %v3077_v39 = vpop.f32.mrf.mxu0 }
0x1c1a   :  { %v3084_v2 = vpack.c.bf16 %v3077_v39, %v3073_v62 }
0x1c1b   :  { %v3079_v42 = vpop.f32.mrf.mxu0 }
0x1c1c   :  { %v3085_v61 = vpack.c.bf16 %v3079_v42, %v3075_v9  ;;  %3113 = vrot.lane.b32.xlu0 %v3084_v2, %s7659_s9 }
0x1c1e   :  { %3115 = vrot.lane.b32.xlu1 %v3085_v61, %s7659_s9 }
0x1c20   :  { %3109 = vrot.lane.b32.xlu0 %v3082_v3, %s7659_s9 }
0x1c22   :  { %3111 = vrot.lane.b32.xlu1 %v3083_v7, %s7659_s9 }
0x1c24   :  { %3094 = vrot.lane.b32.xlu0 %v3084_v2, %s7660_s10 }
0x1c26   :  { %3096 = vrot.lane.b32.xlu1 %v3085_v61, %s7660_s10 }
0x1c28   :  { %3090 = vrot.lane.b32.xlu0 %v3082_v3, %s7660_s10 }
0x1c2a   :  { %3092 = vrot.lane.b32.xlu1 %v3083_v7, %s7660_s10 }
0x1c2c   :  { %3149 = vperm.xlu0 %7489, %v3135_v5  }
0x1c2e   :  { %3154 = vperm.xlu1 %7490, %v3136_v25  }
0x1c30   :  { %3139 = vperm.xlu0 %7489, %v3133_v33  }
0x1c32   :  { %3144 = vperm.xlu1 %7490, %v3134_v48  }
0x1c8e   :  { %v3114_v51 = vpop.permute.xlu0 %3113 }
0x1c90   :  { %v3116_v11 = vpop.permute.xlu1 %3115 }
0x1c91   :  { %6172 = vmatprep.subr.msk.bf16.mxu1 %vm3117_vm15, %v3116_v11  ;;  %v3119_v10 = vsel %vm3117_vm15, %v3114_v51, %v3116_v11 }
0x1c92   :  { %3178 = vmatpush1.bf16.msra.mxu1 %v3119_v10  ;;  %v3110_v56 = vpop.permute.xlu0 %3109 }
0x1c94   :  { %v3112_v38 = vpop.permute.xlu1 %3111 }
0x1c95   :  { %6173 = vmatprep.subr.msk.bf16.mxu1 %vm3117_vm15, %v3112_v38  ;;  %v3118_v62 = vsel %vm3117_vm15, %v3110_v56, %v3112_v38 }
0x1c96   :  { %3180 = vmatpush1.bf16.msra.mxu1 %v3118_v62  ;;  %v3095_v39 = vpop.permute.xlu0 %3094 }
0x1c97   :  { %3181 = vmatprep.subr.bf16.mxu1 %v3085_v61  ;;  %v7555_v61 = vld [vmem:[%s10071_s1 + $0x184] sm:$0xff]  }
0x1c98   :  { %v3097_v9 = vpop.permute.xlu1 %3096 }
0x1c99   :  { %v3100_v42 = vsel %vm10154_vm3, %v3095_v39, %v3097_v9 }
0x1c9a   :  { %3182 = vmatpush1.bf16.msra.mxu1 %v3084_v2  ;;  %v3091_v25 = vpop.permute.xlu0 %3090  ;;  %v7556_v2 = vld [vmem:[%s10071_s1 + $0x18c] sm:$0xff]  }
0x1c9b   :  { %3183 = vmatprep.subr.bf16.mxu1 %v3083_v7 }
0x1c9c   :  { %v3093_v5 = vpop.permute.xlu1 %3092 }
0x1c9d   :  { %v3099_v33 = vsel %vm10154_vm3, %v3091_v25, %v3093_v5 }
0x1c9e   :  { %3184 = vmatpush1.bf16.msra.mxu1 %v3082_v3 }
0x1c9f   :  { %3185 = vmatprep.subr.bf16.mxu1 %v3100_v42 }
0x1ca2   :  { %6175 = vmatpush1.bf16.msk.msra.mxu1 %vm7762_vm4, %v3095_v39 }
0x1ca3   :  { %3187 = vmatprep.subr.bf16.mxu1 %v3099_v33 }
0x1ca6   :  { %6177 = vmatpush1.bf16.msk.msra.mxu1 %vm7762_vm4, %v3091_v25 }
0x1ca7   :  { %v8984_v56 = vpop.permute.xlu0 %3149 }
0x1ca8   :  { %10228 = vst [vmem:[#allocation65_spill] sm:$0xff] %v8984_v56 }
0x1ca9   :  { %6178 = vmatmul.mubr.msk.bf16.vlgmr.msra.gmra.mxu1 %vm243_vm1, %v7555_v61  ;;  %v8982_v11 = vpop.permute.xlu1 %3154 }
0x1caa   :  { %3215 = vmatprep.mubr.bf16.mxu1 %v10218_v24  ;;  %10227 = vst [vmem:[#allocation64_spill] sm:$0xff] %v8982_v11 }
0x1cab   :  { %v8993_v31 = vpop.permute.xlu0 %3139 }
0x1cac   :  { %10230 = vst [vmem:[#allocation67_spill] sm:$0xff] %v8993_v31 }
0x1cad   :  { %v8988_v42 = vpop.permute.xlu1 %3144 }
0x1cae   :  { %10229 = vst [vmem:[#allocation66_spill] sm:$0xff] %v8988_v42 }
0x1cb1   :  { %6179 = vmatmul.mubr.msk.bf16.gmra.mxu1 %vm243_vm1, %v7556_v2 }
0x1cb2   :  { %3461 = vmatprep.mubr.bf16.mxu1 %v10218_v24 }
0x1d69   :  { %v3207_v3 = vpop.f32.mrf.mxu1 }
0x1d6a   :  { %v3208_v22 = vadd.f32 %v3207_v3, %v8993_v31  ;;  %v3276_v3 = vld [vmem:[%s10072_s2 + $0x338] sm:$0xff] }
0x1d6b   :  { %v3209_v7 = vpop.f32.mrf.mxu1 }
0x1d6d   :  { %v3211_v48 = vpop.f32.mrf.mxu1 }
0x1d6e   :  { %v3212_v25 = vadd.f32 %v3211_v48, %v8988_v42 }
0x1d6f   :  { %v3213_v51 = vpop.f32.mrf.mxu1 }
0x1d70   :  { %v3214_v15 = vadd.f32 %v3213_v51, %v8988_v42 }
0x1d71   :  { %v3217_v10 = vpop.f32.mrf.mxu1 }
0x1d72   :  { %v3218_v9 = vadd.f32 %v3217_v10, %v8984_v56  ;;  %v3210_v10 = vadd.f32 %v3209_v7, %v8993_v31  ;;  %v3275_v7 = vld [vmem:[%s10072_s2 + $0x330] sm:$0xff] }
0x1d73   :  { %v3219_v38 = vpop.f32.mrf.mxu1 }
0x1d74   :  { %v3220_v33 = vadd.f32 %v3219_v38, %v8984_v56  ;;  %v3227_v48 = vpack.c.bf16 %v3214_v15, %v3210_v10  ;;  %v3277_v15 = vld [vmem:[%s10072_s2 + $0x340] sm:$0xff] }
0x1d75   :  { %v3221_v62 = vpop.f32.mrf.mxu1 }
0x1d76   :  { %v3222_v39 = vadd.f32 %v3221_v62, %v8982_v11  ;;  %v3226_v62 = vpack.c.bf16 %v3212_v25, %v3208_v22  ;;  %v3274_v22 = vld [vmem:[%s10072_s2 + $0x328] sm:$0xff] }
0x1d77   :  { %v3223_v5 = vpop.f32.mrf.mxu1 }
0x1d78   :  { %v3228_v61 = vpack.c.bf16 %v3222_v39, %v3218_v9  ;;  %v3224_v2 = vadd.f32 %v3223_v5, %v8982_v11 }
0x1d7a   :  { %v3229_v46 = vpack.c.bf16 %v3224_v2, %v3220_v33  ;;  %3256 = vrot.lane.b32.xlu0 %v3228_v61, %s7659_s9 }
0x1d7c   :  { %3258 = vrot.lane.b32.xlu1 %v3229_v46, %s7659_s9 }
0x1d7e   :  { %3252 = vrot.lane.b32.xlu0 %v3226_v62, %s7659_s9 }
0x1d80   :  { %3254 = vrot.lane.b32.xlu1 %v3227_v48, %s7659_s9 }
0x1d82   :  { %3238 = vrot.lane.b32.xlu0 %v3228_v61, %s7660_s10 }
0x1d84   :  { %3240 = vrot.lane.b32.xlu1 %v3229_v46, %s7660_s10 }
0x1d86   :  { %3234 = vrot.lane.b32.xlu0 %v3226_v62, %s7660_s10 }
0x1d88   :  { %3236 = vrot.lane.b32.xlu1 %v3227_v48, %s7660_s10 }
0x1d8a   :  { %3290 = vperm.xlu0 %7489, %v3276_v3  }
0x1d8c   :  { %3295 = vperm.xlu1 %7490, %v3277_v15  }
0x1d8e   :  { %3280 = vperm.xlu0 %7489, %v3274_v22  }
0x1d90   :  { %3285 = vperm.xlu1 %7490, %v3275_v7  }
0x1dec   :  { %v3257_v51 = vpop.permute.xlu0 %3256 }
0x1dee   :  { %v3259_v38 = vpop.permute.xlu1 %3258 }
0x1def   :  { %6182 = vmatprep.subr.msk.bf16.mxu0 %vm3117_vm15, %v3259_v38  ;;  %v3261_v9 = vsel %vm3117_vm15, %v3257_v51, %v3259_v38 }
0x1df0   :  { %3319 = vmatpush1.bf16.msra.mxu0 %v3261_v9  ;;  %v3253_v39 = vpop.permute.xlu0 %3252 }
0x1df2   :  { %v3255_v5 = vpop.permute.xlu1 %3254 }
0x1df3   :  { %6183 = vmatprep.subr.msk.bf16.mxu0 %vm3117_vm15, %v3255_v5  ;;  %v3260_v25 = vsel %vm3117_vm15, %v3253_v39, %v3255_v5 }
0x1df4   :  { %3321 = vmatpush1.bf16.msra.mxu0 %v3260_v25  ;;  %v3239_v2 = vpop.permute.xlu0 %3238 }
0x1df5   :  { %3322 = vmatprep.subr.bf16.mxu0 %v3229_v46  ;;  %v7557_v46 = vld [vmem:[%s10071_s1 + $0x194] sm:$0xff]  }
0x1df6   :  { %v3241_v33 = vpop.permute.xlu1 %3240 }
0x1df7   :  { %v3243_v10 = vsel %vm10154_vm3, %v3239_v2, %v3241_v33 }
0x1df8   :  { %3323 = vmatpush1.bf16.msra.mxu0 %v3228_v61  ;;  %v3235_v15 = vpop.permute.xlu0 %3234  ;;  %v7558_v61 = vld [vmem:[%s10071_s1 + $0x19c] sm:$0xff]  }
0x1df9   :  { %3324 = vmatprep.subr.bf16.mxu0 %v3227_v48 }
0x1dfa   :  { %v3237_v3 = vpop.permute.xlu1 %3236 }
0x1dfb   :  { %v3242_v22 = vsel %vm10154_vm3, %v3235_v15, %v3237_v3 }
0x1dfc   :  { %3325 = vmatpush1.bf16.msra.mxu0 %v3226_v62 }
0x1dfd   :  { %3326 = vmatprep.subr.bf16.mxu0 %v3243_v10 }
0x1e00   :  { %6185 = vmatpush1.bf16.msk.msra.mxu0 %vm7762_vm4, %v3239_v2 }
0x1e01   :  { %3328 = vmatprep.subr.bf16.mxu0 %v3242_v22 }
0x1e04   :  { %6187 = vmatpush1.bf16.msk.msra.mxu0 %vm7762_vm4, %v3235_v15 }
0x1e05   :  { %v9039_v9 = vpop.permute.xlu0 %3290 }
0x1e07   :  { %6188 = vmatmul.mubr.msk.bf16.vlgmr.msra.gmra.mxu0 %vm243_vm1, %v7557_v46  ;;  %v9037_v51 = vpop.permute.xlu1 %3295 }
0x1e08   :  { %3356 = vmatprep.mubr.bf16.mxu0 %v10218_v24 }
0x1e09   :  { %v9044_v10 = vpop.permute.xlu0 %3280 }
0x1e0b   :  { %v9042_v33 = vpop.permute.xlu1 %3285 }
0x1e0f   :  { %6189 = vmatmul.mubr.msk.bf16.gmra.mxu0 %vm243_vm1, %v7558_v61 }
0x1ec7   :  { %v3348_v62 = vpop.f32.mrf.mxu0 }
0x1ec8   :  { %v3349_v46 = vadd.f32 %v3348_v62, %v9044_v10 }
0x1ec9   :  { %v3350_v48 = vpop.f32.mrf.mxu0 }
0x1eca   :  { %v3351_v56 = vadd.f32 %v3350_v48, %v9044_v10  ;;  %v7565_v48 = vld [vmem:[%s10073_s3 + $0x140] ss:$8 sps:$4 sm:$0xff]  }
0x1ecb   :  { %v3352_v7 = vpop.f32.mrf.mxu0 }
0x1ecc   :  { %v3353_v3 = vadd.f32 %v3352_v7, %v9042_v33  ;;  %v3367_v7 = vmax.f32 %v3349_v46, 0.0  ;;  %v7570_v46 = vld [vmem:[%s10073_s3 + $0xa0] ss:$8 sps:$4 sm:$0xff]  }
0x1ecd   :  { %v3354_v38 = vpop.f32.mrf.mxu0 }
0x1ece   :  { %v3355_v31 = vadd.f32 %v3354_v38, %v9042_v33  ;;  %v3369_v8 = vmax.f32 %v3353_v3, 0.0  ;;  %v7567_v3 = vld [vmem:[%s10073_s3 + $0x130] ss:$8 sps:$4 sm:$0xff]  }
0x1ecf   :  { %v3358_v39 = vpop.f32.mrf.mxu0 }
0x1ed0   :  { %v3359_v25 = vadd.f32 %v3358_v39, %v9039_v9  ;;  %v3370_v43 = vmax.f32 %v3355_v31, 0.0  ;;  %v3375_v62 = vpack.c.bf16 %v3369_v8, %v3367_v7  ;;  %v7561_v8 = vld [vmem:[%s10073_s3 + $0x160] ss:$8 sps:$4 sm:$0xff]  }
0x1ed1   :  { %v3360_v5 = vpop.f32.mrf.mxu0  ;;  %v1723_v31 = vld [vmem:[%s10072_s2 + $0x1c0] sm:$0xf] }
0x1ed2   :  { %v3361_v15 = vadd.f32 %v3360_v5, %v9039_v9  ;;  %v3371_v42 = vmax.f32 %v3359_v25, 0.0  ;;  %v7566_v25 = vld [vmem:[%s10073_s3 + $0xc0] ss:$8 sps:$4 sm:$0xff]  }
0x1ed3   :  { %v3362_v2 = vpop.f32.mrf.mxu0 }
0x1ed4   :  { %v3363_v22 = vadd.f32 %v3362_v2, %v9037_v51  ;;  %v3372_v24 = vmax.f32 %v3361_v15, 0.0  ;;  %v3368_v2 = vmax.f32 %v3351_v56, 0.0  ;;  %v7563_v56 = vld [vmem:[%s10073_s3 + $0x150] ss:$8 sps:$4 sm:$0xff]  }
0x1ed5   :  { %v3364_v61 = vpop.f32.mrf.mxu0  ;;  %v7568_v15 = vld [vmem:[%s10073_s3 + $0xb0] ss:$8 sps:$4 sm:$0xff]  }
0x1ed6   :  { %v3373_v11 = vmax.f32 %v3363_v22, 0.0  ;;  %v3365_v39 = vadd.f32 %v3364_v61, %v9037_v51  ;;  %v3376_v38 = vpack.c.bf16 %v3370_v43, %v3368_v2  ;;  %v7559_v43 = vld [vmem:[%s10073_s3 + $0x170] ss:$8 sps:$4 sm:$0xff]   ;;  %v7569_v22 = vld [vmem:[%s10073_s3 + $0x120] ss:$8 sps:$4 sm:$0xff]  }
0x1ed7   :  { %6526 = vmatprep.subr.bf16.mxu0 %v7559_v43 }
0x1ed8   :  { %v3377_v12 = vpack.c.bf16 %v3373_v11, %v3371_v42  ;;  %v3374_v59 = vmax.f32 %v3365_v39, 0.0  ;;  %v7562_v11 = vld [vmem:[%s10073_s3 + $0xe0] ss:$8 sps:$4 sm:$0xff]   ;;  %v7564_v42 = vld [vmem:[%s10073_s3 + $0xd0] ss:$8 sps:$4 sm:$0xff]  }
0x1eda   :  { %v3378_v5 = vpack.c.bf16 %v3374_v59, %v3372_v24  ;;  %3405 = vrot.lane.b32.xlu0 %v3377_v12, %s7659_s9  ;;  %v3420_v59 = vld [vmem:[%s10072_s2 + $0x348] sm:$0xf]  ;;  %v7560_v24 = vld [vmem:[%s10073_s3 + $0xf0] ss:$8 sps:$4 sm:$0xff]  }
0x1edb   :  { %6527 = vmatpush3.bf16.msra.mxu0 %v7560_v24 }
0x1edc   :  { %3407 = vrot.lane.b32.xlu1 %v3378_v5, %s7659_s9  ;;  %6528 = vmatprep.subr.bf16.mxu0 %v7561_v8 }
0x1ede   :  { %3401 = vrot.lane.b32.xlu0 %v3375_v62, %s7659_s9 }
0x1edf   :  { %6529 = vmatpush3.bf16.msra.mxu0 %v7562_v11 }
0x1ee0   :  { %3403 = vrot.lane.b32.xlu1 %v3376_v38, %s7659_s9  ;;  %6530 = vmatprep.subr.bf16.mxu0 %v7563_v56 }
0x1ee2   :  { %3387 = vrot.lane.b32.xlu0 %v3377_v12, %s7660_s10 }
0x1ee3   :  { %6531 = vmatpush3.bf16.msra.mxu0 %v7564_v42 }
0x1ee4   :  { %3389 = vrot.lane.b32.xlu1 %v3378_v5, %s7660_s10  ;;  %6532 = vmatprep.subr.bf16.mxu0 %v7565_v48  ;;  %v7574_v48 = vld [vmem:[%s10073_s3 + $0x80] ss:$8 sps:$4 sm:$0xff]  }
0x1ee6   :  { %3383 = vrot.lane.b32.xlu0 %v3375_v62, %s7660_s10 }
0x1ee7   :  { %6533 = vmatpush3.bf16.msra.mxu0 %v7566_v25 }
0x1ee8   :  { %3385 = vrot.lane.b32.xlu1 %v3376_v38, %s7660_s10  ;;  %6534 = vmatprep.subr.bf16.mxu0 %v7567_v3 }
0x1eea   :  { %3423 = vperm.xlu0 %7489, %v3420_v59  }
0x1eeb   :  { %6535 = vmatpush3.bf16.msra.mxu0 %v7568_v15 }
0x1eec   :  { %1726 = vperm.xlu1 %7490, %v1723_v31   ;;  %6536 = vmatprep.subr.bf16.mxu0 %v7569_v22 }
0x1eef   :  { %6537 = vmatpush3.bf16.msra.mxu0 %v7570_v46 }
0x1f4c   :  { %v3406_v61 = vpop.permute.xlu0 %3405 }
0x1f4e   :  { %v3408_v39 = vpop.permute.xlu1 %3407 }
0x1f4f   :  { %v3410_v7 = vsel %vm3117_vm15, %v3406_v61, %v3408_v39  ;;  %6190 = vmatprep.subr.msk.bf16.mxu1 %vm3117_vm15, %v3408_v39 }
0x1f50   :  { %3434 = vmatpush1.bf16.msra.mxu1 %v3410_v7  ;;  %v3402_v2 = vpop.permute.xlu0 %3401 }
0x1f52   :  { %v3404_v59 = vpop.permute.xlu1 %3403 }
0x1f53   :  { %v3409_v43 = vsel %vm3117_vm15, %v3402_v2, %v3404_v59  ;;  %6191 = vmatprep.subr.msk.bf16.mxu1 %vm3117_vm15, %v3404_v59  ;;  %v7575_v59 = vld [vmem:[%s10071_s1 + $0x20] sm:$0xff]  }
0x1f54   :  { %3436 = vmatpush1.bf16.msra.mxu1 %v3409_v43  ;;  %v3388_v8 = vpop.permute.xlu0 %3387 }
0x1f55   :  { %3437 = vmatprep.subr.bf16.mxu1 %v3378_v5  ;;  %v7571_v5 = vld [vmem:[%s10073_s3 + $0x110] ss:$8 sps:$4 sm:$0xff]  }
0x1f56   :  { %v3390_v24 = vpop.permute.xlu1 %3389  ;;  %6538 = vmatprep.subr.bf16.mxu0 %v7571_v5  ;;  %v6217_v5 = vld [vmem:[%s10070_s0 + $0x38] sm:$0xff] }
0x1f57   :  { %v3392_v31 = vsel %vm10154_vm3, %v3388_v8, %v3390_v24 }
0x1f58   :  { %3438 = vmatpush1.bf16.msra.mxu1 %v3377_v12  ;;  %v3384_v56 = vpop.permute.xlu0 %3383  ;;  %v3419_v12 = vld [vmem:[%s10071_s1 + $0x1a4] sm:$0x3] }
0x1f59   :  { %3439 = vmatprep.subr.bf16.mxu1 %v3376_v38  ;;  %v7573_v38 = vld [vmem:[%s10073_s3 + $0x100] ss:$8 sps:$4 sm:$0xff]  }
0x1f5a   :  { %v3386_v11 = vpop.permute.xlu1 %3385 }
0x1f5b   :  { %v3391_v42 = vsel %vm10154_vm3, %v3384_v56, %v3386_v11  ;;  %vm3653_vm3 = vcmask 64512  }
0x1f5c   :  { %3440 = vmatpush1.bf16.msra.mxu1 %v3375_v62  ;;  %v7572_v62 = vld [vmem:[%s10073_s3 + $0x90] ss:$8 sps:$4 sm:$0xff]  }
0x1f5d   :  { %3441 = vmatprep.subr.bf16.mxu1 %v3392_v31  ;;  %6539 = vmatpush3.bf16.msra.mxu0 %v7572_v62 }
0x1f5e   :  { %6540 = vmatprep.subr.bf16.mxu0 %v7573_v38 }
0x1f60   :  { %6193 = vmatpush1.bf16.msk.msra.mxu1 %vm7762_vm4, %v3388_v8 }
0x1f61   :  { %3443 = vmatprep.subr.bf16.mxu1 %v3391_v42  ;;  %6541 = vmatpush3.bf16.msra.mxu0 %v7574_v48 }
0x1f64   :  { %6195 = vmatpush1.bf16.msk.msra.mxu1 %vm7762_vm4, %v3384_v56 }
0x1f65   :  { %7077 = vmatprep.subr.bf16.mxu1 %v10182_v27  ;;  %v9132_v3 = vpop.permute.xlu0 %3423 }
0x1f67   :  { %6196 = vmatmul.mubr.msk.bf16.vlgmr.msra.gmra.mxu1 %vm243_vm1, %v3419_v12  ;;  %v9140_v24 = vpop.permute.xlu1 %1726  ;;  %v6216_v12 = vld [vmem:[%s10070_s0 + $0x30] sm:$0xff] }
0x1f68   :  { %7079 = vmatprep.mubr.msk.bf16.mxu1 %vm7664_vm12, %v10182_v27  ;;  %v1767_v56 = vadd.f32 %v8533_v23, %v9140_v24  ;;  %v6215_v23 = vld [vmem:[%s10070_s0 + $0x28] sm:$0xff] }
0x2027   :  { %v3463_v25 = vpop.f32.mrf.mxu1 }
0x2028   :  { %v3464_v15 = vadd.f32 %v3463_v25, %v9132_v3  ;;  %v3706_v25 = vpack.c.bf16 %v6217_v5, %v6216_v12 }
0x2029   :  { %v3465_v22 = vpop.f32.mrf.mxu1 }
0x202a   :  { %v3466_v46 = vadd.f32 %v3465_v22, %v9132_v3  ;;  %v3502_v7 = vpack.c.bf16 %v3464_v15, %v3464_v15  ;;  %v6214_v15 = vld [vmem:[%s10070_s0 + $0x20] sm:$0xff] }
0x202b   :  { %v3467_v61 = vpop.f32.mrf.mxu1 }
0x202c   :  { %v3503_v39 = vpack.c.bf16 %v3466_v46, %v3466_v46  ;;  %v3646_v46 = vld [vmem:[%s10071_s1 + $0x1a8] sm:$0x3]  ;;  %v3705_v61 = vpack.c.bf16 %v6215_v23, %v6214_v15 }
0x202d   :  { %v3468_v2 = vpop.f32.mrf.mxu1 }
0x202e   :  { %3632 = vmatprep.mubr.bf16.mxu0 %v3503_v39  ;;  %v7576_v39 = vld [vmem:[%s10071_s1] sm:$0xff]   ;;  %v7578_v2 = vld [vmem:[%s10071_s1 + $0x10] sm:$0xff]  }
0x202f   :  { %3633 = vmatmul.mubr.bf16.vlgmr.msra.gmra.mxu0 %v3502_v7  ;;  %v7577_v7 = vld [vmem:[%s10071_s1 + $0x8] sm:$0xff]  }
0x2030   :  { %7107 = vmatprep.mubr.msk.bf16.mxu0 %vm243_vm1, %v7575_v59  ;;  %v7579_v59 = vld [vmem:[%s10071_s1 + $0x18] sm:$0xff]  }
0x20ef   :  { %v6542_v43 = vpop.f32.mrf.mxu0 }
0x20f1   :  { %v6543_v8 = vpop.f32.mrf.mxu0 }
0x20f2   :  { %v6544_v31 = vadd.f32 %v6543_v8, %v6542_v43  ;;  %v7580_v43 = vld [vmem:[%s10071_s1 + $0x30] sm:$0xff]  }
0x20f3   :  { %v6545_v11 = vpop.f32.mrf.mxu0 }
0x20f4   :  { %v3641_v42 = vrot.slane %v6544_v31, 4 }
0x20f5   :  { %v6546_v62 = vpop.f32.mrf.mxu0 }
0x20f6   :  { %v3644_v38 = vsel %vm3643_vm6, %v1767_v56, %v3641_v42 }
0x20f7   :  { %v3645_v48 = vpack.c.bf16 %v3644_v38, %v3644_v38 }
0x20f9   :  { %v3658_v22 = vsel %vm3643_vm6, %v3645_v48, 0 }
0x20fa   :  { %7078 = vmatpush3.bf16.msra.mxu1 %v3658_v22 }
0x20fb   :  { %7083 = vmatprep.subr.bf16.mxu1 %v3706_v25 }
0x20fd   :  { %7080 = vmatmul.mubr.msk.bf16.vlgmr.msra.gmra.mxu1 %vm3653_vm3, %v3646_v46 }
0x20fe   :  { %7084 = vmatpush3.bf16.msra.mxu1 %v3706_v25  ;;  %7087 = vmatprep.mubr.msk.bf16.mxu1 %vm100_vm0, %v7576_v39 }
0x20ff   :  { %7085 = vmatprep.subr.bf16.mxu1 %v3705_v61 }
0x2102   :  { %7086 = vmatpush3.bf16.msra.mxu1 %v3705_v61 }
0x2105   :  { %7088 = vmatmul.mubr.msk.bf16.vlgmr.msra.gmra.mxu1 %vm100_vm0, %v7577_v7 }
0x2106   :  { %7091 = vmatprep.mubr.msk.bf16.mxu1 %vm100_vm0, %v7578_v2 }
0x210d   :  { %7092 = vmatmul.mubr.msk.bf16.gmra.mxu1 %vm100_vm0, %v7579_v59 }
0x210e   :  { %7123 = vmatprep.mubr.msk.bf16.mxu1 %vm243_vm1, %v7580_v43  ;;  %v7581_v43 = vld [vmem:[%s10071_s1 + $0x28] sm:$0xff]  }
0x21bd   :  { %v9182_v8 = vpop.f32.mrf.mxu1 }
0x21bf   :  { %v7081_v31 = vpop.f32.mrf.mxu1 }
0x21c0   :  { %v7582_v31 = vld [vmem:[%s10071_s1 + $0x40] sm:$0xff]  }
0x21c1   :  { %v3697_v11 = vpop.f32.mrf.mxu1 }
0x21c3   :  { %v7082_v56 = vpop.f32.mrf.mxu1 }
0x21c5   :  { %v7089_v42 = vpop.f32.mrf.mxu1 }
0x21c6   :  { %v3750_v62 = vadd.f32 %v7089_v42, %v7725_v13 }
0x21c7   :  { %v3741_v12 = vpop.f32.mrf.mxu1 }
0x21c8   :  { %v3742_v25 = vadd.f32 %v3741_v12, %v7727_v14 }
0x21c9   :  { %v7090_v5 = vpop.f32.mrf.mxu1 }
0x21ca   :  { %v3753_v38 = vadd.f32 %v7090_v5, %v7729_v17 }
0x21cb   :  { %v3744_v48 = vpop.f32.mrf.mxu1 }
0x21cc   :  { %v3773_v15 = vpack.c.bf16 %v3753_v38, %v3750_v62  ;;  %v3745_v23 = vadd.f32 %v3744_v48, %v7733_v21 }
0x21cd   :  { %v7093_v22 = vpop.f32.mrf.mxu1 }
0x21ce   :  { %v3772_v46 = vpack.c.bf16 %v3745_v23, %v3742_v25  ;;  %3788 = vrot.lane.b32.xlu0 %v3773_v15, %s7659_s9  ;;  %v3766_v7 = vadd.f32 %v7093_v22, %v8327_v19 }
0x21cf   :  { %v9189_v61 = vpop.f32.mrf.mxu1 }
0x21d0   :  { %3786 = vrot.lane.b32.xlu1 %v3772_v46, %s7659_s9 }
0x21d1   :  { %v7094_v39 = vpop.f32.mrf.mxu1 }
0x21d2   :  { %v3769_v13 = vadd.f32 %v7094_v39, %v8323_v4  ;;  %3778 = vrot.lane.b32.xlu0 %v3773_v15, %s7660_s10 }
0x21d4   :  { %v9195_v17 = vpack.c.bf16 %v3769_v13, %v3766_v7  ;;  %3776 = vrot.lane.b32.xlu1 %v3772_v46, %s7660_s10 }
0x2240   :  { %v3789_v14 = vpop.permute.xlu0 %3788 }
0x2241   :  { %v3794_v21 = vsel %vm198_vm2, %v3789_v14, 0  ;;  %7453 = vmatprep.subr.msk.bf16.mxu0 %vm198_vm2, %v3789_v14 }
0x2242   :  { %7096 = vmatpush3.bf16.msra.mxu0 %v3794_v21  ;;  %v3787_v2 = vpop.permute.xlu1 %3786 }
0x2243   :  { %7454 = vmatprep.subr.msk.bf16.mxu0 %vm198_vm2, %v3787_v2  ;;  %v3791_v59 = vsel %vm198_vm2, %v3787_v2, 0 }
0x2244   :  { %v3779_v4 = vpop.permute.xlu0 %3778 }
0x2246   :  { %7098 = vmatpush3.bf16.msra.mxu0 %v3791_v59  ;;  %v3777_v19 = vpop.permute.xlu1 %3776 }
0x2247   :  { %7099 = vmatprep.subr.bf16.mxu0 %v3773_v15 }
0x224a   :  { %7100 = vmatpush3.bf16.msra.mxu0 %v3773_v15 }
0x224b   :  { %7101 = vmatprep.subr.bf16.mxu0 %v3772_v46 }
0x224e   :  { %7102 = vmatpush3.bf16.msra.mxu0 %v3772_v46 }
0x224f   :  { %7103 = vmatprep.subr.msk.bf16.mxu0 %vm7762_vm4, %v3779_v4 }
0x2252   :  { %7104 = vmatpush3.bf16.msk.msra.mxu0 %vm7762_vm4, %v3779_v4  ;;  %v7583_v4 = vld [vmem:[%s10071_s1 + $0x38] sm:$0xff]  }
0x2253   :  { %7105 = vmatprep.subr.msk.bf16.mxu0 %vm7762_vm4, %v3777_v19 }
0x2256   :  { %7106 = vmatpush3.bf16.msk.msra.mxu0 %vm7762_vm4, %v3777_v19  ;;  %v7584_v19 = vld [vmem:[%s10071_s1 + $0x50] sm:$0xff]  }
0x2259   :  { %7108 = vmatmul.mubr.msk.bf16.vlgmr.msra.gmra.mxu0 %vm243_vm1, %v7581_v43  ;;  %v9266_v43 = vpop.f32.mrf.mxu1 }
0x225a   :  { %7131 = vmatprep.mubr.msk.bf16.mxu0 %vm100_vm0, %v7582_v31 }
0x2319   :  { %v7109_v11 = vpop.f32.mrf.mxu0 }
0x231a   :  { %v9219_v56 = vadd.f32 %v7109_v11, %v7778_v40 }
0x231b   :  { %v3830_v42 = vpop.f32.mrf.mxu0 }
0x231c   :  { %v9222_v12 = vadd.f32 %v3830_v42, %v7785_v44  ;;  %v3847_v62 = vmax.f32 %v9219_v56, 0.0 }
0x231d   :  { %v7110_v5 = vpop.f32.mrf.mxu0 }
0x231e   :  { %v9226_v38 = vadd.f32 %v7110_v5, %v7780_v41  ;;  %v3845_v25 = vmax.f32 %v9222_v12, 0.0  ;;  %v3851_v40 = vmax.f32 %v3847_v62, 0.0 }
0x231f   :  { %v3833_v48 = vpop.f32.mrf.mxu0 }
0x2320   :  { %v3848_v15 = vmax.f32 %v9226_v38, 0.0  ;;  %v9231_v23 = vadd.f32 %v3833_v48, %v7794_v50  ;;  %v3849_v41 = vmax.f32 %v3845_v25, 0.0 }
0x2322   :  { %v3852_v44 = vmax.f32 %v3848_v15, 0.0  ;;  %v3846_v22 = vmax.f32 %v9231_v23, 0.0 }
0x2324   :  { %v3854_v46 = vpack.c.bf16 %v3852_v44, %v3851_v40  ;;  %v3850_v39 = vmax.f32 %v3846_v22, 0.0 }
0x2326   :  { %v3853_v7 = vpack.c.bf16 %v3850_v39, %v3849_v41  ;;  %3869 = vrot.lane.b32.xlu0 %v3854_v46, %s7661_s27 }
0x2328   :  { %3867 = vrot.lane.b32.xlu1 %v3853_v7, %s7661_s27 }
0x232a   :  { %3859 = vrot.lane.b32.xlu0 %v3854_v46, %s7662_s28 }
0x232c   :  { %3857 = vrot.lane.b32.xlu1 %v3853_v7, %s7662_s28 }
0x2398   :  { %v3870_v50 = vpop.permute.xlu0 %3869 }
0x2399   :  { %v3875_v13 = vsel %vm326_vm5, %v3870_v50, 0  ;;  %7455 = vmatprep.subr.msk.bf16.mxu1 %vm326_vm5, %v3870_v50 }
0x239a   :  { %7112 = vmatpush3.bf16.msra.mxu1 %v3875_v13  ;;  %v3868_v14 = vpop.permute.xlu1 %3867 }
0x239b   :  { %7456 = vmatprep.subr.msk.bf16.mxu1 %vm326_vm5, %v3868_v14  ;;  %v3872_v21 = vsel %vm326_vm5, %v3868_v14, 0 }
0x239c   :  { %v3860_v2 = vpop.permute.xlu0 %3859 }
0x239e   :  { %7114 = vmatpush3.bf16.msra.mxu1 %v3872_v21  ;;  %v3858_v59 = vpop.permute.xlu1 %3857 }
0x239f   :  { %7115 = vmatprep.subr.bf16.mxu1 %v3854_v46 }
0x23a2   :  { %7116 = vmatpush3.bf16.msra.mxu1 %v3854_v46 }
0x23a3   :  { %7117 = vmatprep.subr.bf16.mxu1 %v3853_v7 }
0x23a6   :  { %7118 = vmatpush3.bf16.msra.mxu1 %v3853_v7 }
0x23a7   :  { %7119 = vmatprep.subr.msk.bf16.mxu1 %vm7854_vm7, %v3860_v2 }
0x23aa   :  { %7120 = vmatpush3.bf16.msk.msra.mxu1 %vm7854_vm7, %v3860_v2 }
0x23ab   :  { %7121 = vmatprep.subr.msk.bf16.mxu1 %vm7854_vm7, %v3858_v59 }
0x23ae   :  { %7122 = vmatpush3.bf16.msk.msra.mxu1 %vm7854_vm7, %v3858_v59 }
0x23b1   :  { %7124 = vmatmul.mubr.msk.bf16.vlgmr.msra.gmra.mxu1 %vm243_vm1, %v7583_v4 }
0x23b2   :  { %7147 = vmatprep.mubr.msk.bf16.mxu1 %vm243_vm1, %v7584_v19 }
0x2471   :  { %v7125_v31 = vpop.f32.mrf.mxu1 }
0x2472   :  { %v3920_v42 = vadd.f32 %v7125_v31, %v7880_v26  ;;  %v7585_v26 = vld [vmem:[%s10071_s1 + $0x48] sm:$0xff]  }
0x2473   :  { %v3911_v11 = vpop.f32.mrf.mxu1 }
0x2474   :  { %v3912_v48 = vadd.f32 %v3911_v11, %v7887_v32  ;;  %v3928_v41 = vmax.f32 %v3920_v42, 0.0 }
0x2475   :  { %v7126_v5 = vpop.f32.mrf.mxu1 }
0x2476   :  { %v3923_v40 = vadd.f32 %v7126_v5, %v7884_v28  ;;  %v3926_v7 = vmax.f32 %v3912_v48, 0.0  ;;  %v7586_v28 = vld [vmem:[%s10071_s1 + $0x60] sm:$0xff]  }
0x2477   :  { %v3914_v44 = vpop.f32.mrf.mxu1 }
0x2478   :  { %v3929_v46 = vmax.f32 %v3923_v40, 0.0  ;;  %v3915_v39 = vadd.f32 %v3914_v44, %v7891_v37  ;;  %v7587_v40 = vld [vmem:[%s10071_s1 + $0x58] sm:$0xff]   ;;  %v7588_v44 = vld [vmem:[%s10071_s1 + $0x80] sm:$0xff]  }
0x247a   :  { %v3931_v50 = vpack.c.bf16 %v3929_v46, %v3928_v41  ;;  %v3927_v13 = vmax.f32 %v3915_v39, 0.0 }
0x247c   :  { %v3930_v14 = vpack.c.bf16 %v3927_v13, %v3926_v7  ;;  %7127 = vmatprep.subr.bf16.mxu0 %v3931_v50 }
0x247d   :  { %7128 = vmatpush3.bf16.msra.mxu0 %v3931_v50 }
0x247e   :  { %7129 = vmatprep.subr.bf16.mxu0 %v3930_v14 }
0x2481   :  { %7130 = vmatpush3.bf16.msra.mxu0 %v3930_v14 }
0x2484   :  { %7132 = vmatmul.mubr.msk.bf16.vlgmr.msra.gmra.mxu0 %vm100_vm0, %v7585_v26 }
0x2485   :  { %7155 = vmatprep.mubr.msk.bf16.mxu0 %vm100_vm0, %v7586_v28 }
0x2544   :  { %v7133_v32 = vpop.f32.mrf.mxu0 }
0x2545   :  { %v3975_v37 = vadd.f32 %v7133_v32, %v7898_v58 }
0x2546   :  { %v3966_v21 = vpop.f32.mrf.mxu0 }
0x2547   :  { %v3967_v2 = vadd.f32 %v3966_v21, %v7903_v63  ;;  %v9284_v4 = vadd.f32 %v3975_v37, %v3847_v62 }
0x2548   :  { %v7134_v59 = vpop.f32.mrf.mxu0 }
0x2549   :  { %v3978_v19 = vadd.f32 %v7134_v59, %v7900_v60  ;;  %v9289_v11 = vadd.f32 %v3967_v2, %v3845_v25  ;;  %v3987_v63 = vmax.f32 %v9284_v4, 0.0 }
0x254a   :  { %v3969_v31 = vpop.f32.mrf.mxu0 }
0x254b   :  { %v9293_v42 = vadd.f32 %v3978_v19, %v3848_v15  ;;  %v3970_v58 = vadd.f32 %v3969_v31, %v7911_v6  ;;  %v3985_v60 = vmax.f32 %v9289_v11, 0.0 }
0x254d   :  { %v3988_v5 = vmax.f32 %v9293_v42, 0.0  ;;  %v9300_v56 = vadd.f32 %v3970_v58, %v3846_v22 }
0x254f   :  { %v3990_v62 = vpack.c.bf16 %v3988_v5, %v3987_v63  ;;  %v3986_v12 = vmax.f32 %v9300_v56, 0.0 }
0x2551   :  { %v3989_v25 = vpack.c.bf16 %v3986_v12, %v3985_v60  ;;  %4005 = vrot.lane.b32.xlu0 %v3990_v62, %s7659_s9 }
0x2553   :  { %4003 = vrot.lane.b32.xlu1 %v3989_v25, %s7659_s9 }
0x2555   :  { %3995 = vrot.lane.b32.xlu0 %v3990_v62, %s7660_s10 }
0x2557   :  { %3993 = vrot.lane.b32.xlu1 %v3989_v25, %s7660_s10 }
0x25c3   :  { %v4006_v6 = vpop.permute.xlu0 %4005 }
0x25c4   :  { %v4011_v38 = vsel %vm198_vm2, %v4006_v6, 0  ;;  %7457 = vmatprep.subr.msk.bf16.mxu1 %vm198_vm2, %v4006_v6 }
0x25c5   :  { %7136 = vmatpush3.bf16.msra.mxu1 %v4011_v38  ;;  %v4004_v15 = vpop.permute.xlu1 %4003 }
0x25c6   :  { %7458 = vmatprep.subr.msk.bf16.mxu1 %vm198_vm2, %v4004_v15  ;;  %v4008_v23 = vsel %vm198_vm2, %v4004_v15, 0 }
0x25c7   :  { %v3996_v22 = vpop.permute.xlu0 %3995 }
0x25c9   :  { %7138 = vmatpush3.bf16.msra.mxu1 %v4008_v23  ;;  %v3994_v48 = vpop.permute.xlu1 %3993 }
0x25ca   :  { %7139 = vmatprep.subr.bf16.mxu1 %v3990_v62 }
0x25cd   :  { %7140 = vmatpush3.bf16.msra.mxu1 %v3990_v62 }
0x25ce   :  { %7141 = vmatprep.subr.bf16.mxu1 %v3989_v25 }
0x25d1   :  { %7142 = vmatpush3.bf16.msra.mxu1 %v3989_v25 }
0x25d2   :  { %7143 = vmatprep.subr.msk.bf16.mxu1 %vm7762_vm4, %v3996_v22 }
0x25d5   :  { %7144 = vmatpush3.bf16.msk.msra.mxu1 %vm7762_vm4, %v3996_v22 }
0x25d6   :  { %7145 = vmatprep.subr.msk.bf16.mxu1 %vm7762_vm4, %v3994_v48 }
0x25d9   :  { %7146 = vmatpush3.bf16.msk.msra.mxu1 %vm7762_vm4, %v3994_v48 }
0x25dc   :  { %7148 = vmatmul.mubr.msk.bf16.vlgmr.msra.gmra.mxu1 %vm243_vm1, %v7587_v40 }
0x25dd   :  { %7193 = vmatprep.mubr.msk.bf16.mxu1 %vm243_vm1, %v7588_v44 }
0x269c   :  { %v7149_v41 = vpop.f32.mrf.mxu1 }
0x269d   :  { %v4056_v39 = vadd.f32 %v7149_v41, %v7982_v45  ;;  %v7589_v45 = vld [vmem:[%s10073_s3] ss:$8 sps:$4 sm:$0xff]   ;;  %v7592_v41 = vld [vmem:[%s10071_s1 + $0x78] sm:$0xff]  }
0x269e   :  { %v4047_v46 = vpop.f32.mrf.mxu1 }
0x269f   :  { %v4048_v50 = vadd.f32 %v4047_v46, %v7987_v57  ;;  %v4064_v26 = vmax.f32 %v4056_v39, 0.0  ;;  %v7593_v46 = vld [vmem:[%s10071_s1 + $0x90] sm:$0xff]  }
0x26a0   :  { %v7150_v7 = vpop.f32.mrf.mxu1 }
0x26a1   :  { %v4059_v13 = vadd.f32 %v7150_v7, %v7984_v47  ;;  %v4062_v37 = vmax.f32 %v4048_v50, 0.0  ;;  %v7590_v47 = vld [vmem:[%s10071_s1 + $0x68] sm:$0xff]  }
0x26a2   :  { %v4050_v14 = vpop.f32.mrf.mxu1 }
0x26a3   :  { %v4065_v28 = vmax.f32 %v4059_v13, 0.0  ;;  %v4051_v32 = vadd.f32 %v4050_v14, %v7991_v1 }
0x26a5   :  { %v4067_v21 = vpack.c.bf16 %v4065_v28, %v4064_v26  ;;  %v4063_v2 = vmax.f32 %v4051_v32, 0.0 }
0x26a7   :  { %v4066_v59 = vpack.c.bf16 %v4063_v2, %v4062_v37  ;;  %7151 = vmatprep.subr.bf16.mxu0 %v4067_v21 }
0x26a8   :  { %7152 = vmatpush3.bf16.msra.mxu0 %v4067_v21 }
0x26a9   :  { %7153 = vmatprep.subr.bf16.mxu0 %v4066_v59 }
0x26ac   :  { %7154 = vmatpush3.bf16.msra.mxu0 %v4066_v59 }
0x26ad   :  { %7159 = vmatprep.subr.bf16.mxu0 %v7589_v45 }
0x26af   :  { %7156 = vmatmul.mubr.msk.bf16.vlgmr.msra.gmra.mxu0 %vm100_vm0, %v7590_v47 }
0x26b0   :  { %7160 = vmatpush3.bf16.msra.mxu0 %v7589_v45 }
0x276f   :  { %v7157_v57 = vpop.f32.mrf.mxu0 }
0x2770   :  { %v4111_v63 = vadd.f32 %v7157_v57, %v8007_v20 }
0x2771   :  { %v4102_v1 = vpop.f32.mrf.mxu0 }
0x2772   :  { %v4103_v31 = vadd.f32 %v4102_v1, %v8003_v54  ;;  %v4119_v6 = vadd.f32 %v4111_v63, %v9284_v4  ;;  %v7591_v54 = vld [vmem:[%s10071_s1 + $0x70] sm:$0xff]  }
0x2773   :  { %v7158_v19 = vpop.f32.mrf.mxu0 }
0x2774   :  { %v4114_v58 = vadd.f32 %v7158_v19, %v8005_v18  ;;  %v4117_v12 = vadd.f32 %v4103_v31, %v9289_v11  ;;  %v7594_v19 = vld [vmem:[%s10071_s1 + $0x88] sm:$0xff]   ;;  %v7595_v31 = vld [vmem:[%s10071_s1 + $0xa0] sm:$0xff]  }
0x2775   :  { %v4105_v5 = vpop.f32.mrf.mxu0 }
0x2776   :  { %v4106_v60 = vadd.f32 %v4105_v5, %v8001_v53  ;;  %v4120_v62 = vadd.f32 %v4114_v58, %v9293_v42 }
0x2778   :  { %v4118_v25 = vadd.f32 %v4106_v60, %v9300_v56  ;;  %v4122_v15 = vpack.c.bf16 %v4120_v62, %v4119_v6 }
0x277a   :  { %v4121_v38 = vpack.c.bf16 %v4118_v25, %v4117_v12 }
0x277c   :  { %7161 = vmatprep.mubr.msk.bf16.mxu0 %vm763_vm8, %v4121_v38 }
0x277d   :  { %7162 = vmatmul.mubr.msk.bf16.vlgmr.msra.gmra.mxu0 %vm763_vm8, %v4122_v15 }
0x277e   :  { %7177 = vmatprep.mubr.msk.bf16.mxu0 %vm243_vm1, %v7591_v54 }
0x283d   :  { %v7163_v53 = vpop.f32.mrf.mxu0 }
0x283f   :  { %v4163_v18 = vpop.f32.mrf.mxu0 }
0x2841   :  { %v7164_v20 = vpop.f32.mrf.mxu0 }
0x2842   :  { %v4179_v11 = vpack.c.bf16 %v7164_v20, %v7163_v53 }
0x2843   :  { %v4166_v42 = vpop.f32.mrf.mxu0 }
0x2844   :  { %v4178_v56 = vpack.c.bf16 %v4166_v42, %v4163_v18  ;;  %4194 = vrot.lane.b32.xlu0 %v4179_v11, %s7659_s9 }
0x2846   :  { %4192 = vrot.lane.b32.xlu1 %v4178_v56, %s7659_s9 }
0x2848   :  { %4184 = vrot.lane.b32.xlu0 %v4179_v11, %s7660_s10 }
0x284a   :  { %4182 = vrot.lane.b32.xlu1 %v4178_v56, %s7660_s10 }
0x28b6   :  { %v4195_v4 = vpop.permute.xlu0 %4194 }
0x28b7   :  { %v4200_v23 = vsel %vm837_vm9, %v4195_v4, 0  ;;  %7459 = vmatprep.subr.msk.bf16.mxu0 %vm837_vm9, %v4195_v4 }
0x28b8   :  { %7166 = vmatpush3.bf16.msra.mxu0 %v4200_v23  ;;  %v4193_v22 = vpop.permute.xlu1 %4192 }
0x28b9   :  { %7460 = vmatprep.subr.msk.bf16.mxu0 %vm837_vm9, %v4193_v22  ;;  %v4197_v48 = vsel %vm837_vm9, %v4193_v22, 0 }
0x28ba   :  { %v4185_v40 = vpop.permute.xlu0 %4184 }
0x28bc   :  { %7168 = vmatpush3.bf16.msra.mxu0 %v4197_v48  ;;  %v4183_v44 = vpop.permute.xlu1 %4182  ;;  %v10233_v48 = vld [vmem:[#allocation3_spill] sm:$0xff] }
0x28bd   :  { %7169 = vmatprep.subr.bf16.mxu0 %v4179_v11 }
0x28c0   :  { %7170 = vmatpush3.bf16.msra.mxu0 %v4179_v11 }
0x28c1   :  { %7171 = vmatprep.subr.bf16.mxu0 %v4178_v56 }
0x28c4   :  { %7172 = vmatpush3.bf16.msra.mxu0 %v4178_v56  ;;  %v10232_v56 = vld [vmem:[#allocation4_spill] sm:$0xff] }
0x28c5   :  { %7173 = vmatprep.subr.msk.bf16.mxu0 %vm7762_vm4, %v4185_v40 }
0x28c8   :  { %7174 = vmatpush3.bf16.msk.msra.mxu0 %vm7762_vm4, %v4185_v40 }
0x28c9   :  { %7175 = vmatprep.subr.msk.bf16.mxu0 %vm7762_vm4, %v4183_v44 }
0x28cc   :  { %7176 = vmatpush3.bf16.msk.msra.mxu0 %vm7762_vm4, %v4183_v44 }
0x28cf   :  { %7178 = vmatmul.mubr.msk.bf16.vlgmr.msra.gmra.mxu0 %vm243_vm1, %v7592_v41 }
0x28d0   :  { %7201 = vmatprep.mubr.msk.bf16.mxu0 %vm100_vm0, %v7593_v46 }
0x298f   :  { %v7179_v39 = vpop.f32.mrf.mxu0 }
0x2990   :  { %v9378_v50 = vadd.f32 %v7179_v39, %v8055_v49  ;;  %v10234_v39 = vld [vmem:[#allocation5_spill] sm:$0xff] }
0x2991   :  { %v4236_v7 = vpop.f32.mrf.mxu0 }
0x2992   :  { %v9381_v14 = vadd.f32 %v4236_v7, %v8062_v29  ;;  %v4253_v32 = vmax.f32 %v9378_v50, 0.0 }
0x2993   :  { %v7180_v13 = vpop.f32.mrf.mxu0 }
0x2994   :  { %v9384_v26 = vadd.f32 %v7180_v13, %v8057_v55  ;;  %v4251_v2 = vmax.f32 %v9381_v14, 0.0 }
0x2995   :  { %v4239_v28 = vpop.f32.mrf.mxu0 }
0x2996   :  { %v4254_v37 = vmax.f32 %v9384_v26, 0.0  ;;  %v9389_v21 = vadd.f32 %v4239_v28, %v8070_v34 }
0x2998   :  { %v4256_v59 = vpack.c.bf16 %v4254_v37, %v4253_v32  ;;  %v4252_v49 = vmax.f32 %v9389_v21, 0.0 }
0x299a   :  { %v4255_v45 = vpack.c.bf16 %v4252_v49, %v4251_v2  ;;  %4271 = vrot.lane.b32.xlu0 %v4256_v59, %s7661_s27 }
0x299c   :  { %4269 = vrot.lane.b32.xlu1 %v4255_v45, %s7661_s27 }
0x299e   :  { %4261 = vrot.lane.b32.xlu0 %v4256_v59, %s7662_s28 }
0x29a0   :  { %4259 = vrot.lane.b32.xlu1 %v4255_v45, %s7662_s28 }
0x2a0c   :  { %v4272_v55 = vpop.permute.xlu0 %4271 }
0x2a0d   :  { %v4277_v29 = vsel %vm959_vm10, %v4272_v55, 0  ;;  %7461 = vmatprep.subr.msk.bf16.mxu1 %vm959_vm10, %v4272_v55 }
0x2a0e   :  { %7182 = vmatpush3.bf16.msra.mxu1 %v4277_v29  ;;  %v4270_v34 = vpop.permute.xlu1 %4269  ;;  %v7598_v29 = vld [vmem:[%s10071_s1 + $0xa8] sm:$0xff]  }
0x2a0f   :  { %7462 = vmatprep.subr.msk.bf16.mxu1 %vm959_vm10, %v4270_v34  ;;  %v4274_v47 = vsel %vm959_vm10, %v4270_v34, 0  ;;  %v7599_v34 = vld [vmem:[%s10071_s1 + $0xd0] sm:$0xff]  }
0x2a10   :  { %v4262_v57 = vpop.permute.xlu0 %4261 }
0x2a12   :  { %7184 = vmatpush3.bf16.msra.mxu1 %v4274_v47  ;;  %v4260_v1 = vpop.permute.xlu1 %4259 }
0x2a13   :  { %7185 = vmatprep.subr.bf16.mxu1 %v4256_v59 }
0x2a16   :  { %7186 = vmatpush3.bf16.msra.mxu1 %v4256_v59 }
0x2a17   :  { %7187 = vmatprep.subr.bf16.mxu1 %v4255_v45 }
0x2a1a   :  { %7188 = vmatpush3.bf16.msra.mxu1 %v4255_v45 }
0x2a1b   :  { %7189 = vmatprep.subr.msk.bf16.mxu1 %vm7854_vm7, %v4262_v57 }
0x2a1e   :  { %7190 = vmatpush3.bf16.msk.msra.mxu1 %vm7854_vm7, %v4262_v57 }
0x2a1f   :  { %7191 = vmatprep.subr.msk.bf16.mxu1 %vm7854_vm7, %v4260_v1 }
0x2a22   :  { %7192 = vmatpush3.bf16.msk.msra.mxu1 %vm7854_vm7, %v4260_v1  ;;  %v10235_v1 = vld [vmem:[#allocation6_spill] sm:$0xff] }
0x2a25   :  { %7194 = vmatmul.mubr.msk.bf16.vlgmr.msra.gmra.mxu1 %vm243_vm1, %v7594_v19 }
0x2a26   :  { %7217 = vmatprep.mubr.msk.bf16.mxu1 %vm243_vm1, %v7595_v31 }
0x2ae5   :  { %v7195_v58 = vpop.f32.mrf.mxu1 }
0x2ae6   :  { %v4322_v5 = vadd.f32 %v7195_v58, %v8131_v30  ;;  %v7596_v30 = vld [vmem:[%s10071_s1 + $0x98] sm:$0xff]   ;;  %v10236_v58 = vld [vmem:[#allocation8_spill] sm:$0xff] }
0x2ae7   :  { %v4313_v63 = vpop.f32.mrf.mxu1 }
0x2ae8   :  { %v4314_v62 = vadd.f32 %v4313_v63, %v8136_v52  ;;  %v4330_v6 = vmax.f32 %v4322_v5, 0.0  ;;  %v10237_v5 = vld [vmem:[#allocation7_spill] sm:$0xff] }
0x2ae9   :  { %v7196_v60 = vpop.f32.mrf.mxu1 }
0x2aea   :  { %v4325_v12 = vadd.f32 %v7196_v60, %v8133_v35  ;;  %v4328_v54 = vmax.f32 %v4314_v62, 0.0  ;;  %v7597_v35 = vld [vmem:[%s10071_s1 + $0xb0] sm:$0xff]  }
0x2aeb   :  { %v4316_v25 = vpop.f32.mrf.mxu1 }
0x2aec   :  { %v4331_v38 = vmax.f32 %v4325_v12, 0.0  ;;  %v4317_v15 = vadd.f32 %v4316_v25, %v8140_v0  ;;  %v10231_v0 = vld [vmem:[#allocation2_spill] sm:$0xff] }
0x2aee   :  { %v4333_v53 = vpack.c.bf16 %v4331_v38, %v4330_v6  ;;  %v4329_v18 = vmax.f32 %v4317_v15, 0.0  ;;  %v10238_v6 = vld [vmem:[#allocation9_spill] sm:$0xff] }
0x2af0   :  { %v4332_v20 = vpack.c.bf16 %v4329_v18, %v4328_v54  ;;  %7197 = vmatprep.subr.bf16.mxu0 %v4333_v53 }
0x2af1   :  { %7198 = vmatpush3.bf16.msra.mxu0 %v4333_v53 }
0x2af2   :  { %7199 = vmatprep.subr.bf16.mxu0 %v4332_v20 }
0x2af5   :  { %7200 = vmatpush3.bf16.msra.mxu0 %v4332_v20  ;;  %v7600_v20 = vld [vmem:[%s10073_s3 + $0x20] ss:$8 sps:$4 sm:$0xff]  }
0x2af8   :  { %7202 = vmatmul.mubr.msk.bf16.vlgmr.msra.gmra.mxu0 %vm100_vm0, %v7596_v30  ;;  %v7601_v30 = vld [vmem:[%s10071_s1 + $0xb8] sm:$0xff]  }
0x2af9   :  { %7225 = vmatprep.mubr.msk.bf16.mxu0 %vm100_vm0, %v7597_v35  ;;  %v7602_v35 = vld [vmem:[%s10073_s3 + $0x10] ss:$8 sps:$4 sm:$0xff]  }
0x2bb8   :  { %v7203_v52 = vpop.f32.mrf.mxu0 }
0x2bb9   :  { %v4377_v11 = vadd.f32 %v7203_v52, %v10231_v0 }
0x2bba   :  { %v4368_v42 = vpop.f32.mrf.mxu0 }
0x2bbb   :  { %v4369_v4 = vadd.f32 %v4368_v42, %v10232_v56  ;;  %v9432_v22 = vadd.f32 %v4377_v11, %v9378_v50  ;;  %v10239_v42 = vld [vmem:[#allocation11_spill] sm:$0xff] }
0x2bbc   :  { %v7204_v23 = vpop.f32.mrf.mxu0 }
0x2bbd   :  { %v4380_v40 = vadd.f32 %v7204_v23, %v10233_v48  ;;  %v9436_v41 = vadd.f32 %v4369_v4, %v9381_v14  ;;  %v4389_v13 = vmax.f32 %v9432_v22, 0.0  ;;  %v10240_v4 = vld [vmem:[#allocation12_spill] sm:$0xff]  ;;  %v10241_v48 = vld [vmem:[#allocation13_spill] sm:$0xff] }
0x2bbe   :  { %v4371_v44 = vpop.f32.mrf.mxu0 }
0x2bbf   :  { %v9439_v46 = vadd.f32 %v4380_v40, %v9384_v26  ;;  %v4372_v7 = vadd.f32 %v4371_v44, %v10234_v39  ;;  %v4387_v50 = vmax.f32 %v9436_v41, 0.0  ;;  %v10242_v39 = vld [vmem:[#allocation10_spill] sm:$0xff] }
0x2bc1   :  { %v4390_v28 = vmax.f32 %v9439_v46, 0.0  ;;  %v9445_v32 = vadd.f32 %v4372_v7, %v9389_v21 }
0x2bc3   :  { %v4392_v37 = vpack.c.bf16 %v4390_v28, %v4389_v13  ;;  %v4388_v2 = vmax.f32 %v9445_v32, 0.0 }
0x2bc5   :  { %v4391_v59 = vpack.c.bf16 %v4388_v2, %v4387_v50  ;;  %4407 = vrot.lane.b32.xlu0 %v4392_v37, %s7659_s9 }
0x2bc7   :  { %4405 = vrot.lane.b32.xlu1 %v4391_v59, %s7659_s9 }
0x2bc9   :  { %4397 = vrot.lane.b32.xlu0 %v4392_v37, %s7660_s10 }
0x2bcb   :  { %4395 = vrot.lane.b32.xlu1 %v4391_v59, %s7660_s10 }
0x2c37   :  { %v4408_v14 = vpop.permute.xlu0 %4407 }
0x2c38   :  { %v4413_v26 = vsel %vm837_vm9, %v4408_v14, 0  ;;  %7463 = vmatprep.subr.msk.bf16.mxu1 %vm837_vm9, %v4408_v14  ;;  %v7603_v14 = vld [vmem:[%s10071_s1 + $0xc0] sm:$0xff]  }
0x2c39   :  { %7206 = vmatpush3.bf16.msra.mxu1 %v4413_v26  ;;  %v4406_v21 = vpop.permute.xlu1 %4405 }
0x2c3a   :  { %7464 = vmatprep.subr.msk.bf16.mxu1 %vm837_vm9, %v4406_v21  ;;  %v4410_v49 = vsel %vm837_vm9, %v4406_v21, 0 }
0x2c3b   :  { %v4398_v45 = vpop.permute.xlu0 %4397 }
0x2c3d   :  { %7208 = vmatpush3.bf16.msra.mxu1 %v4410_v49  ;;  %v4396_v55 = vpop.permute.xlu1 %4395 }
0x2c3e   :  { %7209 = vmatprep.subr.bf16.mxu1 %v4392_v37 }
0x2c41   :  { %7210 = vmatpush3.bf16.msra.mxu1 %v4392_v37 }
0x2c42   :  { %7211 = vmatprep.subr.bf16.mxu1 %v4391_v59 }
0x2c45   :  { %7212 = vmatpush3.bf16.msra.mxu1 %v4391_v59 }
0x2c46   :  { %7213 = vmatprep.subr.msk.bf16.mxu1 %vm7762_vm4, %v4398_v45 }
0x2c49   :  { %7214 = vmatpush3.bf16.msk.msra.mxu1 %vm7762_vm4, %v4398_v45 }
0x2c4a   :  { %7215 = vmatprep.subr.msk.bf16.mxu1 %vm7762_vm4, %v4396_v55 }
0x2c4d   :  { %7216 = vmatpush3.bf16.msk.msra.mxu1 %vm7762_vm4, %v4396_v55 }
0x2c50   :  { %7218 = vmatmul.mubr.msk.bf16.vlgmr.msra.gmra.mxu1 %vm243_vm1, %v7598_v29 }
0x2c51   :  { %7265 = vmatprep.mubr.msk.bf16.mxu1 %vm243_vm1, %v7599_v34 }
0x2d10   :  { %v7219_v47 = vpop.f32.mrf.mxu1 }
0x2d11   :  { %v4458_v19 = vadd.f32 %v7219_v47, %v10235_v1 }
0x2d12   :  { %v4449_v57 = vpop.f32.mrf.mxu1 }
0x2d13   :  { %v4450_v63 = vadd.f32 %v4449_v57, %v10236_v58  ;;  %v4466_v12 = vmax.f32 %v4458_v19, 0.0  ;;  %v7604_v57 = vld [vmem:[%s10071_s1 + $0xc8] sm:$0xff]  }
0x2d14   :  { %v7220_v31 = vpop.f32.mrf.mxu1  ;;  %v10243_v58 = vld [vmem:[#allocation15_spill] sm:$0xff] }
0x2d15   :  { %v4461_v60 = vadd.f32 %v7220_v31, %v10237_v5  ;;  %v4464_v15 = vmax.f32 %v4450_v63, 0.0  ;;  %v10244_v5 = vld [vmem:[#allocation14_spill] sm:$0xff] }
0x2d16   :  { %v4452_v62 = vpop.f32.mrf.mxu1 }
0x2d17   :  { %v4467_v25 = vmax.f32 %v4461_v60, 0.0  ;;  %v4453_v38 = vadd.f32 %v4452_v62, %v10238_v6 }
0x2d19   :  { %v4469_v54 = vpack.c.bf16 %v4467_v25, %v4466_v12  ;;  %v4465_v53 = vmax.f32 %v4453_v38, 0.0  ;;  %v10245_v12 = vld [vmem:[#allocation17_spill] sm:$0xff]  ;;  %v10246_v38 = vld [vmem:[#allocation16_spill] sm:$0xff] }
0x2d1b   :  { %v4468_v18 = vpack.c.bf16 %v4465_v53, %v4464_v15  ;;  %7221 = vmatprep.subr.bf16.mxu0 %v4469_v54  ;;  %v10247_v53 = vld [vmem:[#allocation18_spill] sm:$0xff] }
0x2d1c   :  { %7222 = vmatpush3.bf16.msra.mxu0 %v4469_v54 }
0x2d1d   :  { %7223 = vmatprep.subr.bf16.mxu0 %v4468_v18 }
0x2d20   :  { %7224 = vmatpush3.bf16.msra.mxu0 %v4468_v18  ;;  %v3761_v18 = vadd.f32 %v9266_v43, %v10247_v53 }
0x2d21   :  { %7229 = vmatprep.subr.bf16.mxu0 %v7600_v20 }
0x2d23   :  { %7226 = vmatmul.mubr.msk.bf16.vlgmr.msra.gmra.mxu0 %vm100_vm0, %v7601_v30 }
0x2d24   :  { %7230 = vmatpush3.bf16.msra.mxu0 %v7600_v20  ;;  %v10248_v20 = vld [vmem:[#allocation19_spill] sm:$0xff] }
0x2d25   :  { %7231 = vmatprep.subr.bf16.mxu0 %v7602_v35  ;;  %v3758_v30 = vadd.f32 %v9189_v61, %v10248_v20 }
0x2d28   :  { %7232 = vmatpush3.bf16.msra.mxu0 %v7602_v35  ;;  %v4794_v35 = vpack.c.bf16 %v3761_v18, %v3758_v30 }
0x2de3   :  { %v7227_v52 = vpop.f32.mrf.mxu0 }
0x2de4   :  { %v4513_v40 = vadd.f32 %v7227_v52, %v10241_v48 }
0x2de5   :  { %v4504_v0 = vpop.f32.mrf.mxu0 }
0x2de6   :  { %v4505_v56 = vadd.f32 %v4504_v0, %v10239_v42  ;;  %v4521_v37 = vadd.f32 %v4513_v40, %v9432_v22  ;;  %v7606_v40 = vld [vmem:[%s10071_s1 + $0xe4] sm:$0xff]  }
0x2de7   :  { %v7228_v11 = vpop.f32.mrf.mxu0 }
0x2de8   :  { %v4516_v23 = vadd.f32 %v7228_v11, %v10240_v4  ;;  %v4519_v28 = vadd.f32 %v4505_v56, %v9436_v41 }
0x2de9   :  { %v4507_v44 = vpop.f32.mrf.mxu0 }
0x2dea   :  { %v4508_v7 = vadd.f32 %v4507_v44, %v10242_v39  ;;  %v4522_v13 = vadd.f32 %v4516_v23, %v9439_v46  ;;  %v7605_v23 = vld [vmem:[%s10071_s1 + $0xd8] sm:$0xff]  }
0x2dec   :  { %v4520_v50 = vadd.f32 %v4508_v7, %v9445_v32  ;;  %v4524_v59 = vpack.c.bf16 %v4522_v13, %v4521_v37  ;;  %v7608_v13 = vld [vmem:[%s10071_s1 + $0x104] sm:$0xff]   ;;  %v10249_v37 = vld [vmem:[#allocation20_spill] sm:$0xff] }
0x2dee   :  { %v4523_v2 = vpack.c.bf16 %v4520_v50, %v4519_v28 }
0x2df0   :  { %7233 = vmatprep.mubr.msk.bf16.mxu0 %vm100_vm0, %v4523_v2 }
0x2df1   :  { %7234 = vmatmul.mubr.msk.bf16.vlgmr.msra.gmra.mxu0 %vm100_vm0, %v4524_v59 }
0x2df2   :  { %7249 = vmatprep.mubr.msk.bf16.mxu0 %vm243_vm1, %v7603_v14  ;;  %v10250_v14 = vld [vmem:[#allocation22_spill] sm:$0xff] }
0x2eb1   :  { %v7235_v26 = vpop.f32.mrf.mxu0 }
0x2eb3   :  { %v4565_v46 = vpop.f32.mrf.mxu0 }
0x2eb5   :  { %v7236_v21 = vpop.f32.mrf.mxu0 }
0x2eb6   :  { %v4581_v41 = vpack.c.bf16 %v7236_v21, %v7235_v26 }
0x2eb7   :  { %v4568_v49 = vpop.f32.mrf.mxu0 }
0x2eb8   :  { %v4580_v32 = vpack.c.bf16 %v4568_v49, %v4565_v46  ;;  %4596 = vrot.lane.b32.xlu0 %v4581_v41, %s7659_s9  ;;  %v10251_v46 = vld [vmem:[#allocation21_spill] sm:$0xff] }
0x2eba   :  { %4594 = vrot.lane.b32.xlu1 %v4580_v32, %s7659_s9 }
0x2ebc   :  { %4586 = vrot.lane.b32.xlu0 %v4581_v41, %s7660_s10 }
0x2ebe   :  { %4584 = vrot.lane.b32.xlu1 %v4580_v32, %s7660_s10 }
0x2f2a   :  { %v4597_v22 = vpop.permute.xlu0 %4596 }
0x2f2b   :  { %v4602_v45 = vsel %vm1477_vm11, %v4597_v22, 0  ;;  %7465 = vmatprep.subr.msk.bf16.mxu0 %vm1477_vm11, %v4597_v22  ;;  %v10252_v22 = vld [vmem:[#allocation23_spill] sm:$0xff] }
0x2f2c   :  { %7238 = vmatpush3.bf16.msra.mxu0 %v4602_v45  ;;  %v4595_v55 = vpop.permute.xlu1 %4594 }
0x2f2d   :  { %7466 = vmatprep.subr.msk.bf16.mxu0 %vm1477_vm11, %v4595_v55  ;;  %v4599_v29 = vsel %vm1477_vm11, %v4595_v55, 0 }
0x2f2e   :  { %v4587_v34 = vpop.permute.xlu0 %4586 }
0x2f30   :  { %7240 = vmatpush3.bf16.msra.mxu0 %v4599_v29  ;;  %v4585_v47 = vpop.permute.xlu1 %4584 }
0x2f31   :  { %7241 = vmatprep.subr.bf16.mxu0 %v4581_v41 }
0x2f34   :  { %7242 = vmatpush3.bf16.msra.mxu0 %v4581_v41 }
0x2f35   :  { %7243 = vmatprep.subr.bf16.mxu0 %v4580_v32 }
0x2f38   :  { %7244 = vmatpush3.bf16.msra.mxu0 %v4580_v32 }
0x2f39   :  { %7245 = vmatprep.subr.msk.bf16.mxu0 %vm7762_vm4, %v4587_v34 }
0x2f3c   :  { %7246 = vmatpush3.bf16.msk.msra.mxu0 %vm7762_vm4, %v4587_v34 }
0x2f3d   :  { %7247 = vmatprep.subr.msk.bf16.mxu0 %vm7762_vm4, %v4585_v47 }
0x2f40   :  { %7248 = vmatpush3.bf16.msk.msra.mxu0 %vm7762_vm4, %v4585_v47 }
0x2f41   :  { %7269 = vmatprep.subr.bf16.mxu0 %v10182_v27 }
0x2f43   :  { %7250 = vmatmul.mubr.msk.bf16.vlgmr.msra.gmra.mxu0 %vm243_vm1, %v7604_v57 }
0x2f44   :  { %7281 = vmatprep.mubr.msk.bf16.mxu0 %vm7664_vm12, %v10182_v27 }
0x3003   :  { %v7251_v1 = vpop.f32.mrf.mxu0 }
0x3004   :  { %v4647_v63 = vadd.f32 %v7251_v1, %v10243_v58  ;;  %v10253_v1 = vld [vmem:[#allocation24_spill] sm:$0xff]  ;;  %v10254_v58 = vld [vmem:[#allocation26_spill] sm:$0xff] }
0x3005   :  { %v4638_v19 = vpop.f32.mrf.mxu0 }
0x3006   :  { %v4639_v25 = vadd.f32 %v4638_v19, %v10245_v12 }
0x3007   :  { %v7252_v31 = vpop.f32.mrf.mxu0 }
0x3008   :  { %v4650_v60 = vadd.f32 %v7252_v31, %v10244_v5 }
0x3009   :  { %v4641_v62 = vpop.f32.mrf.mxu0 }
0x300a   :  { %v4654_v6 = vpack.c.bf16 %v4650_v60, %v4647_v63  ;;  %v4642_v15 = vadd.f32 %v4641_v62, %v10246_v38  ;;  %v10255_v62 = vld [vmem:[#allocation25_spill] sm:$0xff] }
0x300c   :  { %v4653_v54 = vpack.c.bf16 %v4642_v15, %v4639_v25  ;;  %4669 = vrot.lane.b32.xlu0 %v4654_v6, %s7659_s9  ;;  %v10256_v15 = vld [vmem:[#allocation27_spill] sm:$0xff] }
0x300e   :  { %4667 = vrot.lane.b32.xlu1 %v4653_v54, %s7659_s9 }
0x3010   :  { %4659 = vrot.lane.b32.xlu0 %v4654_v6, %s7660_s10 }
0x3012   :  { %4657 = vrot.lane.b32.xlu1 %v4653_v54, %s7660_s10 }
0x3014   :  { %4810 = vrot.lane.b32.xlu0 %v9195_v17, %s7659_s9 }
0x3016   :  { %4808 = vrot.lane.b32.xlu1 %v4794_v35, %s7659_s9 }
0x3018   :  { %4800 = vrot.lane.b32.xlu0 %v9195_v17, %s7660_s10 }
0x301a   :  { %4798 = vrot.lane.b32.xlu1 %v4794_v35, %s7660_s10 }
0x307e   :  { %v4670_v52 = vpop.permute.xlu0 %4669 }
0x307f   :  { %v4675_v43 = vsel %vm1477_vm11, %v4670_v52, 0  ;;  %7467 = vmatprep.subr.msk.bf16.mxu1 %vm1477_vm11, %v4670_v52 }
0x3080   :  { %7254 = vmatpush3.bf16.msra.mxu1 %v4675_v43  ;;  %v4668_v61 = vpop.permute.xlu1 %4667 }
0x3081   :  { %7468 = vmatprep.subr.msk.bf16.mxu1 %vm1477_vm11, %v4668_v61  ;;  %v4672_v0 = vsel %vm1477_vm11, %v4668_v61, 0 }
0x3082   :  { %v4660_v11 = vpop.permute.xlu0 %4659 }
0x3084   :  { %7256 = vmatpush3.bf16.msra.mxu1 %v4672_v0  ;;  %v4658_v42 = vpop.permute.xlu1 %4657 }
0x3085   :  { %7257 = vmatprep.subr.bf16.mxu1 %v4654_v6 }
0x3086   :  { %v4811_v56 = vpop.permute.xlu0 %4810 }
0x3087   :  { %v4816_v4 = vsel %vm198_vm2, %v4811_v56, 0 }
0x3088   :  { %7258 = vmatpush3.bf16.msra.mxu1 %v4654_v6  ;;  %v4809_v48 = vpop.permute.xlu1 %4808 }
0x3089   :  { %7259 = vmatprep.subr.bf16.mxu1 %v4653_v54  ;;  %v4813_v44 = vsel %vm198_vm2, %v4809_v48, 0 }
0x308a   :  { %v4801_v39 = vpop.permute.xlu0 %4800 }
0x308c   :  { %7260 = vmatpush3.bf16.msra.mxu1 %v4653_v54  ;;  %v4799_v7 = vpop.permute.xlu1 %4798 }
0x308d   :  { %7261 = vmatprep.subr.msk.bf16.mxu1 %vm7762_vm4, %v4660_v11 }
0x3090   :  { %7262 = vmatpush3.bf16.msk.msra.mxu1 %vm7762_vm4, %v4660_v11 }
0x3091   :  { %7263 = vmatprep.subr.msk.bf16.mxu1 %vm7762_vm4, %v4658_v42 }
0x3094   :  { %7264 = vmatpush3.bf16.msk.msra.mxu1 %vm7762_vm4, %v4658_v42 }
0x3095   :  { %7469 = vmatprep.subr.msk.bf16.mxu1 %vm198_vm2, %v4811_v56 }
0x3097   :  { %7266 = vmatmul.mubr.msk.bf16.vlgmr.msra.gmra.mxu1 %vm243_vm1, %v7605_v23  ;;  %v7609_v23 = vld [vmem:[%s10071_s1 + $0xe0] sm:$0x3] }
0x3098   :  { %7286 = vmatpush3.bf16.msra.mxu1 %v4816_v4  ;;  %7297 = vmatprep.mubr.msk.bf16.mxu1 %vm243_vm1, %v7606_v40  ;;  %v7610_v40 = vld [vmem:[%s10071_s1 + $0xf4] sm:$0xff]  }
0x3099   :  { %7470 = vmatprep.subr.msk.bf16.mxu1 %vm198_vm2, %v4809_v48 }
0x309c   :  { %7288 = vmatpush3.bf16.msra.mxu1 %v4813_v44 }
0x309d   :  { %7289 = vmatprep.subr.bf16.mxu1 %v9195_v17 }
0x30a0   :  { %7290 = vmatpush3.bf16.msra.mxu1 %v9195_v17  ;;  %v7607_v17 = vld [vmem:[%s10071_s1 + $0xec] sm:$0xff]  }
0x30a1   :  { %7291 = vmatprep.subr.bf16.mxu1 %v4794_v35 }
0x30a4   :  { %7292 = vmatpush3.bf16.msra.mxu1 %v4794_v35 }
0x30a5   :  { %7293 = vmatprep.subr.msk.bf16.mxu1 %vm7762_vm4, %v4801_v39 }
0x30a8   :  { %7294 = vmatpush3.bf16.msk.msra.mxu1 %vm7762_vm4, %v4801_v39 }
0x30a9   :  { %7295 = vmatprep.subr.msk.bf16.mxu1 %vm7762_vm4, %v4799_v7 }
0x30ac   :  { %7296 = vmatpush3.bf16.msk.msra.mxu1 %vm7762_vm4, %v4799_v7 }
0x30af   :  { %7298 = vmatmul.mubr.msk.bf16.vlgmr.msra.gmra.mxu1 %vm243_vm1, %v7607_v17 }
0x30b0   :  { %7321 = vmatprep.mubr.msk.bf16.mxu1 %vm100_vm0, %v7608_v13 }
0x3157   :  { %v7267_v28 = vpop.f32.mrf.mxu1 }
0x3158   :  { %v4720_v2 = vadd.f32 %v7267_v28, %v10249_v37  ;;  %v7611_v28 = vld [vmem:[%s10071_s1 + $0xfc] sm:$0xff]  }
0x3159   :  { %v4711_v50 = vpop.f32.mrf.mxu1 }
0x315a   :  { %v4712_v26 = vadd.f32 %v4711_v50, %v10250_v14  ;;  %v4728_v49 = vmax.f32 %v4720_v2, 0.0  ;;  %v7612_v50 = vld [vmem:[%s10071_s1 + $0x124] sm:$0xff]  }
0x315b   :  { %v7268_v59 = vpop.f32.mrf.mxu1 }
0x315c   :  { %v4723_v21 = vadd.f32 %v7268_v59, %v10251_v46  ;;  %v4726_v55 = vmax.f32 %v4712_v26, 0.0 }
0x315d   :  { %v4714_v41 = vpop.f32.mrf.mxu1 }
0x315e   :  { %v4729_v32 = vmax.f32 %v4723_v21, 0.0  ;;  %v4715_v45 = vadd.f32 %v4714_v41, %v10252_v22  ;;  %v10257_v21 = vld [vmem:[#allocation28_spill] sm:$0xff] }
0x3160   :  { %v4731_v29 = vpack.c.bf16 %v4729_v32, %v4728_v49  ;;  %v4727_v34 = vmax.f32 %v4715_v45, 0.0  ;;  %v10258_v32 = vld [vmem:[#allocation30_spill] sm:$0xff]  ;;  %v10259_v45 = vld [vmem:[#allocation29_spill] sm:$0xff] }
0x3162   :  { %v4730_v47 = vpack.c.bf16 %v4727_v34, %v4726_v55  ;;  %4746 = vrot.lane.b32.xlu0 %v4731_v29, %s7659_s9 }
0x3164   :  { %4744 = vrot.lane.b32.xlu1 %v4730_v47, %s7659_s9 }
0x3166   :  { %4736 = vrot.lane.b32.xlu0 %v4731_v29, %s7660_s10 }
0x3168   :  { %4734 = vrot.lane.b32.xlu1 %v4730_v47, %s7660_s10 }
0x316f   :  { %v7299_v57 = vpop.f32.mrf.mxu1 }
0x3170   :  { %v9593_v19 = vadd.f32 %v7299_v57, %v10253_v1  ;;  %v10260_v57 = vld [vmem:[#allocation31_spill] sm:$0xff] }
0x3171   :  { %v4852_v31 = vpop.f32.mrf.mxu1 }
0x3172   :  { %v9596_v63 = vadd.f32 %v4852_v31, %v10254_v58  ;;  %v4869_v60 = vmax.f32 %v9593_v19, 0.0 }
0x3173   :  { %v7300_v5 = vpop.f32.mrf.mxu1 }
0x3174   :  { %v9600_v12 = vadd.f32 %v7300_v5, %v10255_v62  ;;  %v4867_v6 = vmax.f32 %v9596_v63, 0.0  ;;  %v4873_v53 = vmax.f32 %v4869_v60, 0.0 }
0x3175   :  { %v4855_v25 = vpop.f32.mrf.mxu1 }
0x3176   :  { %v4870_v38 = vmax.f32 %v9600_v12, 0.0  ;;  %v9605_v54 = vadd.f32 %v4855_v25, %v10256_v15  ;;  %v4871_v30 = vmax.f32 %v4867_v6, 0.0  ;;  %v7613_v25 = vld [vmem:[%s10071_s1 + $0x10c] sm:$0xff]   ;;  %v7614_v15 = vld [vmem:[%s10071_s1 + $0x114] sm:$0xff]  }
0x3178   :  { %v4874_v18 = vmax.f32 %v4870_v38, 0.0  ;;  %v4868_v20 = vmax.f32 %v9605_v54, 0.0 }
0x317a   :  { %v4876_v35 = vpack.c.bf16 %v4874_v18, %v4873_v53  ;;  %v4872_v52 = vmax.f32 %v4868_v20, 0.0  ;;  %v10261_v18 = vld [vmem:[#allocation32_spill] sm:$0xff] }
0x317c   :  { %v4875_v43 = vpack.c.bf16 %v4872_v52, %v4871_v30  ;;  %4891 = vrot.lane.b32.xlu0 %v4876_v35, %s7661_s27  ;;  %v10262_v52 = vld [vmem:[#allocation34_spill] sm:$0xff] }
0x317e   :  { %4889 = vrot.lane.b32.xlu1 %v4875_v43, %s7661_s27 }
0x3180   :  { %4881 = vrot.lane.b32.xlu0 %v4876_v35, %s7662_s28 }
0x3182   :  { %4879 = vrot.lane.b32.xlu1 %v4875_v43, %s7662_s28 }
0x31d4   :  { %v4747_v61 = vpop.permute.xlu0 %4746 }
0x31d5   :  { %v4752_v0 = vsel %vm1477_vm11, %v4747_v61, 0 }
0x31d6   :  { %7270 = vmatpush3.bf16.msra.mxu0 %v4752_v0  ;;  %v4745_v11 = vpop.permute.xlu1 %4744 }
0x31d7   :  { %7271 = vmatprep.subr.bf16.mxu0 %v10182_v27  ;;  %v4749_v42 = vsel %vm1477_vm11, %v4745_v11, 0  ;;  %v10263_v11 = vld [vmem:[#allocation33_spill] sm:$0xff] }
0x31d8   :  { %v4737_v56 = vpop.permute.xlu0 %4736 }
0x31da   :  { %7272 = vmatpush3.bf16.msra.mxu0 %v4749_v42  ;;  %v4735_v4 = vpop.permute.xlu1 %4734 }
0x31db   :  { %7273 = vmatprep.subr.bf16.mxu0 %v10182_v27 }
0x31de   :  { %7274 = vmatpush3.bf16.msra.mxu0 %v4731_v29 }
0x31df   :  { %7275 = vmatprep.subr.bf16.mxu0 %v10182_v27 }
0x31e2   :  { %7276 = vmatpush3.bf16.msra.mxu0 %v4730_v47 }
0x31e3   :  { %7277 = vmatprep.subr.bf16.mxu0 %v10182_v27 }
0x31e6   :  { %7278 = vmatpush3.bf16.msk.msra.mxu0 %vm7762_vm4, %v4737_v56 }
0x31e7   :  { %7279 = vmatprep.subr.bf16.mxu0 %v10182_v27 }
0x31ea   :  { %7280 = vmatpush3.bf16.msk.msra.mxu0 %vm7762_vm4, %v4735_v4 }
0x31ed   :  { %7282 = vmatmul.mubr.msk.bf16.vlgmr.msra.gmra.mxu0 %vm243_vm1, %v7609_v23 }
0x31ee   :  { %v4892_v48 = vpop.permute.xlu0 %4891  ;;  %7313 = vmatprep.mubr.msk.bf16.mxu0 %vm243_vm1, %v7610_v40 }
0x31ef   :  { %v4897_v44 = vsel %vm326_vm5, %v4892_v48, 0  ;;  %7471 = vmatprep.subr.msk.bf16.mxu0 %vm326_vm5, %v4892_v48  ;;  %v10264_v48 = vld [vmem:[#allocation35_spill] sm:$0xff] }
0x31f0   :  { %7302 = vmatpush3.bf16.msra.mxu0 %v4897_v44  ;;  %v4890_v39 = vpop.permute.xlu1 %4889 }
0x31f1   :  { %7472 = vmatprep.subr.msk.bf16.mxu0 %vm326_vm5, %v4890_v39  ;;  %v4894_v7 = vsel %vm326_vm5, %v4890_v39, 0 }
0x31f2   :  { %v4882_v17 = vpop.permute.xlu0 %4881 }
0x31f4   :  { %7304 = vmatpush3.bf16.msra.mxu0 %v4894_v7  ;;  %v4880_v13 = vpop.permute.xlu1 %4879 }
0x31f5   :  { %7305 = vmatprep.subr.bf16.mxu0 %v4876_v35 }
0x31f8   :  { %7306 = vmatpush3.bf16.msra.mxu0 %v4876_v35 }
0x31f9   :  { %7307 = vmatprep.subr.bf16.mxu0 %v4875_v43 }
0x31fc   :  { %7308 = vmatpush3.bf16.msra.mxu0 %v4875_v43 }
0x31fd   :  { %7309 = vmatprep.subr.msk.bf16.mxu0 %vm7854_vm7, %v4882_v17 }
0x3200   :  { %7310 = vmatpush3.bf16.msk.msra.mxu0 %vm7854_vm7, %v4882_v17 }
0x3201   :  { %7311 = vmatprep.subr.msk.bf16.mxu0 %vm7854_vm7, %v4880_v13 }
0x3204   :  { %7312 = vmatpush3.bf16.msk.msra.mxu0 %vm7854_vm7, %v4880_v13 }
0x3207   :  { %7314 = vmatmul.mubr.msk.bf16.vlgmr.msra.gmra.mxu0 %vm243_vm1, %v7611_v28  ;;  %v7615_v28 = vld [vmem:[%s10071_s1 + $0x11c] sm:$0xff]  }
0x3208   :  { %7345 = vmatprep.mubr.msk.bf16.mxu0 %vm100_vm0, %v7612_v50  ;;  %v7616_v50 = vld [vmem:[%s10071_s1 + $0x134] sm:$0xff]  }
0x32ad   :  { %v9659_v37 = vpop.f32.mrf.mxu0 }
0x32af   :  { %v7283_v2 = vpop.f32.mrf.mxu0 }
0x32b1   :  { %v4791_v59 = vpop.f32.mrf.mxu0 }
0x32b3   :  { %v7284_v14 = vpop.f32.mrf.mxu0 }
0x32b4   :  { %v10265_v14 = vld [vmem:[#allocation36_spill] sm:$0xff] }
0x32c7   :  { %v7315_v26 = vpop.f32.mrf.mxu0 }
0x32c8   :  { %v4942_v41 = vadd.f32 %v7315_v26, %v10257_v21  ;;  %v10266_v21 = vld [vmem:[#allocation38_spill] sm:$0xff] }
0x32c9   :  { %v4933_v46 = vpop.f32.mrf.mxu0 }
0x32ca   :  { %v4934_v22 = vadd.f32 %v4933_v46, %v10258_v32  ;;  %v4950_v34 = vmax.f32 %v4942_v41, 0.0 }
0x32cb   :  { %v7316_v49 = vpop.f32.mrf.mxu0 }
0x32cc   :  { %v4945_v55 = vadd.f32 %v7316_v49, %v10259_v45  ;;  %v4948_v31 = vmax.f32 %v4934_v22, 0.0  ;;  %v10267_v49 = vld [vmem:[#allocation37_spill] sm:$0xff] }
0x32cd   :  { %v4936_v29 = vpop.f32.mrf.mxu0 }
0x32ce   :  { %v4951_v47 = vmax.f32 %v4945_v55, 0.0  ;;  %v4937_v1 = vadd.f32 %v4936_v29, %v10260_v57  ;;  %v10268_v29 = vld [vmem:[#allocation39_spill] sm:$0xff] }
0x32d0   :  { %v4953_v58 = vpack.c.bf16 %v4951_v47, %v4950_v34  ;;  %v4949_v5 = vmax.f32 %v4937_v1, 0.0 }
0x32d2   :  { %v4952_v62 = vpack.c.bf16 %v4949_v5, %v4948_v31  ;;  %7317 = vmatprep.subr.bf16.mxu1 %v4953_v58  ;;  %v7618_v5 = vld [vmem:[%s10071_s1 + $0x12c] sm:$0xff]  }
0x32d3   :  { %7318 = vmatpush3.bf16.msra.mxu1 %v4953_v58  ;;  %v7617_v58 = vld [vmem:[%s10073_s3 + $0x30] ss:$8 sps:$4 sm:$0xff]  }
0x32d4   :  { %7319 = vmatprep.subr.bf16.mxu1 %v4952_v62 }
0x32d7   :  { %7320 = vmatpush3.bf16.msra.mxu1 %v4952_v62 }
0x32da   :  { %7322 = vmatmul.mubr.msk.bf16.vlgmr.msra.gmra.mxu1 %vm100_vm0, %v7613_v25 }
0x32db   :  { %7337 = vmatprep.mubr.msk.bf16.mxu1 %vm243_vm1, %v7614_v15 }
0x339a   :  { %v7323_v53 = vpop.f32.mrf.mxu1 }
0x339b   :  { %v4997_v30 = vadd.f32 %v7323_v53, %v10261_v18  ;;  %v10269_v53 = vld [vmem:[#allocation41_spill] sm:$0xff] }
0x339c   :  { %v4988_v35 = vpop.f32.mrf.mxu1 }
0x339d   :  { %v4989_v43 = vadd.f32 %v4988_v35, %v10262_v52  ;;  %v9677_v0 = vadd.f32 %v4997_v30, %v4869_v60  ;;  %v10270_v30 = vld [vmem:[#allocation42_spill] sm:$0xff]  ;;  %v10271_v52 = vld [vmem:[#allocation43_spill] sm:$0xff] }
0x339e   :  { %v7324_v61 = vpop.f32.mrf.mxu1 }
0x339f   :  { %v5000_v42 = vadd.f32 %v7324_v61, %v10263_v11  ;;  %v9682_v4 = vadd.f32 %v4989_v43, %v4867_v6  ;;  %v5009_v44 = vmax.f32 %v9677_v0, 0.0  ;;  %v10272_v11 = vld [vmem:[#allocation40_spill] sm:$0xff] }
0x33a0   :  { %v4991_v56 = vpop.f32.mrf.mxu1 }
0x33a1   :  { %v9686_v23 = vadd.f32 %v5000_v42, %v4870_v38  ;;  %v4992_v40 = vadd.f32 %v4991_v56, %v10264_v48  ;;  %v5007_v60 = vmax.f32 %v9682_v4, 0.0 }
0x33a3   :  { %v5010_v39 = vmax.f32 %v9686_v23, 0.0  ;;  %v9693_v19 = vadd.f32 %v4992_v40, %v4868_v20 }
0x33a5   :  { %v5012_v7 = vpack.c.bf16 %v5010_v39, %v5009_v44  ;;  %v5008_v63 = vmax.f32 %v9693_v19, 0.0 }
0x33a7   :  { %v5011_v6 = vpack.c.bf16 %v5008_v63, %v5007_v60  ;;  %5027 = vrot.lane.b32.xlu0 %v5012_v7, %s7659_s9 }
0x33a9   :  { %5025 = vrot.lane.b32.xlu1 %v5011_v6, %s7659_s9 }
0x33ab   :  { %5017 = vrot.lane.b32.xlu0 %v5012_v7, %s7660_s10 }
0x33ad   :  { %5015 = vrot.lane.b32.xlu1 %v5011_v6, %s7660_s10 }
0x3419   :  { %v5028_v12 = vpop.permute.xlu0 %5027 }
0x341a   :  { %v5033_v38 = vsel %vm198_vm2, %v5028_v12, 0  ;;  %7473 = vmatprep.subr.msk.bf16.mxu1 %vm198_vm2, %v5028_v12 }
0x341b   :  { %7326 = vmatpush3.bf16.msra.mxu1 %v5033_v38  ;;  %v5026_v54 = vpop.permute.xlu1 %5025 }
0x341c   :  { %7474 = vmatprep.subr.msk.bf16.mxu1 %vm198_vm2, %v5026_v54  ;;  %v5030_v20 = vsel %vm198_vm2, %v5026_v54, 0 }
0x341d   :  { %v5018_v17 = vpop.permute.xlu0 %5017 }
0x341f   :  { %7328 = vmatpush3.bf16.msra.mxu1 %v5030_v20  ;;  %v5016_v13 = vpop.permute.xlu1 %5015 }
0x3420   :  { %7329 = vmatprep.subr.bf16.mxu1 %v5012_v7 }
0x3423   :  { %7330 = vmatpush3.bf16.msra.mxu1 %v5012_v7  ;;  %v7619_v7 = vld [vmem:[%s10071_s1 + $0x144] sm:$0xff]  }
0x3424   :  { %7331 = vmatprep.subr.bf16.mxu1 %v5011_v6 }
0x3427   :  { %7332 = vmatpush3.bf16.msra.mxu1 %v5011_v6 }
0x3428   :  { %7333 = vmatprep.subr.msk.bf16.mxu1 %vm7762_vm4, %v5018_v17 }
0x342b   :  { %7334 = vmatpush3.bf16.msk.msra.mxu1 %vm7762_vm4, %v5018_v17 }
0x342c   :  { %7335 = vmatprep.subr.msk.bf16.mxu1 %vm7762_vm4, %v5016_v13 }
0x342f   :  { %7336 = vmatpush3.bf16.msk.msra.mxu1 %vm7762_vm4, %v5016_v13 }
0x3432   :  { %7338 = vmatmul.mubr.msk.bf16.vlgmr.msra.gmra.mxu1 %vm243_vm1, %v7615_v28  ;;  %v7620_v28 = vld [vmem:[%s10071_s1 + $0x13c] sm:$0xff]  }
0x3433   :  { %7367 = vmatprep.mubr.msk.bf16.mxu1 %vm243_vm1, %v7616_v50  ;;  %v7621_v50 = vld [vmem:[%s10071_s1 + $0x154] sm:$0xff]  }
0x34f2   :  { %v7339_v2 = vpop.f32.mrf.mxu1 }
0x34f3   :  { %v5078_v26 = vadd.f32 %v7339_v2, %v10265_v14  ;;  %v10273_v14 = vld [vmem:[#allocation44_spill] sm:$0xff] }
0x34f4   :  { %v5069_v59 = vpop.f32.mrf.mxu1 }
0x34f5   :  { %v5070_v41 = vadd.f32 %v5069_v59, %v10266_v21  ;;  %v5086_v45 = vmax.f32 %v5078_v26, 0.0  ;;  %v10274_v21 = vld [vmem:[#allocation46_spill] sm:$0xff] }
0x34f6   :  { %v7340_v46 = vpop.f32.mrf.mxu1 }
0x34f7   :  { %v5081_v32 = vadd.f32 %v7340_v46, %v10267_v49  ;;  %v5084_v47 = vmax.f32 %v5070_v41, 0.0  ;;  %v10275_v49 = vld [vmem:[#allocation45_spill] sm:$0xff] }
0x34f8   :  { %v5072_v22 = vpop.f32.mrf.mxu1 }
0x34f9   :  { %v5087_v55 = vmax.f32 %v5081_v32, 0.0  ;;  %v5073_v34 = vadd.f32 %v5072_v22, %v10268_v29  ;;  %v10276_v29 = vld [vmem:[#allocation47_spill] sm:$0xff] }
0x34fb   :  { %v5089_v57 = vpack.c.bf16 %v5087_v55, %v5086_v45  ;;  %v5085_v1 = vmax.f32 %v5073_v34, 0.0 }
0x34fd   :  { %v5088_v31 = vpack.c.bf16 %v5085_v1, %v5084_v47  ;;  %7341 = vmatprep.subr.bf16.mxu0 %v5089_v57 }
0x34fe   :  { %7342 = vmatpush3.bf16.msra.mxu0 %v5089_v57 }
0x34ff   :  { %7343 = vmatprep.subr.bf16.mxu0 %v5088_v31 }
0x3502   :  { %7344 = vmatpush3.bf16.msra.mxu0 %v5088_v31 }
0x3503   :  { %7349 = vmatprep.subr.bf16.mxu0 %v7617_v58 }
0x3505   :  { %7346 = vmatmul.mubr.msk.bf16.vlgmr.msra.gmra.mxu0 %vm100_vm0, %v7618_v5 }
0x3506   :  { %7350 = vmatpush3.bf16.msra.mxu0 %v7617_v58 }
0x35c5   :  { %v7347_v62 = vpop.f32.mrf.mxu0 }
0x35c6   :  { %v5133_v43 = vadd.f32 %v7347_v62, %v10271_v52 }
0x35c7   :  { %v5124_v25 = vpop.f32.mrf.mxu0 }
0x35c8   :  { %v5125_v18 = vadd.f32 %v5124_v25, %v10269_v53  ;;  %v5141_v44 = vadd.f32 %v5133_v43, %v9677_v0  ;;  %v10277_v43 = vld [vmem:[#allocation48_spill] sm:$0xff] }
0x35c9   :  { %v7348_v15 = vpop.f32.mrf.mxu0 }
0x35ca   :  { %v5136_v35 = vadd.f32 %v7348_v15, %v10270_v30  ;;  %v5139_v48 = vadd.f32 %v5125_v18, %v9682_v4  ;;  %v7622_v18 = vld [vmem:[%s10071_s1 + $0x14c] sm:$0xff]   ;;  %v7623_v30 = vld [vmem:[%s10071_s1 + $0x164] sm:$0xff]  }
0x35cb   :  { %v5127_v61 = vpop.f32.mrf.mxu0 }
0x35cc   :  { %v5128_v42 = vadd.f32 %v5127_v61, %v10272_v11  ;;  %v5142_v56 = vadd.f32 %v5136_v35, %v9686_v23 }
0x35ce   :  { %v5140_v40 = vadd.f32 %v5128_v42, %v9693_v19  ;;  %v5144_v60 = vpack.c.bf16 %v5142_v56, %v5141_v44  ;;  %v10278_v42 = vld [vmem:[#allocation50_spill] sm:$0xff]  ;;  %v10279_v56 = vld [vmem:[#allocation49_spill] sm:$0xff] }
0x35d0   :  { %v5143_v39 = vpack.c.bf16 %v5140_v40, %v5139_v48 }
0x35d2   :  { %7351 = vmatprep.mubr.msk.bf16.mxu0 %vm763_vm8, %v5143_v39 }
0x35d3   :  { %7352 = vmatmul.mubr.msk.bf16.vlgmr.msra.gmra.mxu0 %vm763_vm8, %v5144_v60  ;;  %v10280_v60 = vld [vmem:[#allocation51_spill] sm:$0xff] }
0x35d4   :  { %7383 = vmatprep.mubr.msk.bf16.mxu0 %vm243_vm1, %v7619_v7 }
0x3693   :  { %v7353_v63 = vpop.f32.mrf.mxu0 }
0x3695   :  { %v5185_v23 = vpop.f32.mrf.mxu0 }
0x3697   :  { %v7354_v6 = vpop.f32.mrf.mxu0 }
0x3698   :  { %v5201_v4 = vpack.c.bf16 %v7354_v6, %v7353_v63 }
0x3699   :  { %v5188_v12 = vpop.f32.mrf.mxu0 }
0x369a   :  { %v5200_v19 = vpack.c.bf16 %v5188_v12, %v5185_v23  ;;  %5216 = vrot.lane.b32.xlu0 %v5201_v4, %s7659_s9  ;;  %v7624_v12 = vld [vmem:[%s10071_s1 + $0x15c] sm:$0xff]  }
0x369c   :  { %5214 = vrot.lane.b32.xlu1 %v5200_v19, %s7659_s9 }
0x369e   :  { %5206 = vrot.lane.b32.xlu0 %v5201_v4, %s7660_s10 }
0x36a0   :  { %5204 = vrot.lane.b32.xlu1 %v5200_v19, %s7660_s10 }
0x370c   :  { %v5217_v0 = vpop.permute.xlu0 %5216 }
0x370d   :  { %v5222_v38 = vsel %vm1477_vm11, %v5217_v0, 0  ;;  %7475 = vmatprep.subr.msk.bf16.mxu1 %vm1477_vm11, %v5217_v0 }
0x370e   :  { %7356 = vmatpush3.bf16.msra.mxu1 %v5222_v38  ;;  %v5215_v54 = vpop.permute.xlu1 %5214  ;;  %v10281_v38 = vld [vmem:[#allocation52_spill] sm:$0xff] }
0x370f   :  { %7476 = vmatprep.subr.msk.bf16.mxu1 %vm1477_vm11, %v5215_v54  ;;  %v5219_v20 = vsel %vm1477_vm11, %v5215_v54, 0 }
0x3710   :  { %v5207_v17 = vpop.permute.xlu0 %5206 }
0x3712   :  { %7358 = vmatpush3.bf16.msra.mxu1 %v5219_v20  ;;  %v5205_v13 = vpop.permute.xlu1 %5204 }
0x3713   :  { %7359 = vmatprep.subr.bf16.mxu1 %v5201_v4 }
0x3716   :  { %7360 = vmatpush3.bf16.msra.mxu1 %v5201_v4 }
0x3717   :  { %7361 = vmatprep.subr.bf16.mxu1 %v5200_v19 }
0x371a   :  { %7362 = vmatpush3.bf16.msra.mxu1 %v5200_v19  ;;  %v7625_v19 = vld [vmem:[%s10071_s1 + $0x174] sm:$0xff]  }
0x371b   :  { %7363 = vmatprep.subr.msk.bf16.mxu1 %vm7762_vm4, %v5207_v17 }
0x371e   :  { %7364 = vmatpush3.bf16.msk.msra.mxu1 %vm7762_vm4, %v5207_v17  ;;  %v10282_v17 = vld [vmem:[#allocation54_spill] sm:$0xff] }
0x371f   :  { %7365 = vmatprep.subr.msk.bf16.mxu1 %vm7762_vm4, %v5205_v13 }
0x3722   :  { %7366 = vmatpush3.bf16.msk.msra.mxu1 %vm7762_vm4, %v5205_v13 }
0x3725   :  { %7368 = vmatmul.mubr.msk.bf16.vlgmr.msra.gmra.mxu1 %vm243_vm1, %v7620_v28 }
0x3726   :  { %7391 = vmatprep.mubr.msk.bf16.mxu1 %vm100_vm0, %v7621_v50 }
0x37e5   :  { %v7369_v2 = vpop.f32.mrf.mxu1 }
0x37e6   :  { %v9771_v26 = vadd.f32 %v7369_v2, %v10273_v14  ;;  %v10283_v2 = vld [vmem:[#allocation53_spill] sm:$0xff] }
0x37e7   :  { %v5258_v59 = vpop.f32.mrf.mxu1 }
0x37e8   :  { %v9774_v41 = vadd.f32 %v5258_v59, %v10274_v21  ;;  %v5275_v45 = vmax.f32 %v9771_v26, 0.0 }
0x37e9   :  { %v7370_v46 = vpop.f32.mrf.mxu1 }
0x37ea   :  { %v9777_v32 = vadd.f32 %v7370_v46, %v10275_v49  ;;  %v5273_v47 = vmax.f32 %v9774_v41, 0.0  ;;  %v10284_v49 = vld [vmem:[#allocation55_spill] sm:$0xff] }
0x37eb   :  { %v5261_v22 = vpop.f32.mrf.mxu1 }
0x37ec   :  { %v5276_v55 = vmax.f32 %v9777_v32, 0.0  ;;  %v9782_v34 = vadd.f32 %v5261_v22, %v10276_v29 }
0x37ee   :  { %v5278_v57 = vpack.c.bf16 %v5276_v55, %v5275_v45  ;;  %v5274_v1 = vmax.f32 %v9782_v34, 0.0 }
0x37f0   :  { %v5277_v31 = vpack.c.bf16 %v5274_v1, %v5273_v47  ;;  %5293 = vrot.lane.b32.xlu0 %v5278_v57, %s7661_s27 }
0x37f2   :  { %5291 = vrot.lane.b32.xlu1 %v5277_v31, %s7661_s27 }
0x37f4   :  { %5283 = vrot.lane.b32.xlu0 %v5278_v57, %s7662_s28 }
0x37f6   :  { %5281 = vrot.lane.b32.xlu1 %v5277_v31, %s7662_s28 }
0x3862   :  { %v5294_v58 = vpop.permute.xlu0 %5293 }
0x3863   :  { %v5299_v5 = vsel %vm2545_vm13, %v5294_v58, 0  ;;  %7477 = vmatprep.subr.msk.bf16.mxu0 %vm2545_vm13, %v5294_v58 }
0x3864   :  { %7372 = vmatpush3.bf16.msra.mxu0 %v5299_v5  ;;  %v5292_v62 = vpop.permute.xlu1 %5291 }
0x3865   :  { %7478 = vmatprep.subr.msk.bf16.mxu0 %vm2545_vm13, %v5292_v62  ;;  %v5296_v25 = vsel %vm2545_vm13, %v5292_v62, 0  ;;  %v7626_v62 = vld [vmem:[%s10071_s1 + $0x16c] sm:$0xff]  }
0x3866   :  { %v5284_v15 = vpop.permute.xlu0 %5283 }
0x3868   :  { %7374 = vmatpush3.bf16.msra.mxu0 %v5296_v25  ;;  %v5282_v53 = vpop.permute.xlu1 %5281  ;;  %v10285_v25 = vmov 0  }
0x3869   :  { %7375 = vmatprep.subr.bf16.mxu0 %v5278_v57 }
0x386c   :  { %7376 = vmatpush3.bf16.msra.mxu0 %v5278_v57 }
0x386d   :  { %7377 = vmatprep.subr.bf16.mxu0 %v5277_v31 }
0x3870   :  { %7378 = vmatpush3.bf16.msra.mxu0 %v5277_v31 }
0x3871   :  { %7379 = vmatprep.subr.msk.bf16.mxu0 %vm7854_vm7, %v5284_v15 }
0x3874   :  { %7380 = vmatpush3.bf16.msk.msra.mxu0 %vm7854_vm7, %v5284_v15 }
0x3875   :  { %7381 = vmatprep.subr.msk.bf16.mxu0 %vm7854_vm7, %v5282_v53 }
0x3878   :  { %7382 = vmatpush3.bf16.msk.msra.mxu0 %vm7854_vm7, %v5282_v53 }
0x387b   :  { %7384 = vmatmul.mubr.msk.bf16.vlgmr.msra.gmra.mxu0 %vm243_vm1, %v7622_v18  ;;  %v10286_v18 = vld [vmem:[#allocation56_spill] sm:$0xff] }
0x387c   :  { %7407 = vmatprep.mubr.msk.bf16.mxu0 %vm243_vm1, %v7623_v30 }
0x393b   :  { %v7385_v35 = vpop.f32.mrf.mxu0 }
0x393c   :  { %v5344_v61 = vadd.f32 %v7385_v35, %v10277_v43 }
0x393d   :  { %v5335_v52 = vpop.f32.mrf.mxu0 }
0x393e   :  { %v5336_v16 = vadd.f32 %v5335_v52, %v10278_v42  ;;  %v5352_v44 = vmax.f32 %v5344_v61, 0.0  ;;  %v10287_v52 = vld [vmem:[#allocation58_spill] sm:$0xff]  ;;  %v10288_v61 = vld [vmem:[#allocation57_spill] sm:$0xff] }
0x393f   :  { %v7386_v11 = vpop.f32.mrf.mxu0 }
0x3940   :  { %v5347_v48 = vadd.f32 %v7386_v11, %v10279_v56  ;;  %v5350_v63 = vmax.f32 %v5336_v16, 0.0 }
0x3941   :  { %v5338_v40 = vpop.f32.mrf.mxu0 }
0x3942   :  { %v5353_v39 = vmax.f32 %v5347_v48, 0.0  ;;  %v5339_v7 = vadd.f32 %v5338_v40, %v10280_v60  ;;  %v10289_v48 = vld [vmem:[#allocation59_spill] sm:$0xff] }
0x3944   :  { %v5355_v23 = vpack.c.bf16 %v5353_v39, %v5352_v44  ;;  %v5351_v6 = vmax.f32 %v5339_v7, 0.0 }
0x3946   :  { %v5354_v4 = vpack.c.bf16 %v5351_v6, %v5350_v63  ;;  %7387 = vmatprep.subr.bf16.mxu1 %v5355_v23  ;;  %v7627_v63 = vld [vmem:[%s10073_s3 + $0x74] ss:$8 sps:$4 sm:$0xff]   ;;  %v7629_v6 = vld [vmem:[%s10073_s3 + $0x70] ss:$8 sps:$4 sm:$0xff]  }
0x3947   :  { %7388 = vmatpush3.bf16.msra.mxu1 %v5355_v23  ;;  %v7628_v23 = vld [vmem:[%s10071_s1 + $0x17c] sm:$0xff]  }
0x3948   :  { %7389 = vmatprep.subr.bf16.mxu1 %v5354_v4 }
0x394b   :  { %7390 = vmatpush3.bf16.msra.mxu1 %v5354_v4  ;;  %v7630_v4 = vld [vmem:[%s10073_s3 + $0x64] ss:$8 sps:$4 sm:$0xff]  }
0x394e   :  { %7392 = vmatmul.mubr.msk.bf16.vlgmr.msra.gmra.mxu1 %vm100_vm0, %v7624_v12  ;;  %v7631_v12 = vld [vmem:[%s10073_s3 + $0x60] ss:$8 sps:$4 sm:$0xff]  }
0x394f   :  { %7415 = vmatprep.mubr.msk.bf16.mxu1 %vm100_vm0, %v7625_v19  ;;  %v7632_v19 = vld [vmem:[%s10073_s3 + $0x54] ss:$8 sps:$4 sm:$0xff]  }
0x3a0e   :  { %v7393_v0 = vpop.f32.mrf.mxu1 }
0x3a0f   :  { %v5399_v54 = vadd.f32 %v7393_v0, %v10281_v38  ;;  %v7633_v0 = vld [vmem:[%s10073_s3 + $0x50] ss:$8 sps:$4 sm:$0xff]   ;;  %v7634_v38 = vld [vmem:[%s10073_s3 + $0x44] ss:$8 sps:$4 sm:$0xff]  }
0x3a10   :  { %v5390_v20 = vpop.f32.mrf.mxu1 }
0x3a11   :  { %v5391_v13 = vadd.f32 %v5390_v20, %v10282_v17  ;;  %v9825_v50 = vadd.f32 %v5399_v54, %v9771_v26  ;;  %v7635_v54 = vld [vmem:[%s10073_s3 + $0x40] ss:$8 sps:$4 sm:$0xff]  }
0x3a12   :  { %v7394_v28 = vpop.f32.mrf.mxu1 }
0x3a13   :  { %v5402_v59 = vadd.f32 %v7394_v28, %v10283_v2  ;;  %v9829_v46 = vadd.f32 %v5391_v13, %v9774_v41  ;;  %v5411_v45 = vmax.f32 %v9825_v50, 0.0  ;;  %v10290_v28 = vld [vmem:[#allocation60_spill] sm:$0xff] }
0x3a14   :  { %v5393_v14 = vpop.f32.mrf.mxu1 }
0x3a15   :  { %v9832_v21 = vadd.f32 %v5402_v59, %v9777_v32  ;;  %v5394_v22 = vadd.f32 %v5393_v14, %v10284_v49  ;;  %v5409_v26 = vmax.f32 %v9829_v46, 0.0  ;;  %v10291_v14 = vld [vmem:[#allocation61_spill] sm:$0xff] }
0x3a17   :  { %v5412_v55 = vmax.f32 %v9832_v21, 0.0  ;;  %v9838_v29 = vadd.f32 %v5394_v22, %v9782_v34 }
0x3a19   :  { %v5414_v47 = vpack.c.bf16 %v5412_v55, %v5411_v45  ;;  %v5410_v57 = vmax.f32 %v9838_v29, 0.0  ;;  %v10292_v55 = vld [vmem:[#allocation62_spill] sm:$0xff] }
0x3a1b   :  { %v5413_v1 = vpack.c.bf16 %v5410_v57, %v5409_v26  ;;  %5429 = vrot.lane.b32.xlu0 %v5414_v47, %s7659_s9  ;;  %v10293_v57 = vld [vmem:[#allocation63_spill] sm:$0xff] }
0x3a1d   :  { %5427 = vrot.lane.b32.xlu1 %v5413_v1, %s7659_s9 }
0x3a1f   :  { %5419 = vrot.lane.b32.xlu0 %v5414_v47, %s7660_s10 }
0x3a21   :  { %5417 = vrot.lane.b32.xlu1 %v5413_v1, %s7660_s10 }
0x3a8d   :  { %v5430_v41 = vpop.permute.xlu0 %5429 }
0x3a8e   :  { %v5435_v32 = vsel %vm1477_vm11, %v5430_v41, 0  ;;  %7479 = vmatprep.subr.msk.bf16.mxu0 %vm1477_vm11, %v5430_v41 }
0x3a8f   :  { %7396 = vmatpush3.bf16.msra.mxu0 %v5435_v32  ;;  %v5428_v34 = vpop.permute.xlu1 %5427 }
0x3a90   :  { %7480 = vmatprep.subr.msk.bf16.mxu0 %vm1477_vm11, %v5428_v34  ;;  %v5432_v31 = vsel %vm1477_vm11, %v5428_v34, 0 }
0x3a91   :  { %v5420_v58 = vpop.permute.xlu0 %5419 }
0x3a93   :  { %7398 = vmatpush3.bf16.msra.mxu0 %v5432_v31  ;;  %v5418_v5 = vpop.permute.xlu1 %5417 }
0x3a94   :  { %7399 = vmatprep.subr.bf16.mxu0 %v5414_v47 }
0x3a97   :  { %7400 = vmatpush3.bf16.msra.mxu0 %v5414_v47 }
0x3a98   :  { %7401 = vmatprep.subr.bf16.mxu0 %v5413_v1 }
0x3a9b   :  { %7402 = vmatpush3.bf16.msra.mxu0 %v5413_v1 }
0x3a9c   :  { %7403 = vmatprep.subr.msk.bf16.mxu0 %vm7762_vm4, %v5420_v58 }
0x3a9f   :  { %7404 = vmatpush3.bf16.msk.msra.mxu0 %vm7762_vm4, %v5420_v58 }
0x3aa0   :  { %7405 = vmatprep.subr.msk.bf16.mxu0 %vm7762_vm4, %v5418_v5 }
0x3aa3   :  { %7406 = vmatpush3.bf16.msk.msra.mxu0 %vm7762_vm4, %v5418_v5 }
0x3aa6   :  { %7408 = vmatmul.mubr.msk.bf16.vlgmr.msra.gmra.mxu0 %vm243_vm1, %v7626_v62 }
0x3aa7   :  { %5682 = vmatprep.mubr.bf16.mxu0 %v10285_v25 }
0x3b66   :  { %v7409_v15 = vpop.f32.mrf.mxu0 }
0x3b67   :  { %v5480_v30 = vadd.f32 %v7409_v15, %v10286_v18 }
0x3b68   :  { %v5471_v53 = vpop.f32.mrf.mxu0 }
0x3b69   :  { %v5472_v43 = vadd.f32 %v5471_v53, %v10287_v52  ;;  %v5488_v16 = vmax.f32 %v5480_v30, 0.0 }
0x3b6a   :  { %v7410_v35 = vpop.f32.mrf.mxu0 }
0x3b6b   :  { %v5483_v11 = vadd.f32 %v7410_v35, %v10288_v61  ;;  %v5486_v44 = vmax.f32 %v5472_v43, 0.0 }
0x3b6c   :  { %v5474_v42 = vpop.f32.mrf.mxu0 }
0x3b6d   :  { %v5489_v56 = vmax.f32 %v5483_v11, 0.0  ;;  %v5475_v40 = vadd.f32 %v5474_v42, %v10289_v48 }
0x3b6f   :  { %v5491_v39 = vpack.c.bf16 %v5489_v56, %v5488_v16  ;;  %v5487_v60 = vmax.f32 %v5475_v40, 0.0 }
0x3b71   :  { %v5490_v7 = vpack.c.bf16 %v5487_v60, %v5486_v44  ;;  %7411 = vmatprep.subr.bf16.mxu1 %v5491_v39  ;;  %v7636_v60 = vld [vmem:[%s10071_s1 + $0x184] sm:$0xff]  }
0x3b72   :  { %7412 = vmatpush3.bf16.msra.mxu1 %v5491_v39 }
0x3b73   :  { %7413 = vmatprep.subr.bf16.mxu1 %v5490_v7 }
0x3b76   :  { %7414 = vmatpush3.bf16.msra.mxu1 %v5490_v7  ;;  %v7637_v7 = vld [vmem:[%s10071_s1 + $0x18c] sm:$0xff]  }
0x3b77   :  { %5561 = vmatprep.subr.bf16.mxu1 %v7627_v63 }
0x3b79   :  { %7416 = vmatmul.mubr.msk.bf16.vlgmr.msra.gmra.mxu1 %vm100_vm0, %v7628_v23  ;;  %vm10294_vm0 = vcmask 7168  }
0x3b7a   :  { %5562 = vmatpush1.bf16.msra.mxu1 %v7629_v6  ;;  %5585 = vmatprep.mubr.bf16.mxu1 %v10285_v25  ;;  %vm10295_vm2 = vmmov %vm10294_vm0 }
0x3b7b   :  { %5563 = vmatprep.subr.bf16.mxu1 %v7630_v4  ;;  %vm10300_vm5 = vmmov %vm10294_vm0 }
0x3b7c   :  { %vm10301_vm7 = vmmov %vm10294_vm0 }
0x3b7d   :  { %vm10302_vm8 = vmmov %vm10294_vm0 }
0x3b7e   :  { %5564 = vmatpush1.bf16.msra.mxu1 %v7631_v12  ;;  %vm10303_vm9 = vmmov %vm10294_vm0 }
0x3b7f   :  { %5565 = vmatprep.subr.bf16.mxu1 %v7632_v19 }
0x3b82   :  { %5566 = vmatpush1.bf16.msra.mxu1 %v7633_v0 }
0x3b83   :  { %5567 = vmatprep.subr.bf16.mxu1 %v7634_v38  ;;  %v10296_v38 = vld [vmem:[#allocation65_spill] sm:$0xff] }
0x3b86   :  { %5568 = vmatpush1.bf16.msra.mxu1 %v7635_v54 }
0x3c39   :  { %v7417_v20 = vpop.f32.mrf.mxu1 }
0x3c3a   :  { %v5535_v1 = vadd.f32 %v7417_v20, %v10293_v57  ;;  %v10297_v20 = vld [vmem:[#allocation64_spill] sm:$0xff] }
0x3c3b   :  { %v5526_v17 = vpop.f32.mrf.mxu1 }
0x3c3c   :  { %v5527_v2 = vadd.f32 %v5526_v17, %v10290_v28  ;;  %v5543_v32 = vadd.f32 %v5535_v1, %v9825_v50  ;;  %v10298_v28 = vld [vmem:[#allocation66_spill] sm:$0xff] }
0x3c3d   :  { %v7418_v13 = vpop.f32.mrf.mxu1 }
0x3c3e   :  { %v5541_v22 = vadd.f32 %v5527_v2, %v9829_v46  ;;  %v5538_v26 = vadd.f32 %v7418_v13, %v10292_v55 }
0x3c3f   :  { %v5529_v59 = vpop.f32.mrf.mxu1 }
0x3c40   :  { %v5530_v49 = vadd.f32 %v5529_v59, %v10291_v14  ;;  %v5544_v41 = vadd.f32 %v5538_v26, %v9832_v21 }
0x3c42   :  { %v5542_v45 = vadd.f32 %v5530_v49, %v9838_v29  ;;  %v5546_v34 = vpack.c.bf16 %v5544_v41, %v5543_v32 }
0x3c44   :  { %v5545_v47 = vpack.c.bf16 %v5542_v45, %v5541_v22  ;;  %v10299_v22 = vld [vmem:[#allocation67_spill] sm:$0xff] }
0x3c46   :  { %6333 = vmatmul.mubr.msk.bf16.vlgmr.msra.gmra.mxu1 %vm3022_vm14, %v5545_v47 }
0x3c47   :  { %5595 = vmatprep.mubr.bf16.mxu1 %v10285_v25 }
0x3c4e   :  { %6334 = vmatmul.mubr.msk.bf16.gmra.mxu1 %vm3022_vm14, %v5546_v34 }
0x3c4f   :  { %5779 = vmatprep.mubr.bf16.mxu1 %v10285_v25 }
0x3d06   :  { %v5587_v46 = vpop.f32.mrf.mxu1 }
0x3d08   :  { %v5589_v29 = vpop.f32.mrf.mxu1 }
0x3d0a   :  { %v5591_v31 = vpop.f32.mrf.mxu1 }
0x3d0b   :  { %v5606_v21 = vpack.c.bf16 %v5591_v31, %v5587_v46 }
0x3d0c   :  { %v5593_v58 = vpop.f32.mrf.mxu1 }
0x3d0d   :  { %v5607_v50 = vpack.c.bf16 %v5593_v58, %v5589_v29 }
0x3d0e   :  { %v5597_v5 = vpop.f32.mrf.mxu1 }
0x3d10   :  { %v5599_v62 = vpop.f32.mrf.mxu1 }
0x3d12   :  { %v5601_v15 = vpop.f32.mrf.mxu1 }
0x3d13   :  { %v5608_v53 = vpack.c.bf16 %v5601_v15, %v5597_v5 }
0x3d14   :  { %v5603_v18 = vpop.f32.mrf.mxu1 }
0x3d15   :  { %v5609_v30 = vpack.c.bf16 %v5603_v18, %v5599_v62  ;;  %5636 = vrot.lane.b32.xlu0 %v5608_v53, %s7659_s9 }
0x3d17   :  { %5638 = vrot.lane.b32.xlu1 %v5609_v30, %s7659_s9 }
0x3d19   :  { %5632 = vrot.lane.b32.xlu0 %v5606_v21, %s7659_s9 }
0x3d1b   :  { %5634 = vrot.lane.b32.xlu1 %v5607_v50, %s7659_s9 }
0x3d1d   :  { %5618 = vrot.lane.b32.xlu0 %v5608_v53, %s7660_s10 }
0x3d1f   :  { %5620 = vrot.lane.b32.xlu1 %v5609_v30, %s7660_s10 }
0x3d21   :  { %5614 = vrot.lane.b32.xlu0 %v5606_v21, %s7660_s10 }
0x3d23   :  { %5616 = vrot.lane.b32.xlu1 %v5607_v50, %s7660_s10 }
0x3d87   :  { %v5637_v35 = vpop.permute.xlu0 %5636 }
0x3d89   :  { %v5639_v52 = vpop.permute.xlu1 %5638 }
0x3d8a   :  { %v5641_v43 = vsel %vm3117_vm15, %v5637_v35, %v5639_v52  ;;  %6335 = vmatprep.subr.msk.bf16.mxu0 %vm3117_vm15, %v5639_v52  ;;  %v7641_v35 = vld [vmem:[%s10073_s3 + $0x160] ss:$8 sps:$4 sm:$0xff]  }
0x3d8b   :  { %5655 = vmatpush1.bf16.msra.mxu0 %v5641_v43  ;;  %v5633_v61 = vpop.permute.xlu0 %5632  ;;  %v7642_v52 = vld [vmem:[%s10073_s3 + $0xe0] ss:$8 sps:$4 sm:$0xff]   ;;  %v7643_v43 = vld [vmem:[%s10073_s3 + $0x150] ss:$8 sps:$4 sm:$0xff]  }
0x3d8d   :  { %v5635_v11 = vpop.permute.xlu1 %5634 }
0x3d8e   :  { %v5640_v42 = vsel %vm3117_vm15, %v5633_v61, %v5635_v11  ;;  %6336 = vmatprep.subr.msk.bf16.mxu0 %vm3117_vm15, %v5635_v11  ;;  %v7645_v61 = vld [vmem:[%s10073_s3 + $0xd0] ss:$8 sps:$4 sm:$0xff]   ;;  %v7646_v11 = vld [vmem:[%s10073_s3 + $0x140] ss:$8 sps:$4 sm:$0xff]  }
0x3d8f   :  { %5657 = vmatpush1.bf16.msra.mxu0 %v5640_v42  ;;  %v5619_v56 = vpop.permute.xlu0 %5618  ;;  %v7647_v42 = vld [vmem:[%s10073_s3 + $0xc0] ss:$8 sps:$4 sm:$0xff]  }
0x3d90   :  { %5658 = vmatprep.subr.bf16.mxu0 %v5609_v30  ;;  %v7638_v30 = vld [vmem:[%s10073_s3 + $0x170] ss:$8 sps:$4 sm:$0xff]  }
0x3d91   :  { %v5621_v16 = vpop.permute.xlu1 %5620 }
0x3d92   :  { %v5623_v48 = vsel %vm10294_vm0, %v5619_v56, %v5621_v16  ;;  %v7648_v16 = vld [vmem:[%s10073_s3 + $0x130] ss:$8 sps:$4 sm:$0xff]  }
0x3d93   :  { %5659 = vmatpush1.bf16.msra.mxu0 %v5608_v53  ;;  %v5615_v44 = vpop.permute.xlu0 %5614 }
0x3d94   :  { %5660 = vmatprep.subr.bf16.mxu0 %v5607_v50  ;;  %v7640_v50 = vld [vmem:[%s10073_s3 + $0xf0] ss:$8 sps:$4 sm:$0xff]  }
0x3d95   :  { %v5617_v40 = vpop.permute.xlu1 %5616 }
0x3d96   :  { %v5622_v39 = vsel %vm10295_vm2, %v5615_v44, %v5617_v40  ;;  %v7651_v40 = vld [vmem:[%s10073_s3 + $0xa0] ss:$8 sps:$4 sm:$0xff]  }
0x3d97   :  { %5661 = vmatpush1.bf16.msra.mxu0 %v5606_v21  ;;  %v7639_v21 = vld [vmem:[%s10071_s1 + $0x194] sm:$0xff]  }
0x3d98   :  { %5662 = vmatprep.subr.bf16.mxu0 %v5623_v48  ;;  %v7650_v48 = vld [vmem:[%s10073_s3 + $0x120] ss:$8 sps:$4 sm:$0xff]  }
0x3d9b   :  { %6338 = vmatpush1.bf16.msk.msra.mxu0 %vm7762_vm4, %v5619_v56  ;;  %v7649_v56 = vld [vmem:[%s10073_s3 + $0xb0] ss:$8 sps:$4 sm:$0xff]  }
0x3d9c   :  { %5664 = vmatprep.subr.bf16.mxu0 %v5622_v39  ;;  %v7653_v39 = vld [vmem:[%s10073_s3 + $0x90] ss:$8 sps:$4 sm:$0xff]  }
0x3d9f   :  { %6340 = vmatpush1.bf16.msk.msra.mxu0 %vm7762_vm4, %v5615_v44  ;;  %v7652_v44 = vld [vmem:[%s10073_s3 + $0x110] ss:$8 sps:$4 sm:$0xff]  }
0x3da2   :  { %6341 = vmatmul.mubr.msk.bf16.vlgmr.msra.gmra.mxu0 %vm243_vm1, %v7636_v60  ;;  %v7654_v60 = vld [vmem:[%s10073_s3 + $0x100] ss:$8 sps:$4 sm:$0xff]  }
0x3da3   :  { %5692 = vmatprep.mubr.bf16.mxu0 %v10285_v25 }
0x3daa   :  { %6342 = vmatmul.mubr.msk.bf16.gmra.mxu0 %vm243_vm1, %v7637_v7  ;;  %v7655_v7 = vld [vmem:[%s10073_s3 + $0x80] ss:$8 sps:$4 sm:$0xff]  }
0x3dab   :  { %5884 = vmatprep.mubr.bf16.mxu0 %v10285_v25 }
0x3e62   :  { %v5684_v63 = vpop.f32.mrf.mxu0 }
0x3e63   :  { %v5685_v45 = vadd.f32 %v5684_v63, %v10299_v22 }
0x3e64   :  { %v5686_v23 = vpop.f32.mrf.mxu0 }
0x3e65   :  { %v5687_v47 = vadd.f32 %v5686_v23, %v10299_v22 }
0x3e66   :  { %v5688_v6 = vpop.f32.mrf.mxu0 }
0x3e67   :  { %v5689_v2 = vadd.f32 %v5688_v6, %v10298_v28 }
0x3e68   :  { %v5690_v4 = vpop.f32.mrf.mxu0 }
0x3e69   :  { %v5691_v55 = vadd.f32 %v5690_v4, %v10298_v28  ;;  %v5703_v57 = vpack.c.bf16 %v5689_v2, %v5685_v45 }
0x3e6a   :  { %v5694_v12 = vpop.f32.mrf.mxu0 }
0x3e6b   :  { %v5695_v54 = vadd.f32 %v5694_v12, %v10296_v38  ;;  %v5704_v1 = vpack.c.bf16 %v5691_v55, %v5687_v47 }
0x3e6c   :  { %v5696_v19 = vpop.f32.mrf.mxu0 }
0x3e6d   :  { %v5697_v59 = vadd.f32 %v5696_v19, %v10296_v38 }
0x3e6e   :  { %v5698_v0 = vpop.f32.mrf.mxu0 }
0x3e6f   :  { %v5699_v17 = vadd.f32 %v5698_v0, %v10297_v20 }
0x3e70   :  { %v5700_v13 = vpop.f32.mrf.mxu0 }
0x3e71   :  { %v5705_v14 = vpack.c.bf16 %v5699_v17, %v5695_v54  ;;  %v5701_v49 = vadd.f32 %v5700_v13, %v10297_v20 }
0x3e73   :  { %v5706_v26 = vpack.c.bf16 %v5701_v49, %v5697_v59  ;;  %5733 = vrot.lane.b32.xlu0 %v5705_v14, %s7659_s9 }
0x3e75   :  { %5735 = vrot.lane.b32.xlu1 %v5706_v26, %s7659_s9 }
0x3e77   :  { %5729 = vrot.lane.b32.xlu0 %v5703_v57, %s7659_s9 }
0x3e79   :  { %5731 = vrot.lane.b32.xlu1 %v5704_v1, %s7659_s9 }
0x3e7b   :  { %5715 = vrot.lane.b32.xlu0 %v5705_v14, %s7660_s10 }
0x3e7d   :  { %5717 = vrot.lane.b32.xlu1 %v5706_v26, %s7660_s10 }
0x3e7f   :  { %5711 = vrot.lane.b32.xlu0 %v5703_v57, %s7660_s10 }
0x3e81   :  { %5713 = vrot.lane.b32.xlu1 %v5704_v1, %s7660_s10 }
0x3ee5   :  { %v5734_v41 = vpop.permute.xlu0 %5733 }
0x3ee7   :  { %v5736_v32 = vpop.permute.xlu1 %5735 }
0x3ee8   :  { %v5738_v34 = vsel %vm3117_vm15, %v5734_v41, %v5736_v32  ;;  %6343 = vmatprep.subr.msk.bf16.mxu1 %vm3117_vm15, %v5736_v32 }
0x3ee9   :  { %5752 = vmatpush1.bf16.msra.mxu1 %v5738_v34  ;;  %v5730_v46 = vpop.permute.xlu0 %5729 }
0x3eeb   :  { %v5732_v29 = vpop.permute.xlu1 %5731 }
0x3eec   :  { %v5737_v31 = vsel %vm3117_vm15, %v5730_v46, %v5732_v29  ;;  %6344 = vmatprep.subr.msk.bf16.mxu1 %vm3117_vm15, %v5732_v29 }
0x3eed   :  { %5754 = vmatpush1.bf16.msra.mxu1 %v5737_v31  ;;  %v5716_v5 = vpop.permute.xlu0 %5715 }
0x3eee   :  { %5755 = vmatprep.subr.bf16.mxu1 %v5706_v26 }
0x3eef   :  { %v5718_v58 = vpop.permute.xlu1 %5717 }
0x3ef0   :  { %v5720_v62 = vsel %vm10300_vm5, %v5716_v5, %v5718_v58 }
0x3ef1   :  { %5756 = vmatpush1.bf16.msra.mxu1 %v5705_v14  ;;  %v5712_v53 = vpop.permute.xlu0 %5711 }
0x3ef2   :  { %5757 = vmatprep.subr.bf16.mxu1 %v5704_v1 }
0x3ef3   :  { %v5714_v15 = vpop.permute.xlu1 %5713 }
0x3ef4   :  { %v5719_v18 = vsel %vm10301_vm7, %v5712_v53, %v5714_v15 }
0x3ef5   :  { %5758 = vmatpush1.bf16.msra.mxu1 %v5703_v57 }
0x3ef6   :  { %5759 = vmatprep.subr.bf16.mxu1 %v5720_v62 }
0x3ef9   :  { %6346 = vmatpush1.bf16.msk.msra.mxu1 %vm7762_vm4, %v5716_v5 }
0x3efa   :  { %5761 = vmatprep.subr.bf16.mxu1 %v5719_v18 }
0x3efd   :  { %6348 = vmatpush1.bf16.msk.msra.mxu1 %vm7762_vm4, %v5712_v53 }
0x3efe   :  { %6717 = vmatprep.subr.bf16.mxu1 %v7638_v30 }
0x3f00   :  { %6349 = vmatmul.mubr.msk.bf16.vlgmr.msra.gmra.mxu1 %vm243_vm1, %v7639_v21  ;;  %v7656_v21 = vld [vmem:[%s10071_s1 + $0x1a4] sm:$0x3] }
0x3f01   :  { %5789 = vmatprep.mubr.bf16.mxu1 %v10285_v25  ;;  %6718 = vmatpush3.bf16.msra.mxu1 %v7640_v50  ;;  %v7644_v25 = vld [vmem:[%s10071_s1 + $0x19c] sm:$0xff]  }
0x3f02   :  { %6719 = vmatprep.subr.bf16.mxu1 %v7641_v35 }
0x3f05   :  { %6720 = vmatpush3.bf16.msra.mxu1 %v7642_v52 }
0x3f06   :  { %6721 = vmatprep.subr.bf16.mxu1 %v7643_v43 }
0x3f08   :  { %6350 = vmatmul.mubr.msk.bf16.gmra.mxu1 %vm243_vm1, %v7644_v25 }
0x3f09   :  { %6722 = vmatpush3.bf16.msra.mxu1 %v7645_v61 }
0x3f0a   :  { %6723 = vmatprep.subr.bf16.mxu1 %v7646_v11 }
0x3f0d   :  { %6724 = vmatpush3.bf16.msra.mxu1 %v7647_v42 }
0x3f0e   :  { %6725 = vmatprep.subr.bf16.mxu1 %v7648_v16 }
0x3f11   :  { %6726 = vmatpush3.bf16.msra.mxu1 %v7649_v56 }
0x3f12   :  { %6727 = vmatprep.subr.bf16.mxu1 %v7650_v48 }
0x3f15   :  { %6728 = vmatpush3.bf16.msra.mxu1 %v7651_v40  ;;  %v4789_v40 = vadd.f32 %v9659_v37, %v9140_v24 }
0x3f16   :  { %6729 = vmatprep.subr.bf16.mxu1 %v7652_v44 }
0x3f19   :  { %6730 = vmatpush3.bf16.msra.mxu1 %v7653_v39 }
0x3f1a   :  { %6731 = vmatprep.subr.bf16.mxu1 %v7654_v60 }
0x3f1d   :  { %6732 = vmatpush3.bf16.msra.mxu1 %v7655_v7  ;;  %v7657_v7 = vld [vmem:[%s10071_s1 + $0x1a8] sm:$0x3] }
0x3fc0   :  { %v5781_v63 = vpop.f32.mrf.mxu1 }
0x3fc1   :  { %v5782_v13 = vadd.f32 %v5781_v63, %v9044_v10 }
0x3fc2   :  { %v5783_v23 = vpop.f32.mrf.mxu1 }
0x3fc3   :  { %v5784_v22 = vadd.f32 %v5783_v23, %v9044_v10  ;;  %v5800_v57 = vmax.f32 %v5782_v13, 0.0 }
0x3fc4   :  { %v5785_v6 = vpop.f32.mrf.mxu1 }
0x3fc5   :  { %v5786_v54 = vadd.f32 %v5785_v6, %v9042_v33  ;;  %v5801_v41 = vmax.f32 %v5784_v22, 0.0 }
0x3fc6   :  { %v5787_v4 = vpop.f32.mrf.mxu1 }
0x3fc7   :  { %v5788_v2 = vadd.f32 %v5787_v4, %v9042_v33  ;;  %v5802_v45 = vmax.f32 %v5786_v54, 0.0 }
0x3fc8   :  { %v5791_v12 = vpop.f32.mrf.mxu1 }
0x3fc9   :  { %v5792_v0 = vadd.f32 %v5791_v12, %v9039_v9  ;;  %v5803_v1 = vmax.f32 %v5788_v2, 0.0  ;;  %v5808_v32 = vpack.c.bf16 %v5802_v45, %v5800_v57 }
0x3fca   :  { %v5793_v19 = vpop.f32.mrf.mxu1 }
0x3fcb   :  { %v5794_v20 = vadd.f32 %v5793_v19, %v9039_v9  ;;  %v5804_v59 = vmax.f32 %v5792_v0, 0.0  ;;  %v5809_v33 = vpack.c.bf16 %v5803_v1, %v5801_v41 }
0x3fcc   :  { %v5795_v38 = vpop.f32.mrf.mxu1 }
0x3fcd   :  { %v5796_v17 = vadd.f32 %v5795_v38, %v9037_v51  ;;  %v5805_v55 = vmax.f32 %v5794_v20, 0.0 }
0x3fce   :  { %v5797_v28 = vpop.f32.mrf.mxu1 }
0x3fcf   :  { %v5806_v14 = vmax.f32 %v5796_v17, 0.0  ;;  %v5798_v49 = vadd.f32 %v5797_v28, %v9037_v51  ;;  %v3647_v51 = vld [vmem:[%s10072_s2 + $0x350] sm:$0xf] }
0x3fd1   :  { %v5810_v26 = vpack.c.bf16 %v5806_v14, %v5804_v59  ;;  %v5807_v47 = vmax.f32 %v5798_v49, 0.0 }
0x3fd3   :  { %v5811_v9 = vpack.c.bf16 %v5807_v47, %v5805_v55  ;;  %5838 = vrot.lane.b32.xlu0 %v5810_v26, %s7659_s9 }
0x3fd5   :  { %5840 = vrot.lane.b32.xlu1 %v5811_v9, %s7659_s9 }
0x3fd7   :  { %5834 = vrot.lane.b32.xlu0 %v5808_v32, %s7659_s9 }
0x3fd9   :  { %5836 = vrot.lane.b32.xlu1 %v5809_v33, %s7659_s9 }
0x3fdb   :  { %5820 = vrot.lane.b32.xlu0 %v5810_v26, %s7660_s10 }
0x3fdd   :  { %5822 = vrot.lane.b32.xlu1 %v5811_v9, %s7660_s10 }
0x3fdf   :  { %5816 = vrot.lane.b32.xlu0 %v5808_v32, %s7660_s10 }
0x3fe1   :  { %5818 = vrot.lane.b32.xlu1 %v5809_v33, %s7660_s10 }
0x3fe3   :  { %3650 = vperm.xlu0 %7489, %v3647_v51  }
0x4045   :  { %v5839_v10 = vpop.permute.xlu0 %5838 }
0x4047   :  { %v5841_v34 = vpop.permute.xlu1 %5840 }
0x4048   :  { %v5843_v46 = vsel %vm3117_vm15, %v5839_v10, %v5841_v34  ;;  %6351 = vmatprep.subr.msk.bf16.mxu0 %vm3117_vm15, %v5841_v34 }
0x4049   :  { %5857 = vmatpush1.bf16.msra.mxu0 %v5843_v46  ;;  %v5835_v29 = vpop.permute.xlu0 %5834 }
0x404b   :  { %v5837_v31 = vpop.permute.xlu1 %5836 }
0x404c   :  { %v5842_v58 = vsel %vm3117_vm15, %v5835_v29, %v5837_v31  ;;  %6352 = vmatprep.subr.msk.bf16.mxu0 %vm3117_vm15, %v5837_v31 }
0x404d   :  { %5859 = vmatpush1.bf16.msra.mxu0 %v5842_v58  ;;  %v5821_v62 = vpop.permute.xlu0 %5820 }
0x404e   :  { %5860 = vmatprep.subr.bf16.mxu0 %v5811_v9 }
0x404f   :  { %v5823_v5 = vpop.permute.xlu1 %5822 }
0x4050   :  { %v5825_v15 = vsel %vm10302_vm8, %v5821_v62, %v5823_v5 }
0x4051   :  { %5861 = vmatpush1.bf16.msra.mxu0 %v5810_v26  ;;  %v5817_v18 = vpop.permute.xlu0 %5816 }
0x4052   :  { %5862 = vmatprep.subr.bf16.mxu0 %v5809_v33 }
0x4053   :  { %v5819_v53 = vpop.permute.xlu1 %5818 }
0x4054   :  { %v5824_v30 = vsel %vm10303_vm9, %v5817_v18, %v5819_v53 }
0x4055   :  { %5863 = vmatpush1.bf16.msra.mxu0 %v5808_v32 }
0x4056   :  { %5864 = vmatprep.subr.bf16.mxu0 %v5825_v15 }
0x4059   :  { %6354 = vmatpush1.bf16.msk.msra.mxu0 %vm7762_vm4, %v5821_v62 }
0x405a   :  { %5866 = vmatprep.subr.bf16.mxu0 %v5824_v30 }
0x405d   :  { %6356 = vmatpush1.bf16.msk.msra.mxu0 %vm7762_vm4, %v5817_v18 }
0x405e   :  { %7419 = vmatprep.subr.bf16.mxu0 %v10182_v27  ;;  %v3651_v63 = vpop.permute.xlu0 %3650 }
0x405f   :  { %v3695_v12 = vadd.f32 %v9182_v8, %v3651_v63 }
0x4060   :  { %6357 = vmatmul.mubr.msk.bf16.vlgmr.msra.gmra.mxu0 %vm243_vm1, %v7656_v21 }
0x4061   :  { %7421 = vmatprep.mubr.msk.bf16.mxu0 %vm7664_vm12, %v10182_v27 }
0x4120   :  { %v5886_v50 = vpop.f32.mrf.mxu0 }
0x4121   :  { %v5887_v35 = vadd.f32 %v5886_v50, %v9132_v3 }
0x4122   :  { %v5888_v52 = vpop.f32.mrf.mxu0 }
0x4123   :  { %v5889_v43 = vadd.f32 %v5888_v52, %v9132_v3  ;;  %v5893_v61 = vpack.c.bf16 %v5887_v35, %v5887_v35 }
0x4124   :  { %v5890_v25 = vpop.f32.mrf.mxu0 }
0x4125   :  { %v5894_v36 = vpack.c.bf16 %v5889_v43, %v5889_v43 }
0x4126   :  { %v5891_v11 = vpop.f32.mrf.mxu0 }
0x4127   :  { %5927 = vmatprep.mubr.bf16.mxu1 %v5894_v36 }
0x4128   :  { %5928 = vmatmul.mubr.bf16.vlgmr.msra.gmra.mxu1 %v5893_v61 }
0x41e8   :  { %v6733_v42 = vpop.f32.mrf.mxu1 }
0x41ea   :  { %v6734_v16 = vpop.f32.mrf.mxu1 }
0x41eb   :  { %v6735_v56 = vadd.f32 %v6734_v16, %v6733_v42 }
0x41ec   :  { %v6736_v48 = vpop.f32.mrf.mxu1 }
0x41ed   :  { %v5936_v27 = vrot.slane %v6735_v56, 4 }
0x41ee   :  { %v6737_v44 = vpop.f32.mrf.mxu1 }
0x41ef   :  { %v5938_v39 = vsel %vm3643_vm6, %v4789_v40, %v5936_v27 }
0x41f0   :  { %v5939_v60 = vpack.c.bf16 %v5938_v39, %v5938_v39 }
0x41f2   :  { %v5941_v3 = vsel %vm3643_vm6, %v5939_v60, 0 }
0x41f3   :  { %7420 = vmatpush3.bf16.msra.mxu0 %v5941_v3 }
0x41f6   :  { %7422 = vmatmul.mubr.msk.bf16.vlgmr.msra.gmra.mxu0 %vm3653_vm3, %v7657_v7 }
0x42b6   :  { %v5977_v23 = vpop.f32.mrf.mxu0 }
0x42b7   :  { %v5978_v6 = vadd.f32 %v5977_v23, %v3651_v63 }
0x42b8   :  { %v7423_v4 = vpop.f32.mrf.mxu0 }
0x42b9   :  { %5984 = vrot.lane.b32.xlu1 %v5978_v6, %s7665_s6 }
0x42ba   :  { %v5980_v24 = vpop.f32.mrf.mxu0 }
0x42bc   :  { %v7424_v37 = vpop.f32.mrf.mxu0 }
0x432b   :  { %v5985_v19 = vpop.permute.xlu1 %5984 }
0x432c   :  { %v5987_v0 = vsel %vm3022_vm14, %v3695_v12, %v5985_v19 }
0x432d   :  { %5988 = vst [vmem:[%s10074_s4] sm:$0xf] %v5987_v0 }

</bundles_post_ra>
